<compile_context>
chip_gen: v5e
topology: v5e:2x2
jax: 0.10.0
libtpu: 0.0.40
codegen_flags: <defaults>
</compile_context>

<pallas_src>
import numpy as np

import jax
import jax.numpy as jnp
from jax.experimental import pallas as pl
from jax.experimental.pallas import tpu as pltpu


_VMEM_LIMIT = 8 * 1024 * 1024  # total working set is <1 MiB; keep scoped VMEM modest.


def _state_rows(num_layers):
    """Rows of the packed (rows, 128) state/output slab: h, c, q + padding to 8."""
    return max(8, ((2 * num_layers + 1 + 7) // 8) * 8)


# ----------------------------------------------------------------------------
# The single fused kernel
# ----------------------------------------------------------------------------

def _darqn_kernel(p1_ref, wc1_ref, s2_ref, w2t_ref, s3_ref, w3t_ref,
                  wattn_ref, wlstm_ref, blstm_ref, wq_ref, bias_ref,
                  state_ref, out_ref):
    f32 = jnp.float32
    bf16 = jnp.bfloat16

    hidden = wattn_ref.shape[1]          # H
    num_layers = wlstm_ref.shape[0]      # NL
    n_taps2 = s2_ref.shape[0]            # 16
    n_taps3 = s3_ref.shape[0]            # 9
    seq_len = s3_ref.shape[1]            # L = 16
    c2_out = w2t_ref.shape[2]            # 64

    # ---- conv1: im2col patches (225,64) @ (64,32) + bias, ReLU --------------
    bc1 = bias_ref[0:1, 0:wc1_ref.shape[1]]
    h1 = jnp.dot(p1_ref[...], wc1_ref[...], preferred_element_type=f32)
    h1 = jnp.maximum(h1 + bc1, 0.0)                       # (225, 32) f32
    h1_bf = h1.astype(bf16)

    # ---- conv2: per-tap gather (selection matmul) + accumulate --------------
    bc2 = bias_ref[1:2, 0:c2_out]
    acc2 = jnp.zeros((s2_ref.shape[1], c2_out), f32)      # (36, 64)
    for t in range(n_taps2):
        g = jnp.dot(s2_ref[t], h1_bf, preferred_element_type=f32)   # gather 36 rows
        acc2 = acc2 + jnp.dot(g.astype(bf16), w2t_ref[t],
                              preferred_element_type=f32)
    h2 = jnp.maximum(acc2 + bc2, 0.0)                     # (36, 64) f32
    h2_bf = h2.astype(bf16)

    # ---- conv3: same scheme -> input vectors v (L, H) ------------------------
    bc3 = bias_ref[2:3, 0:hidden]
    acc3 = jnp.zeros((seq_len, hidden), f32)              # (16, 32)
    for t in range(n_taps3):
        g = jnp.dot(s3_ref[t], h2_bf, preferred_element_type=f32)
        acc3 = acc3 + jnp.dot(g.astype(bf16), w3t_ref[t],
                              preferred_element_type=f32)
    v = jnp.maximum(acc3 + bc3, 0.0)                      # (16, 32) f32

    # ---- Attention, 'concat' alignment ---------------------------------------
    # align = W_s(tanh(W_a[v ; h] + b_a)) + b_s, cat order (v, h)
    h_last = state_ref[num_layers - 1:num_layers, 0:hidden]          # (1, H)
    b1a = bias_ref[3:4, 0:hidden]
    w2row = bias_ref[4:5, 0:hidden]
    b2a = bias_ref[5:6, 0:1]
    a = jnp.tanh(
        jnp.dot(v.astype(bf16), wattn_ref[0:hidden, :],
                preferred_element_type=f32)
        + jnp.dot(h_last.astype(bf16), wattn_ref[hidden:2 * hidden, :],
                  preferred_element_type=f32)
        + b1a)                                            # (L, H)
    # N=1 "matmul" on the VPU: multiply by the fc_2 row and lane-reduce.
    scores = jnp.sum(a * w2row, axis=-1, keepdims=True) + b2a        # (L, 1)
    m = jnp.max(scores, axis=0, keepdims=True)
    e = jnp.exp(scores - m)
    wts = e * pl.reciprocal(jnp.sum(e, axis=0, keepdims=True), approx=True)
    context = jnp.sum(v * wts, axis=0, keepdims=True)                # (1, H)

    # ---- Decoder LSTM stack (seq_len == 1): ONE merged matmul per layer ------
    out_ref[...] = jnp.zeros_like(out_ref)
    x = context
    for layer in range(num_layers):
        h_prev = state_ref[layer:layer + 1, 0:hidden]
        c_prev = state_ref[num_layers + layer:num_layers + layer + 1, 0:hidden]
        xh = jnp.concatenate([x, h_prev], axis=1)                    # (1, 2H)
        gates = (jnp.dot(xh.astype(bf16), wlstm_ref[layer],
                         preferred_element_type=f32)
                 + blstm_ref[layer])                                 # (1, 4H) i,f,g,o
        i = jax.nn.sigmoid(gates[:, 0 * hidden:1 * hidden])
        f = jax.nn.sigmoid(gates[:, 1 * hidden:2 * hidden])
        g = jnp.tanh(gates[:, 2 * hidden:3 * hidden])
        o = jax.nn.sigmoid(gates[:, 3 * hidden:4 * hidden])
        c_new = f * c_prev + i * g
        h_new = o * jnp.tanh(c_new)
        out_ref[layer:layer + 1, 0:hidden] = h_new
        out_ref[num_layers + layer:num_layers + layer + 1, 0:hidden] = c_new
        x = h_new

    # ---- q_net (weights pre-padded to 128 lanes -> lane-dense q row) ---------
    bq = bias_ref[6:7, :]
    q = jnp.dot(x.astype(bf16), wq_ref[...], preferred_element_type=f32) + bq
    out_ref[2 * num_layers:2 * num_layers + 1, :] = q


def fused_forward(prep, patches1, state):
    """conv1 + conv2 + conv3 + attention('concat') + LSTM + q_net, one pallas_call."""
    rows = state.shape[0]
    return pl.pallas_call(
        _darqn_kernel,
        out_shape=jax.ShapeDtypeStruct((rows, 128), jnp.float32),
        in_specs=[pl.BlockSpec(memory_space=pltpu.MemorySpace.VMEM)] * 12,
        out_specs=pl.BlockSpec(memory_space=pltpu.MemorySpace.VMEM),
        # state slab (input index 11) updated in place -> output 0.
        input_output_aliases={11: 0},
        compiler_params=pltpu.CompilerParams(vmem_limit_bytes=_VMEM_LIMIT),
    )(patches1, prep["wc1"], prep["s2"], prep["w2t"], prep["s3"], prep["w3t"],
      prep["wattn"], prep["wlstm"], prep["blstm"], prep["wq"], prep["bias"],
      state)


# ----------------------------------------------------------------------------
# conv1 im2col prologue (runs inside jax.jit, fused by XLA; input-frame only)
# ----------------------------------------------------------------------------

def _im2col_nhwc(x, kh, kw, stride):
    """x: (B, H, W, C) -> patches (B*OH*OW, KH*KW*C), column order (kh, kw, c)."""
    B, H, W, C = x.shape
    oh = (H - kh) // stride + 1
    ow = (W - kw) // stride + 1
    cols = []
    for i in range(kh):
        for j in range(kw):
            cols.append(x[:, i:i + stride * oh:stride, j:j + stride * ow:stride, :])
    p = jnp.stack(cols, axis=3)                           # (B, OH, OW, KH*KW, C)
    return p.reshape(B * oh * ow, kh * kw * C), oh, ow


# ----------------------------------------------------------------------------
# Parameters: PyTorch-layout init + one-time kernel-ready re-layout
# ----------------------------------------------------------------------------

def init_params(key, hidden, nr_actions, num_layers):
    def u(k, shape, fan_in):
        bound = 1.0 / jnp.sqrt(jnp.float32(fan_in))
        return jax.random.uniform(k, shape, jnp.float32, -bound, bound)

    keys = iter(jax.random.split(key, 64))
    p = {}
    # CNN
    p["conv1_w"] = u(next(keys), (32, 1, 8, 8), 1 * 8 * 8)
    p["conv1_b"] = u(next(keys), (32,), 1 * 8 * 8)
    p["conv2_w"] = u(next(keys), (64, 32, 4, 4), 32 * 4 * 4)
    p["conv2_b"] = u(next(keys), (64,), 32 * 4 * 4)
    p["conv3_w"] = u(next(keys), (hidden, 64, 3, 3), 64 * 3 * 3)
    p["conv3_b"] = u(next(keys), (hidden,), 64 * 3 * 3)
    # Attention (alignment='concat'): fc_1: (H, 2H), fc_2: (1, H)
    p["attn_fc1_w"] = u(next(keys), (hidden, 2 * hidden), 2 * hidden)
    p["attn_fc1_b"] = u(next(keys), (hidden,), 2 * hidden)
    p["attn_fc2_w"] = u(next(keys), (1, hidden), hidden)
    p["attn_fc2_b"] = u(next(keys), (1,), hidden)
    # Decoder LSTM (PyTorch layouts, gate order i,f,g,o)
    p["lstm"] = []
    for _ in range(num_layers):
        p["lstm"].append({
            "w_ih": u(next(keys), (4 * hidden, hidden), hidden),
            "w_hh": u(next(keys), (4 * hidden, hidden), hidden),
            "b_ih": u(next(keys), (4 * hidden,), hidden),
            "b_hh": u(next(keys), (4 * hidden,), hidden),
        })
    # QNet
    p["q_w"] = u(next(keys), (nr_actions, hidden), hidden)
    p["q_b"] = u(next(keys), (nr_actions,), hidden)
    return p


def _conv_gather_onehot(in_h, in_w, k, stride):
    """0/1 selection matrices: (k*k taps, oh*ow, in_h*in_w), bf16 (exact)."""
    oh = (in_h - k) // stride + 1
    ow = (in_w - k) // stride + 1
    idx = np.empty((k * k, oh * ow), np.int64)
    for i in range(k):
        for j in range(k):
            oy, ox = np.meshgrid(np.arange(oh), np.arange(ow), indexing="ij")
            idx[i * k + j] = ((stride * oy + i) * in_w + (stride * ox + j)).reshape(-1)
    onehot = (idx[..., None] == np.arange(in_h * in_w)[None, None, :])
    return jnp.asarray(onehot, dtype=jnp.bfloat16)


def prepare_params(p, hidden, nr_actions, num_layers, frame_hw=64):
    """One-time re-layout of all weights into kernel-ready (bf16 / packed) form."""
    assert hidden <= 128 and nr_actions <= 128
    bf16 = jnp.bfloat16
    f32 = jnp.float32

    # spatial sizes through the conv stack
    s1 = (frame_hw - 8) // 4 + 1                   # 15
    s2 = (s1 - 4) // 2 + 1                         # 6

    def conv_w_flat(w):                            # (O,C,KH,KW) -> (KH*KW*C, O)
        O, C, KH, KW = w.shape
        return jnp.transpose(w, (2, 3, 1, 0)).reshape(KH * KW * C, O)

    def conv_w_taps(w):                            # (O,C,KH,KW) -> (KH*KW, C, O)
        O, C, KH, KW = w.shape
        return jnp.transpose(w, (2, 3, 1, 0)).reshape(KH * KW, C, O)

    # lane-dense slab holding every sub-vreg bias / tiny vector (8, 128) f32
    bias = jnp.zeros((8, 128), f32)
    bias = bias.at[0, :32].set(p["conv1_b"])
    bias = bias.at[1, :64].set(p["conv2_b"])
    bias = bias.at[2, :hidden].set(p["conv3_b"])
    bias = bias.at[3, :hidden].set(p["attn_fc1_b"])
    bias = bias.at[4, :hidden].set(p["attn_fc2_w"][0])
    bias = bias.at[5, 0].set(p["attn_fc2_b"][0])
    bias = bias.at[6, :nr_actions].set(p["q_b"])

    wq = jnp.zeros((hidden, 128), f32).at[:, :nr_actions].set(p["q_w"].T)

    return {
        # conv1 as a plain matmul on im2col patches
        "wc1": conv_w_flat(p["conv1_w"]).astype(bf16),                 # (64, 32)
        # conv2 / conv3 as per-tap gather + tap-weight matmuls
        "s2": _conv_gather_onehot(s1, s1, 4, 2),                       # (16, 36, 225)
        "w2t": conv_w_taps(p["conv2_w"]).astype(bf16),                 # (16, 32, 64)
        "s3": _conv_gather_onehot(s2, s2, 3, 1),                       # (9, 16, 36)
        "w3t": conv_w_taps(p["conv3_w"]).astype(bf16),                 # (9, 64, 32)
        # attention fc1 (cat order (v, h) -> rows [:H] act on v, [H:] on h)
        "wattn": p["attn_fc1_w"].T.astype(bf16),                       # (2H, H)
        # LSTM: one merged weight per layer, gate columns i,f,g,o
        "wlstm": jnp.stack(
            [jnp.concatenate([l["w_ih"].T, l["w_hh"].T], axis=0)
             for l in p["lstm"]], axis=0).astype(bf16),                # (NL, 2H, 4H)
        "blstm": jnp.stack([(l["b_ih"] + l["b_hh"]).reshape(1, -1)
                            for l in p["lstm"]], axis=0),              # (NL, 1, 4H) f32
        # q_net padded to 128 output lanes (lane-dense store)
        "wq": wq.astype(bf16),                                         # (H, 128)
        "bias": bias,                                                  # (8, 128) f32
    }


# ----------------------------------------------------------------------------
# DARQN forward (functional version of DARQNModel.forward), batch = 1
# ----------------------------------------------------------------------------

def init_hidden(num_layers, hidden):
    """Zero-initialized packed (h, c, q) state slab."""
    assert hidden <= 128
    return jnp.zeros((_state_rows(num_layers), 128), jnp.float32)


def unpack_state(state, num_layers, hidden):
    h = state[0:num_layers, :hidden].reshape(num_layers, 1, hidden)
    c = state[num_layers:2 * num_layers, :hidden].reshape(num_layers, 1, hidden)
    return h, c


def darqn_forward(prep, input_frame, state, *, nr_actions):
    num_layers = prep["wlstm"].shape[0]
    # NCHW -> NHWC once; conv1 im2col is the only XLA glue, it feeds the kernel.
    x = jnp.transpose(input_frame, (0, 2, 3, 1))
    p1, _, _ = _im2col_nhwc(x, 8, 8, 4)                    # (225, 64)
    new_state = fused_forward(prep, p1.astype(jnp.bfloat16), state)
    q_values = new_state[2 * num_layers:2 * num_layers + 1, 0:nr_actions]
    return q_values, new_state


# ----------------------------------------------------------------------------
# Demo
# ----------------------------------------------------------------------------

if __name__ == "__main__":
    hidden_size = 32
    nr_actions = 4
    num_layers = 1

    key = jax.random.PRNGKey(0)
    k_param, k_input = jax.random.split(key)
    raw_params = init_params(k_param, hidden_size, nr_actions, num_layers)
    prep = prepare_params(raw_params, hidden_size, nr_actions, num_layers,
                          frame_hw=64)     # one-time weight re-layout (bf16/packed)

    # input_frame: (batch=1, channels=1, 64, 64) -> conv stack -> 4x4x32 (L=16)
    input_frame = jax.random.normal(k_input, (1, 1, 64, 64), jnp.float32)

    # init_hidden(batch_size=1): packed (h, c, q) slab, all zeros
    state = init_hidden(num_layers, hidden_size)

    fwd = jax.jit(darqn_forward, static_argnames=("nr_actions",),
                  donate_argnums=(2,))      # donate the state slab -> true in-place update
    q_values, state = fwd(prep, input_frame, state, nr_actions=nr_actions)
    jax.block_until_ready((q_values, state))

    dec_h_t, dec_c_t = unpack_state(state, num_layers, hidden_size)
    assert q_values.shape == (1, nr_actions)
    assert dec_h_t.shape == (num_layers, 1, hidden_size)
    assert dec_c_t.shape == (num_layers, 1, hidden_size)
    print("KERNEL_OK")
</pallas_src>

<mosaic_0001>
module attributes {stable_mosaic.version = 11 : i64} {
  func.func @_darqn_kernel(%arg0: memref<225x64xbf16, #tpu.memory_space<vmem>>, %arg1: memref<64x32xbf16, #tpu.memory_space<vmem>>, %arg2: memref<16x36x225xbf16, #tpu.memory_space<vmem>>, %arg3: memref<16x32x64xbf16, #tpu.memory_space<vmem>>, %arg4: memref<9x16x36xbf16, #tpu.memory_space<vmem>>, %arg5: memref<9x64x32xbf16, #tpu.memory_space<vmem>>, %arg6: memref<64x32xbf16, #tpu.memory_space<vmem>>, %arg7: memref<1x64x128xbf16, #tpu.memory_space<vmem>>, %arg8: memref<1x1x128xf32, #tpu.memory_space<vmem>>, %arg9: memref<32x128xbf16, #tpu.memory_space<vmem>>, %arg10: memref<8x128xf32, #tpu.memory_space<vmem>>, %arg11: memref<8x128xf32, #tpu.memory_space<vmem>>, %arg12: memref<8x128xf32, #tpu.memory_space<vmem>>) attributes {dimension_semantics = [], scalar_prefetch = 0 : i64, scratch_operands = 0 : i64, tpu.core_type = #tpu.core_type<tc>} {
    %c0 = arith.constant 0 : index
    %c0_0 = arith.constant 0 : index
    %0 = vector.load %arg10[%c0, %c0_0] : memref<8x128xf32, #tpu.memory_space<vmem>>, vector<1x32xf32>
    %c0_1 = arith.constant 0 : index
    %c0_2 = arith.constant 0 : index
    %1 = vector.load %arg0[%c0_1, %c0_2] : memref<225x64xbf16, #tpu.memory_space<vmem>>, vector<225x64xbf16>
    %c0_3 = arith.constant 0 : index
    %c0_4 = arith.constant 0 : index
    %2 = vector.load %arg1[%c0_3, %c0_4] : memref<64x32xbf16, #tpu.memory_space<vmem>>, vector<64x32xbf16>
    %cst = arith.constant dense<0.000000e+00> : vector<225x32xf32>
    %3 = tpu.matmul %1, %2, %cst {dimension_numbers = #tpu.dot_dimension_numbers<[1], [0], [0], [1], [0, 0, 1, 1], [], []>} : vector<225x64xbf16>, vector<64x32xbf16>, vector<225x32xf32> -> vector<225x32xf32>
    %4 = vector.broadcast %0 : vector<1x32xf32> to vector<225x32xf32>
    %5 = arith.addf %3, %4 : vector<225x32xf32>
    %cst_5 = arith.constant 0.000000e+00 : f32
    %6 = vector.broadcast %cst_5 : f32 to vector<225x32xf32>
    %7 = arith.maximumf %5, %6 : vector<225x32xf32>
    %8 = arith.truncf %7 : vector<225x32xf32> to vector<225x32xbf16>
    %c1 = arith.constant 1 : index
    %c0_6 = arith.constant 0 : index
    %9 = vector.load %arg10[%c1, %c0_6] : memref<8x128xf32, #tpu.memory_space<vmem>>, vector<1x64xf32>
    %cst_7 = arith.constant 0.000000e+00 : f32
    %10 = vector.broadcast %cst_7 : f32 to vector<36x64xf32>
    %c0_8 = arith.constant 0 : index
    %c0_9 = arith.constant 0 : index
    %c0_10 = arith.constant 0 : index
    %11 = vector.load %arg2[%c0_8, %c0_9, %c0_10] : memref<16x36x225xbf16, #tpu.memory_space<vmem>>, vector<1x36x225xbf16>
    %12 = vector.shape_cast %11 : vector<1x36x225xbf16> to vector<36x225xbf16>
    %cst_11 = arith.constant dense<0.000000e+00> : vector<36x32xf32>
    %13 = tpu.matmul %12, %8, %cst_11 {dimension_numbers = #tpu.dot_dimension_numbers<[1], [0], [0], [1], [0, 0, 1, 1], [], []>} : vector<36x225xbf16>, vector<225x32xbf16>, vector<36x32xf32> -> vector<36x32xf32>
    %14 = arith.truncf %13 : vector<36x32xf32> to vector<36x32xbf16>
    %c0_12 = arith.constant 0 : index
    %c0_13 = arith.constant 0 : index
    %c0_14 = arith.constant 0 : index
    %15 = vector.load %arg3[%c0_12, %c0_13, %c0_14] : memref<16x32x64xbf16, #tpu.memory_space<vmem>>, vector<1x32x64xbf16>
    %16 = vector.shape_cast %15 : vector<1x32x64xbf16> to vector<32x64xbf16>
    %cst_15 = arith.constant dense<0.000000e+00> : vector<36x64xf32>
    %17 = tpu.matmul %14, %16, %cst_15 {dimension_numbers = #tpu.dot_dimension_numbers<[1], [0], [0], [1], [0, 0, 1, 1], [], []>} : vector<36x32xbf16>, vector<32x64xbf16>, vector<36x64xf32> -> vector<36x64xf32>
    %18 = arith.addf %10, %17 : vector<36x64xf32>
    %c1_16 = arith.constant 1 : index
    %c0_17 = arith.constant 0 : index
    %c0_18 = arith.constant 0 : index
    %19 = vector.load %arg2[%c1_16, %c0_17, %c0_18] : memref<16x36x225xbf16, #tpu.memory_space<vmem>>, vector<1x36x225xbf16>
    %20 = vector.shape_cast %19 : vector<1x36x225xbf16> to vector<36x225xbf16>
    %cst_19 = arith.constant dense<0.000000e+00> : vector<36x32xf32>
    %21 = tpu.matmul %20, %8, %cst_19 {dimension_numbers = #tpu.dot_dimension_numbers<[1], [0], [0], [1], [0, 0, 1, 1], [], []>} : vector<36x225xbf16>, vector<225x32xbf16>, vector<36x32xf32> -> vector<36x32xf32>
    %22 = arith.truncf %21 : vector<36x32xf32> to vector<36x32xbf16>
    %c1_20 = arith.constant 1 : index
    %c0_21 = arith.constant 0 : index
    %c0_22 = arith.constant 0 : index
    %23 = vector.load %arg3[%c1_20, %c0_21, %c0_22] : memref<16x32x64xbf16, #tpu.memory_space<vmem>>, vector<1x32x64xbf16>
    %24 = vector.shape_cast %23 : vector<1x32x64xbf16> to vector<32x64xbf16>
    %cst_23 = arith.constant dense<0.000000e+00> : vector<36x64xf32>
    %25 = tpu.matmul %22, %24, %cst_23 {dimension_numbers = #tpu.dot_dimension_numbers<[1], [0], [0], [1], [0, 0, 1, 1], [], []>} : vector<36x32xbf16>, vector<32x64xbf16>, vector<36x64xf32> -> vector<36x64xf32>
    %26 = arith.addf %18, %25 : vector<36x64xf32>
    %c2 = arith.constant 2 : index
    %c0_24 = arith.constant 0 : index
    %c0_25 = arith.constant 0 : index
    %27 = vector.load %arg2[%c2, %c0_24, %c0_25] : memref<16x36x225xbf16, #tpu.memory_space<vmem>>, vector<1x36x225xbf16>
    %28 = vector.shape_cast %27 : vector<1x36x225xbf16> to vector<36x225xbf16>
    %cst_26 = arith.constant dense<0.000000e+00> : vector<36x32xf32>
    %29 = tpu.matmul %28, %8, %cst_26 {dimension_numbers = #tpu.dot_dimension_numbers<[1], [0], [0], [1], [0, 0, 1, 1], [], []>} : vector<36x225xbf16>, vector<225x32xbf16>, vector<36x32xf32> -> vector<36x32xf32>
    %30 = arith.truncf %29 : vector<36x32xf32> to vector<36x32xbf16>
    %c2_27 = arith.constant 2 : index
    %c0_28 = arith.constant 0 : index
    %c0_29 = arith.constant 0 : index
    %31 = vector.load %arg3[%c2_27, %c0_28, %c0_29] : memref<16x32x64xbf16, #tpu.memory_space<vmem>>, vector<1x32x64xbf16>
    %32 = vector.shape_cast %31 : vector<1x32x64xbf16> to vector<32x64xbf16>
    %cst_30 = arith.constant dense<0.000000e+00> : vector<36x64xf32>
    %33 = tpu.matmul %30, %32, %cst_30 {dimension_numbers = #tpu.dot_dimension_numbers<[1], [0], [0], [1], [0, 0, 1, 1], [], []>} : vector<36x32xbf16>, vector<32x64xbf16>, vector<36x64xf32> -> vector<36x64xf32>
    %34 = arith.addf %26, %33 : vector<36x64xf32>
    %c3 = arith.constant 3 : index
    %c0_31 = arith.constant 0 : index
    %c0_32 = arith.constant 0 : index
    %35 = vector.load %arg2[%c3, %c0_31, %c0_32] : memref<16x36x225xbf16, #tpu.memory_space<vmem>>, vector<1x36x225xbf16>
    %36 = vector.shape_cast %35 : vector<1x36x225xbf16> to vector<36x225xbf16>
    %cst_33 = arith.constant dense<0.000000e+00> : vector<36x32xf32>
    %37 = tpu.matmul %36, %8, %cst_33 {dimension_numbers = #tpu.dot_dimension_numbers<[1], [0], [0], [1], [0, 0, 1, 1], [], []>} : vector<36x225xbf16>, vector<225x32xbf16>, vector<36x32xf32> -> vector<36x32xf32>
    %38 = arith.truncf %37 : vector<36x32xf32> to vector<36x32xbf16>
    %c3_34 = arith.constant 3 : index
    %c0_35 = arith.constant 0 : index
    %c0_36 = arith.constant 0 : index
    %39 = vector.load %arg3[%c3_34, %c0_35, %c0_36] : memref<16x32x64xbf16, #tpu.memory_space<vmem>>, vector<1x32x64xbf16>
    %40 = vector.shape_cast %39 : vector<1x32x64xbf16> to vector<32x64xbf16>
    %cst_37 = arith.constant dense<0.000000e+00> : vector<36x64xf32>
    %41 = tpu.matmul %38, %40, %cst_37 {dimension_numbers = #tpu.dot_dimension_numbers<[1], [0], [0], [1], [0, 0, 1, 1], [], []>} : vector<36x32xbf16>, vector<32x64xbf16>, vector<36x64xf32> -> vector<36x64xf32>
    %42 = arith.addf %34, %41 : vector<36x64xf32>
    %c4 = arith.constant 4 : index
    %c0_38 = arith.constant 0 : index
    %c0_39 = arith.constant 0 : index
    %43 = vector.load %arg2[%c4, %c0_38, %c0_39] : memref<16x36x225xbf16, #tpu.memory_space<vmem>>, vector<1x36x225xbf16>
    %44 = vector.shape_cast %43 : vector<1x36x225xbf16> to vector<36x225xbf16>
    %cst_40 = arith.constant dense<0.000000e+00> : vector<36x32xf32>
    %45 = tpu.matmul %44, %8, %cst_40 {dimension_numbers = #tpu.dot_dimension_numbers<[1], [0], [0], [1], [0, 0, 1, 1], [], []>} : vector<36x225xbf16>, vector<225x32xbf16>, vector<36x32xf32> -> vector<36x32xf32>
    %46 = arith.truncf %45 : vector<36x32xf32> to vector<36x32xbf16>
    %c4_41 = arith.constant 4 : index
    %c0_42 = arith.constant 0 : index
    %c0_43 = arith.constant 0 : index
    %47 = vector.load %arg3[%c4_41, %c0_42, %c0_43] : memref<16x32x64xbf16, #tpu.memory_space<vmem>>, vector<1x32x64xbf16>
    %48 = vector.shape_cast %47 : vector<1x32x64xbf16> to vector<32x64xbf16>
    %cst_44 = arith.constant dense<0.000000e+00> : vector<36x64xf32>
    %49 = tpu.matmul %46, %48, %cst_44 {dimension_numbers = #tpu.dot_dimension_numbers<[1], [0], [0], [1], [0, 0, 1, 1], [], []>} : vector<36x32xbf16>, vector<32x64xbf16>, vector<36x64xf32> -> vector<36x64xf32>
    %50 = arith.addf %42, %49 : vector<36x64xf32>
    %c5 = arith.constant 5 : index
    %c0_45 = arith.constant 0 : index
    %c0_46 = arith.constant 0 : index
    %51 = vector.load %arg2[%c5, %c0_45, %c0_46] : memref<16x36x225xbf16, #tpu.memory_space<vmem>>, vector<1x36x225xbf16>
    %52 = vector.shape_cast %51 : vector<1x36x225xbf16> to vector<36x225xbf16>
    %cst_47 = arith.constant dense<0.000000e+00> : vector<36x32xf32>
    %53 = tpu.matmul %52, %8, %cst_47 {dimension_numbers = #tpu.dot_dimension_numbers<[1], [0], [0], [1], [0, 0, 1, 1], [], []>} : vector<36x225xbf16>, vector<225x32xbf16>, vector<36x32xf32> -> vector<36x32xf32>
    %54 = arith.truncf %53 : vector<36x32xf32> to vector<36x32xbf16>
    %c5_48 = arith.constant 5 : index
    %c0_49 = arith.constant 0 : index
    %c0_50 = arith.constant 0 : index
    %55 = vector.load %arg3[%c5_48, %c0_49, %c0_50] : memref<16x32x64xbf16, #tpu.memory_space<vmem>>, vector<1x32x64xbf16>
    %56 = vector.shape_cast %55 : vector<1x32x64xbf16> to vector<32x64xbf16>
    %cst_51 = arith.constant dense<0.000000e+00> : vector<36x64xf32>
    %57 = tpu.matmul %54, %56, %cst_51 {dimension_numbers = #tpu.dot_dimension_numbers<[1], [0], [0], [1], [0, 0, 1, 1], [], []>} : vector<36x32xbf16>, vector<32x64xbf16>, vector<36x64xf32> -> vector<36x64xf32>
    %58 = arith.addf %50, %57 : vector<36x64xf32>
    %c6 = arith.constant 6 : index
    %c0_52 = arith.constant 0 : index
    %c0_53 = arith.constant 0 : index
    %59 = vector.load %arg2[%c6, %c0_52, %c0_53] : memref<16x36x225xbf16, #tpu.memory_space<vmem>>, vector<1x36x225xbf16>
    %60 = vector.shape_cast %59 : vector<1x36x225xbf16> to vector<36x225xbf16>
    %cst_54 = arith.constant dense<0.000000e+00> : vector<36x32xf32>
    %61 = tpu.matmul %60, %8, %cst_54 {dimension_numbers = #tpu.dot_dimension_numbers<[1], [0], [0], [1], [0, 0, 1, 1], [], []>} : vector<36x225xbf16>, vector<225x32xbf16>, vector<36x32xf32> -> vector<36x32xf32>
    %62 = arith.truncf %61 : vector<36x32xf32> to vector<36x32xbf16>
    %c6_55 = arith.constant 6 : index
    %c0_56 = arith.constant 0 : index
    %c0_57 = arith.constant 0 : index
    %63 = vector.load %arg3[%c6_55, %c0_56, %c0_57] : memref<16x32x64xbf16, #tpu.memory_space<vmem>>, vector<1x32x64xbf16>
    %64 = vector.shape_cast %63 : vector<1x32x64xbf16> to vector<32x64xbf16>
    %cst_58 = arith.constant dense<0.000000e+00> : vector<36x64xf32>
    %65 = tpu.matmul %62, %64, %cst_58 {dimension_numbers = #tpu.dot_dimension_numbers<[1], [0], [0], [1], [0, 0, 1, 1], [], []>} : vector<36x32xbf16>, vector<32x64xbf16>, vector<36x64xf32> -> vector<36x64xf32>
    %66 = arith.addf %58, %65 : vector<36x64xf32>
    %c7 = arith.constant 7 : index
    %c0_59 = arith.constant 0 : index
    %c0_60 = arith.constant 0 : index
    %67 = vector.load %arg2[%c7, %c0_59, %c0_60] : memref<16x36x225xbf16, #tpu.memory_space<vmem>>, vector<1x36x225xbf16>
    %68 = vector.shape_cast %67 : vector<1x36x225xbf16> to vector<36x225xbf16>
    %cst_61 = arith.constant dense<0.000000e+00> : vector<36x32xf32>
    %69 = tpu.matmul %68, %8, %cst_61 {dimension_numbers = #tpu.dot_dimension_numbers<[1], [0], [0], [1], [0, 0, 1, 1], [], []>} : vector<36x225xbf16>, vector<225x32xbf16>, vector<36x32xf32> -> vector<36x32xf32>
    %70 = arith.truncf %69 : vector<36x32xf32> to vector<36x32xbf16>
    %c7_62 = arith.constant 7 : index
    %c0_63 = arith.constant 0 : index
    %c0_64 = arith.constant 0 : index
    %71 = vector.load %arg3[%c7_62, %c0_63, %c0_64] : memref<16x32x64xbf16, #tpu.memory_space<vmem>>, vector<1x32x64xbf16>
    %72 = vector.shape_cast %71 : vector<1x32x64xbf16> to vector<32x64xbf16>
    %cst_65 = arith.constant dense<0.000000e+00> : vector<36x64xf32>
    %73 = tpu.matmul %70, %72, %cst_65 {dimension_numbers = #tpu.dot_dimension_numbers<[1], [0], [0], [1], [0, 0, 1, 1], [], []>} : vector<36x32xbf16>, vector<32x64xbf16>, vector<36x64xf32> -> vector<36x64xf32>
    %74 = arith.addf %66, %73 : vector<36x64xf32>
    %c8 = arith.constant 8 : index
    %c0_66 = arith.constant 0 : index
    %c0_67 = arith.constant 0 : index
    %75 = vector.load %arg2[%c8, %c0_66, %c0_67] : memref<16x36x225xbf16, #tpu.memory_space<vmem>>, vector<1x36x225xbf16>
    %76 = vector.shape_cast %75 : vector<1x36x225xbf16> to vector<36x225xbf16>
    %cst_68 = arith.constant dense<0.000000e+00> : vector<36x32xf32>
    %77 = tpu.matmul %76, %8, %cst_68 {dimension_numbers = #tpu.dot_dimension_numbers<[1], [0], [0], [1], [0, 0, 1, 1], [], []>} : vector<36x225xbf16>, vector<225x32xbf16>, vector<36x32xf32> -> vector<36x32xf32>
    %78 = arith.truncf %77 : vector<36x32xf32> to vector<36x32xbf16>
    %c8_69 = arith.constant 8 : index
    %c0_70 = arith.constant 0 : index
    %c0_71 = arith.constant 0 : index
    %79 = vector.load %arg3[%c8_69, %c0_70, %c0_71] : memref<16x32x64xbf16, #tpu.memory_space<vmem>>, vector<1x32x64xbf16>
    %80 = vector.shape_cast %79 : vector<1x32x64xbf16> to vector<32x64xbf16>
    %cst_72 = arith.constant dense<0.000000e+00> : vector<36x64xf32>
    %81 = tpu.matmul %78, %80, %cst_72 {dimension_numbers = #tpu.dot_dimension_numbers<[1], [0], [0], [1], [0, 0, 1, 1], [], []>} : vector<36x32xbf16>, vector<32x64xbf16>, vector<36x64xf32> -> vector<36x64xf32>
    %82 = arith.addf %74, %81 : vector<36x64xf32>
    %c9 = arith.constant 9 : index
    %c0_73 = arith.constant 0 : index
    %c0_74 = arith.constant 0 : index
    %83 = vector.load %arg2[%c9, %c0_73, %c0_74] : memref<16x36x225xbf16, #tpu.memory_space<vmem>>, vector<1x36x225xbf16>
    %84 = vector.shape_cast %83 : vector<1x36x225xbf16> to vector<36x225xbf16>
    %cst_75 = arith.constant dense<0.000000e+00> : vector<36x32xf32>
    %85 = tpu.matmul %84, %8, %cst_75 {dimension_numbers = #tpu.dot_dimension_numbers<[1], [0], [0], [1], [0, 0, 1, 1], [], []>} : vector<36x225xbf16>, vector<225x32xbf16>, vector<36x32xf32> -> vector<36x32xf32>
    %86 = arith.truncf %85 : vector<36x32xf32> to vector<36x32xbf16>
    %c9_76 = arith.constant 9 : index
    %c0_77 = arith.constant 0 : index
    %c0_78 = arith.constant 0 : index
    %87 = vector.load %arg3[%c9_76, %c0_77, %c0_78] : memref<16x32x64xbf16, #tpu.memory_space<vmem>>, vector<1x32x64xbf16>
    %88 = vector.shape_cast %87 : vector<1x32x64xbf16> to vector<32x64xbf16>
    %cst_79 = arith.constant dense<0.000000e+00> : vector<36x64xf32>
    %89 = tpu.matmul %86, %88, %cst_79 {dimension_numbers = #tpu.dot_dimension_numbers<[1], [0], [0], [1], [0, 0, 1, 1], [], []>} : vector<36x32xbf16>, vector<32x64xbf16>, vector<36x64xf32> -> vector<36x64xf32>
    %90 = arith.addf %82, %89 : vector<36x64xf32>
    %c10 = arith.constant 10 : index
    %c0_80 = arith.constant 0 : index
    %c0_81 = arith.constant 0 : index
    %91 = vector.load %arg2[%c10, %c0_80, %c0_81] : memref<16x36x225xbf16, #tpu.memory_space<vmem>>, vector<1x36x225xbf16>
    %92 = vector.shape_cast %91 : vector<1x36x225xbf16> to vector<36x225xbf16>
    %cst_82 = arith.constant dense<0.000000e+00> : vector<36x32xf32>
    %93 = tpu.matmul %92, %8, %cst_82 {dimension_numbers = #tpu.dot_dimension_numbers<[1], [0], [0], [1], [0, 0, 1, 1], [], []>} : vector<36x225xbf16>, vector<225x32xbf16>, vector<36x32xf32> -> vector<36x32xf32>
    %94 = arith.truncf %93 : vector<36x32xf32> to vector<36x32xbf16>
    %c10_83 = arith.constant 10 : index
    %c0_84 = arith.constant 0 : index
    %c0_85 = arith.constant 0 : index
    %95 = vector.load %arg3[%c10_83, %c0_84, %c0_85] : memref<16x32x64xbf16, #tpu.memory_space<vmem>>, vector<1x32x64xbf16>
    %96 = vector.shape_cast %95 : vector<1x32x64xbf16> to vector<32x64xbf16>
    %cst_86 = arith.constant dense<0.000000e+00> : vector<36x64xf32>
    %97 = tpu.matmul %94, %96, %cst_86 {dimension_numbers = #tpu.dot_dimension_numbers<[1], [0], [0], [1], [0, 0, 1, 1], [], []>} : vector<36x32xbf16>, vector<32x64xbf16>, vector<36x64xf32> -> vector<36x64xf32>
    %98 = arith.addf %90, %97 : vector<36x64xf32>
    %c11 = arith.constant 11 : index
    %c0_87 = arith.constant 0 : index
    %c0_88 = arith.constant 0 : index
    %99 = vector.load %arg2[%c11, %c0_87, %c0_88] : memref<16x36x225xbf16, #tpu.memory_space<vmem>>, vector<1x36x225xbf16>
    %100 = vector.shape_cast %99 : vector<1x36x225xbf16> to vector<36x225xbf16>
    %cst_89 = arith.constant dense<0.000000e+00> : vector<36x32xf32>
    %101 = tpu.matmul %100, %8, %cst_89 {dimension_numbers = #tpu.dot_dimension_numbers<[1], [0], [0], [1], [0, 0, 1, 1], [], []>} : vector<36x225xbf16>, vector<225x32xbf16>, vector<36x32xf32> -> vector<36x32xf32>
    %102 = arith.truncf %101 : vector<36x32xf32> to vector<36x32xbf16>
    %c11_90 = arith.constant 11 : index
    %c0_91 = arith.constant 0 : index
    %c0_92 = arith.constant 0 : index
    %103 = vector.load %arg3[%c11_90, %c0_91, %c0_92] : memref<16x32x64xbf16, #tpu.memory_space<vmem>>, vector<1x32x64xbf16>
    %104 = vector.shape_cast %103 : vector<1x32x64xbf16> to vector<32x64xbf16>
    %cst_93 = arith.constant dense<0.000000e+00> : vector<36x64xf32>
    %105 = tpu.matmul %102, %104, %cst_93 {dimension_numbers = #tpu.dot_dimension_numbers<[1], [0], [0], [1], [0, 0, 1, 1], [], []>} : vector<36x32xbf16>, vector<32x64xbf16>, vector<36x64xf32> -> vector<36x64xf32>
    %106 = arith.addf %98, %105 : vector<36x64xf32>
    %c12 = arith.constant 12 : index
    %c0_94 = arith.constant 0 : index
    %c0_95 = arith.constant 0 : index
    %107 = vector.load %arg2[%c12, %c0_94, %c0_95] : memref<16x36x225xbf16, #tpu.memory_space<vmem>>, vector<1x36x225xbf16>
    %108 = vector.shape_cast %107 : vector<1x36x225xbf16> to vector<36x225xbf16>
    %cst_96 = arith.constant dense<0.000000e+00> : vector<36x32xf32>
    %109 = tpu.matmul %108, %8, %cst_96 {dimension_numbers = #tpu.dot_dimension_numbers<[1], [0], [0], [1], [0, 0, 1, 1], [], []>} : vector<36x225xbf16>, vector<225x32xbf16>, vector<36x32xf32> -> vector<36x32xf32>
    %110 = arith.truncf %109 : vector<36x32xf32> to vector<36x32xbf16>
    %c12_97 = arith.constant 12 : index
    %c0_98 = arith.constant 0 : index
    %c0_99 = arith.constant 0 : index
    %111 = vector.load %arg3[%c12_97, %c0_98, %c0_99] : memref<16x32x64xbf16, #tpu.memory_space<vmem>>, vector<1x32x64xbf16>
    %112 = vector.shape_cast %111 : vector<1x32x64xbf16> to vector<32x64xbf16>
    %cst_100 = arith.constant dense<0.000000e+00> : vector<36x64xf32>
    %113 = tpu.matmul %110, %112, %cst_100 {dimension_numbers = #tpu.dot_dimension_numbers<[1], [0], [0], [1], [0, 0, 1, 1], [], []>} : vector<36x32xbf16>, vector<32x64xbf16>, vector<36x64xf32> -> vector<36x64xf32>
    %114 = arith.addf %106, %113 : vector<36x64xf32>
    %c13 = arith.constant 13 : index
    %c0_101 = arith.constant 0 : index
    %c0_102 = arith.constant 0 : index
    %115 = vector.load %arg2[%c13, %c0_101, %c0_102] : memref<16x36x225xbf16, #tpu.memory_space<vmem>>, vector<1x36x225xbf16>
    %116 = vector.shape_cast %115 : vector<1x36x225xbf16> to vector<36x225xbf16>
    %cst_103 = arith.constant dense<0.000000e+00> : vector<36x32xf32>
    %117 = tpu.matmul %116, %8, %cst_103 {dimension_numbers = #tpu.dot_dimension_numbers<[1], [0], [0], [1], [0, 0, 1, 1], [], []>} : vector<36x225xbf16>, vector<225x32xbf16>, vector<36x32xf32> -> vector<36x32xf32>
    %118 = arith.truncf %117 : vector<36x32xf32> to vector<36x32xbf16>
    %c13_104 = arith.constant 13 : index
    %c0_105 = arith.constant 0 : index
    %c0_106 = arith.constant 0 : index
    %119 = vector.load %arg3[%c13_104, %c0_105, %c0_106] : memref<16x32x64xbf16, #tpu.memory_space<vmem>>, vector<1x32x64xbf16>
    %120 = vector.shape_cast %119 : vector<1x32x64xbf16> to vector<32x64xbf16>
    %cst_107 = arith.constant dense<0.000000e+00> : vector<36x64xf32>
    %121 = tpu.matmul %118, %120, %cst_107 {dimension_numbers = #tpu.dot_dimension_numbers<[1], [0], [0], [1], [0, 0, 1, 1], [], []>} : vector<36x32xbf16>, vector<32x64xbf16>, vector<36x64xf32> -> vector<36x64xf32>
    %122 = arith.addf %114, %121 : vector<36x64xf32>
    %c14 = arith.constant 14 : index
    %c0_108 = arith.constant 0 : index
    %c0_109 = arith.constant 0 : index
    %123 = vector.load %arg2[%c14, %c0_108, %c0_109] : memref<16x36x225xbf16, #tpu.memory_space<vmem>>, vector<1x36x225xbf16>
    %124 = vector.shape_cast %123 : vector<1x36x225xbf16> to vector<36x225xbf16>
    %cst_110 = arith.constant dense<0.000000e+00> : vector<36x32xf32>
    %125 = tpu.matmul %124, %8, %cst_110 {dimension_numbers = #tpu.dot_dimension_numbers<[1], [0], [0], [1], [0, 0, 1, 1], [], []>} : vector<36x225xbf16>, vector<225x32xbf16>, vector<36x32xf32> -> vector<36x32xf32>
    %126 = arith.truncf %125 : vector<36x32xf32> to vector<36x32xbf16>
    %c14_111 = arith.constant 14 : index
    %c0_112 = arith.constant 0 : index
    %c0_113 = arith.constant 0 : index
    %127 = vector.load %arg3[%c14_111, %c0_112, %c0_113] : memref<16x32x64xbf16, #tpu.memory_space<vmem>>, vector<1x32x64xbf16>
    %128 = vector.shape_cast %127 : vector<1x32x64xbf16> to vector<32x64xbf16>
    %cst_114 = arith.constant dense<0.000000e+00> : vector<36x64xf32>
    %129 = tpu.matmul %126, %128, %cst_114 {dimension_numbers = #tpu.dot_dimension_numbers<[1], [0], [0], [1], [0, 0, 1, 1], [], []>} : vector<36x32xbf16>, vector<32x64xbf16>, vector<36x64xf32> -> vector<36x64xf32>
    %130 = arith.addf %122, %129 : vector<36x64xf32>
    %c15 = arith.constant 15 : index
    %c0_115 = arith.constant 0 : index
    %c0_116 = arith.constant 0 : index
    %131 = vector.load %arg2[%c15, %c0_115, %c0_116] : memref<16x36x225xbf16, #tpu.memory_space<vmem>>, vector<1x36x225xbf16>
    %132 = vector.shape_cast %131 : vector<1x36x225xbf16> to vector<36x225xbf16>
    %cst_117 = arith.constant dense<0.000000e+00> : vector<36x32xf32>
    %133 = tpu.matmul %132, %8, %cst_117 {dimension_numbers = #tpu.dot_dimension_numbers<[1], [0], [0], [1], [0, 0, 1, 1], [], []>} : vector<36x225xbf16>, vector<225x32xbf16>, vector<36x32xf32> -> vector<36x32xf32>
    %134 = arith.truncf %133 : vector<36x32xf32> to vector<36x32xbf16>
    %c15_118 = arith.constant 15 : index
    %c0_119 = arith.constant 0 : index
    %c0_120 = arith.constant 0 : index
    %135 = vector.load %arg3[%c15_118, %c0_119, %c0_120] : memref<16x32x64xbf16, #tpu.memory_space<vmem>>, vector<1x32x64xbf16>
    %136 = vector.shape_cast %135 : vector<1x32x64xbf16> to vector<32x64xbf16>
    %cst_121 = arith.constant dense<0.000000e+00> : vector<36x64xf32>
    %137 = tpu.matmul %134, %136, %cst_121 {dimension_numbers = #tpu.dot_dimension_numbers<[1], [0], [0], [1], [0, 0, 1, 1], [], []>} : vector<36x32xbf16>, vector<32x64xbf16>, vector<36x64xf32> -> vector<36x64xf32>
    %138 = arith.addf %130, %137 : vector<36x64xf32>
    %139 = vector.broadcast %9 : vector<1x64xf32> to vector<36x64xf32>
    %140 = arith.addf %138, %139 : vector<36x64xf32>
    %cst_122 = arith.constant 0.000000e+00 : f32
    %141 = vector.broadcast %cst_122 : f32 to vector<36x64xf32>
    %142 = arith.maximumf %140, %141 : vector<36x64xf32>
    %143 = arith.truncf %142 : vector<36x64xf32> to vector<36x64xbf16>
    %c2_123 = arith.constant 2 : index
    %c0_124 = arith.constant 0 : index
    %144 = vector.load %arg10[%c2_123, %c0_124] : memref<8x128xf32, #tpu.memory_space<vmem>>, vector<1x32xf32>
    %cst_125 = arith.constant 0.000000e+00 : f32
    %145 = vector.broadcast %cst_125 : f32 to vector<16x32xf32>
    %c0_126 = arith.constant 0 : index
    %c0_127 = arith.constant 0 : index
    %c0_128 = arith.constant 0 : index
    %146 = vector.load %arg4[%c0_126, %c0_127, %c0_128] : memref<9x16x36xbf16, #tpu.memory_space<vmem>>, vector<1x16x36xbf16>
    %147 = vector.shape_cast %146 : vector<1x16x36xbf16> to vector<16x36xbf16>
    %cst_129 = arith.constant dense<0.000000e+00> : vector<16x64xf32>
    %148 = tpu.matmul %147, %143, %cst_129 {dimension_numbers = #tpu.dot_dimension_numbers<[1], [0], [0], [1], [0, 0, 1, 1], [], []>} : vector<16x36xbf16>, vector<36x64xbf16>, vector<16x64xf32> -> vector<16x64xf32>
    %149 = arith.truncf %148 : vector<16x64xf32> to vector<16x64xbf16>
    %c0_130 = arith.constant 0 : index
    %c0_131 = arith.constant 0 : index
    %c0_132 = arith.constant 0 : index
    %150 = vector.load %arg5[%c0_130, %c0_131, %c0_132] : memref<9x64x32xbf16, #tpu.memory_space<vmem>>, vector<1x64x32xbf16>
    %151 = vector.shape_cast %150 : vector<1x64x32xbf16> to vector<64x32xbf16>
    %cst_133 = arith.constant dense<0.000000e+00> : vector<16x32xf32>
    %152 = tpu.matmul %149, %151, %cst_133 {dimension_numbers = #tpu.dot_dimension_numbers<[1], [0], [0], [1], [0, 0, 1, 1], [], []>} : vector<16x64xbf16>, vector<64x32xbf16>, vector<16x32xf32> -> vector<16x32xf32>
    %153 = arith.addf %145, %152 : vector<16x32xf32>
    %c1_134 = arith.constant 1 : index
    %c0_135 = arith.constant 0 : index
    %c0_136 = arith.constant 0 : index
    %154 = vector.load %arg4[%c1_134, %c0_135, %c0_136] : memref<9x16x36xbf16, #tpu.memory_space<vmem>>, vector<1x16x36xbf16>
    %155 = vector.shape_cast %154 : vector<1x16x36xbf16> to vector<16x36xbf16>
    %cst_137 = arith.constant dense<0.000000e+00> : vector<16x64xf32>
    %156 = tpu.matmul %155, %143, %cst_137 {dimension_numbers = #tpu.dot_dimension_numbers<[1], [0], [0], [1], [0, 0, 1, 1], [], []>} : vector<16x36xbf16>, vector<36x64xbf16>, vector<16x64xf32> -> vector<16x64xf32>
    %157 = arith.truncf %156 : vector<16x64xf32> to vector<16x64xbf16>
    %c1_138 = arith.constant 1 : index
    %c0_139 = arith.constant 0 : index
    %c0_140 = arith.constant 0 : index
    %158 = vector.load %arg5[%c1_138, %c0_139, %c0_140] : memref<9x64x32xbf16, #tpu.memory_space<vmem>>, vector<1x64x32xbf16>
    %159 = vector.shape_cast %158 : vector<1x64x32xbf16> to vector<64x32xbf16>
    %cst_141 = arith.constant dense<0.000000e+00> : vector<16x32xf32>
    %160 = tpu.matmul %157, %159, %cst_141 {dimension_numbers = #tpu.dot_dimension_numbers<[1], [0], [0], [1], [0, 0, 1, 1], [], []>} : vector<16x64xbf16>, vector<64x32xbf16>, vector<16x32xf32> -> vector<16x32xf32>
    %161 = arith.addf %153, %160 : vector<16x32xf32>
    %c2_142 = arith.constant 2 : index
    %c0_143 = arith.constant 0 : index
    %c0_144 = arith.constant 0 : index
    %162 = vector.load %arg4[%c2_142, %c0_143, %c0_144] : memref<9x16x36xbf16, #tpu.memory_space<vmem>>, vector<1x16x36xbf16>
    %163 = vector.shape_cast %162 : vector<1x16x36xbf16> to vector<16x36xbf16>
    %cst_145 = arith.constant dense<0.000000e+00> : vector<16x64xf32>
    %164 = tpu.matmul %163, %143, %cst_145 {dimension_numbers = #tpu.dot_dimension_numbers<[1], [0], [0], [1], [0, 0, 1, 1], [], []>} : vector<16x36xbf16>, vector<36x64xbf16>, vector<16x64xf32> -> vector<16x64xf32>
    %165 = arith.truncf %164 : vector<16x64xf32> to vector<16x64xbf16>
    %c2_146 = arith.constant 2 : index
    %c0_147 = arith.constant 0 : index
    %c0_148 = arith.constant 0 : index
    %166 = vector.load %arg5[%c2_146, %c0_147, %c0_148] : memref<9x64x32xbf16, #tpu.memory_space<vmem>>, vector<1x64x32xbf16>
    %167 = vector.shape_cast %166 : vector<1x64x32xbf16> to vector<64x32xbf16>
    %cst_149 = arith.constant dense<0.000000e+00> : vector<16x32xf32>
    %168 = tpu.matmul %165, %167, %cst_149 {dimension_numbers = #tpu.dot_dimension_numbers<[1], [0], [0], [1], [0, 0, 1, 1], [], []>} : vector<16x64xbf16>, vector<64x32xbf16>, vector<16x32xf32> -> vector<16x32xf32>
    %169 = arith.addf %161, %168 : vector<16x32xf32>
    %c3_150 = arith.constant 3 : index
    %c0_151 = arith.constant 0 : index
    %c0_152 = arith.constant 0 : index
    %170 = vector.load %arg4[%c3_150, %c0_151, %c0_152] : memref<9x16x36xbf16, #tpu.memory_space<vmem>>, vector<1x16x36xbf16>
    %171 = vector.shape_cast %170 : vector<1x16x36xbf16> to vector<16x36xbf16>
    %cst_153 = arith.constant dense<0.000000e+00> : vector<16x64xf32>
    %172 = tpu.matmul %171, %143, %cst_153 {dimension_numbers = #tpu.dot_dimension_numbers<[1], [0], [0], [1], [0, 0, 1, 1], [], []>} : vector<16x36xbf16>, vector<36x64xbf16>, vector<16x64xf32> -> vector<16x64xf32>
    %173 = arith.truncf %172 : vector<16x64xf32> to vector<16x64xbf16>
    %c3_154 = arith.constant 3 : index
    %c0_155 = arith.constant 0 : index
    %c0_156 = arith.constant 0 : index
    %174 = vector.load %arg5[%c3_154, %c0_155, %c0_156] : memref<9x64x32xbf16, #tpu.memory_space<vmem>>, vector<1x64x32xbf16>
    %175 = vector.shape_cast %174 : vector<1x64x32xbf16> to vector<64x32xbf16>
    %cst_157 = arith.constant dense<0.000000e+00> : vector<16x32xf32>
    %176 = tpu.matmul %173, %175, %cst_157 {dimension_numbers = #tpu.dot_dimension_numbers<[1], [0], [0], [1], [0, 0, 1, 1], [], []>} : vector<16x64xbf16>, vector<64x32xbf16>, vector<16x32xf32> -> vector<16x32xf32>
    %177 = arith.addf %169, %176 : vector<16x32xf32>
    %c4_158 = arith.constant 4 : index
    %c0_159 = arith.constant 0 : index
    %c0_160 = arith.constant 0 : index
    %178 = vector.load %arg4[%c4_158, %c0_159, %c0_160] : memref<9x16x36xbf16, #tpu.memory_space<vmem>>, vector<1x16x36xbf16>
    %179 = vector.shape_cast %178 : vector<1x16x36xbf16> to vector<16x36xbf16>
    %cst_161 = arith.constant dense<0.000000e+00> : vector<16x64xf32>
    %180 = tpu.matmul %179, %143, %cst_161 {dimension_numbers = #tpu.dot_dimension_numbers<[1], [0], [0], [1], [0, 0, 1, 1], [], []>} : vector<16x36xbf16>, vector<36x64xbf16>, vector<16x64xf32> -> vector<16x64xf32>
    %181 = arith.truncf %180 : vector<16x64xf32> to vector<16x64xbf16>
    %c4_162 = arith.constant 4 : index
    %c0_163 = arith.constant 0 : index
    %c0_164 = arith.constant 0 : index
    %182 = vector.load %arg5[%c4_162, %c0_163, %c0_164] : memref<9x64x32xbf16, #tpu.memory_space<vmem>>, vector<1x64x32xbf16>
    %183 = vector.shape_cast %182 : vector<1x64x32xbf16> to vector<64x32xbf16>
    %cst_165 = arith.constant dense<0.000000e+00> : vector<16x32xf32>
    %184 = tpu.matmul %181, %183, %cst_165 {dimension_numbers = #tpu.dot_dimension_numbers<[1], [0], [0], [1], [0, 0, 1, 1], [], []>} : vector<16x64xbf16>, vector<64x32xbf16>, vector<16x32xf32> -> vector<16x32xf32>
    %185 = arith.addf %177, %184 : vector<16x32xf32>
    %c5_166 = arith.constant 5 : index
    %c0_167 = arith.constant 0 : index
    %c0_168 = arith.constant 0 : index
    %186 = vector.load %arg4[%c5_166, %c0_167, %c0_168] : memref<9x16x36xbf16, #tpu.memory_space<vmem>>, vector<1x16x36xbf16>
    %187 = vector.shape_cast %186 : vector<1x16x36xbf16> to vector<16x36xbf16>
    %cst_169 = arith.constant dense<0.000000e+00> : vector<16x64xf32>
    %188 = tpu.matmul %187, %143, %cst_169 {dimension_numbers = #tpu.dot_dimension_numbers<[1], [0], [0], [1], [0, 0, 1, 1], [], []>} : vector<16x36xbf16>, vector<36x64xbf16>, vector<16x64xf32> -> vector<16x64xf32>
    %189 = arith.truncf %188 : vector<16x64xf32> to vector<16x64xbf16>
    %c5_170 = arith.constant 5 : index
    %c0_171 = arith.constant 0 : index
    %c0_172 = arith.constant 0 : index
    %190 = vector.load %arg5[%c5_170, %c0_171, %c0_172] : memref<9x64x32xbf16, #tpu.memory_space<vmem>>, vector<1x64x32xbf16>
    %191 = vector.shape_cast %190 : vector<1x64x32xbf16> to vector<64x32xbf16>
    %cst_173 = arith.constant dense<0.000000e+00> : vector<16x32xf32>
    %192 = tpu.matmul %189, %191, %cst_173 {dimension_numbers = #tpu.dot_dimension_numbers<[1], [0], [0], [1], [0, 0, 1, 1], [], []>} : vector<16x64xbf16>, vector<64x32xbf16>, vector<16x32xf32> -> vector<16x32xf32>
    %193 = arith.addf %185, %192 : vector<16x32xf32>
    %c6_174 = arith.constant 6 : index
    %c0_175 = arith.constant 0 : index
    %c0_176 = arith.constant 0 : index
    %194 = vector.load %arg4[%c6_174, %c0_175, %c0_176] : memref<9x16x36xbf16, #tpu.memory_space<vmem>>, vector<1x16x36xbf16>
    %195 = vector.shape_cast %194 : vector<1x16x36xbf16> to vector<16x36xbf16>
    %cst_177 = arith.constant dense<0.000000e+00> : vector<16x64xf32>
    %196 = tpu.matmul %195, %143, %cst_177 {dimension_numbers = #tpu.dot_dimension_numbers<[1], [0], [0], [1], [0, 0, 1, 1], [], []>} : vector<16x36xbf16>, vector<36x64xbf16>, vector<16x64xf32> -> vector<16x64xf32>
    %197 = arith.truncf %196 : vector<16x64xf32> to vector<16x64xbf16>
    %c6_178 = arith.constant 6 : index
    %c0_179 = arith.constant 0 : index
    %c0_180 = arith.constant 0 : index
    %198 = vector.load %arg5[%c6_178, %c0_179, %c0_180] : memref<9x64x32xbf16, #tpu.memory_space<vmem>>, vector<1x64x32xbf16>
    %199 = vector.shape_cast %198 : vector<1x64x32xbf16> to vector<64x32xbf16>
    %cst_181 = arith.constant dense<0.000000e+00> : vector<16x32xf32>
    %200 = tpu.matmul %197, %199, %cst_181 {dimension_numbers = #tpu.dot_dimension_numbers<[1], [0], [0], [1], [0, 0, 1, 1], [], []>} : vector<16x64xbf16>, vector<64x32xbf16>, vector<16x32xf32> -> vector<16x32xf32>
    %201 = arith.addf %193, %200 : vector<16x32xf32>
    %c7_182 = arith.constant 7 : index
    %c0_183 = arith.constant 0 : index
    %c0_184 = arith.constant 0 : index
    %202 = vector.load %arg4[%c7_182, %c0_183, %c0_184] : memref<9x16x36xbf16, #tpu.memory_space<vmem>>, vector<1x16x36xbf16>
    %203 = vector.shape_cast %202 : vector<1x16x36xbf16> to vector<16x36xbf16>
    %cst_185 = arith.constant dense<0.000000e+00> : vector<16x64xf32>
    %204 = tpu.matmul %203, %143, %cst_185 {dimension_numbers = #tpu.dot_dimension_numbers<[1], [0], [0], [1], [0, 0, 1, 1], [], []>} : vector<16x36xbf16>, vector<36x64xbf16>, vector<16x64xf32> -> vector<16x64xf32>
    %205 = arith.truncf %204 : vector<16x64xf32> to vector<16x64xbf16>
    %c7_186 = arith.constant 7 : index
    %c0_187 = arith.constant 0 : index
    %c0_188 = arith.constant 0 : index
    %206 = vector.load %arg5[%c7_186, %c0_187, %c0_188] : memref<9x64x32xbf16, #tpu.memory_space<vmem>>, vector<1x64x32xbf16>
    %207 = vector.shape_cast %206 : vector<1x64x32xbf16> to vector<64x32xbf16>
    %cst_189 = arith.constant dense<0.000000e+00> : vector<16x32xf32>
    %208 = tpu.matmul %205, %207, %cst_189 {dimension_numbers = #tpu.dot_dimension_numbers<[1], [0], [0], [1], [0, 0, 1, 1], [], []>} : vector<16x64xbf16>, vector<64x32xbf16>, vector<16x32xf32> -> vector<16x32xf32>
    %209 = arith.addf %201, %208 : vector<16x32xf32>
    %c8_190 = arith.constant 8 : index
    %c0_191 = arith.constant 0 : index
    %c0_192 = arith.constant 0 : index
    %210 = vector.load %arg4[%c8_190, %c0_191, %c0_192] : memref<9x16x36xbf16, #tpu.memory_space<vmem>>, vector<1x16x36xbf16>
    %211 = vector.shape_cast %210 : vector<1x16x36xbf16> to vector<16x36xbf16>
    %cst_193 = arith.constant dense<0.000000e+00> : vector<16x64xf32>
    %212 = tpu.matmul %211, %143, %cst_193 {dimension_numbers = #tpu.dot_dimension_numbers<[1], [0], [0], [1], [0, 0, 1, 1], [], []>} : vector<16x36xbf16>, vector<36x64xbf16>, vector<16x64xf32> -> vector<16x64xf32>
    %213 = arith.truncf %212 : vector<16x64xf32> to vector<16x64xbf16>
    %c8_194 = arith.constant 8 : index
    %c0_195 = arith.constant 0 : index
    %c0_196 = arith.constant 0 : index
    %214 = vector.load %arg5[%c8_194, %c0_195, %c0_196] : memref<9x64x32xbf16, #tpu.memory_space<vmem>>, vector<1x64x32xbf16>
    %215 = vector.shape_cast %214 : vector<1x64x32xbf16> to vector<64x32xbf16>
    %cst_197 = arith.constant dense<0.000000e+00> : vector<16x32xf32>
    %216 = tpu.matmul %213, %215, %cst_197 {dimension_numbers = #tpu.dot_dimension_numbers<[1], [0], [0], [1], [0, 0, 1, 1], [], []>} : vector<16x64xbf16>, vector<64x32xbf16>, vector<16x32xf32> -> vector<16x32xf32>
    %217 = arith.addf %209, %216 : vector<16x32xf32>
    %218 = vector.broadcast %144 : vector<1x32xf32> to vector<16x32xf32>
    %219 = arith.addf %217, %218 : vector<16x32xf32>
    %cst_198 = arith.constant 0.000000e+00 : f32
    %220 = vector.broadcast %cst_198 : f32 to vector<16x32xf32>
    %221 = arith.maximumf %219, %220 : vector<16x32xf32>
    %c0_199 = arith.constant 0 : index
    %c0_200 = arith.constant 0 : index
    %222 = vector.load %arg11[%c0_199, %c0_200] : memref<8x128xf32, #tpu.memory_space<vmem>>, vector<1x32xf32>
    %c3_201 = arith.constant 3 : index
    %c0_202 = arith.constant 0 : index
    %223 = vector.load %arg10[%c3_201, %c0_202] : memref<8x128xf32, #tpu.memory_space<vmem>>, vector<1x32xf32>
    %c4_203 = arith.constant 4 : index
    %c0_204 = arith.constant 0 : index
    %224 = vector.load %arg10[%c4_203, %c0_204] : memref<8x128xf32, #tpu.memory_space<vmem>>, vector<1x32xf32>
    %c5_205 = arith.constant 5 : index
    %c0_206 = arith.constant 0 : index
    %225 = vector.load %arg10[%c5_205, %c0_206] : memref<8x128xf32, #tpu.memory_space<vmem>>, vector<1x1xf32>
    %226 = arith.truncf %221 : vector<16x32xf32> to vector<16x32xbf16>
    %c0_207 = arith.constant 0 : index
    %c0_208 = arith.constant 0 : index
    %227 = vector.load %arg6[%c0_207, %c0_208] : memref<64x32xbf16, #tpu.memory_space<vmem>>, vector<32x32xbf16>
    %cst_209 = arith.constant dense<0.000000e+00> : vector<16x32xf32>
    %228 = tpu.matmul %226, %227, %cst_209 {dimension_numbers = #tpu.dot_dimension_numbers<[1], [0], [0], [1], [0, 0, 1, 1], [], []>} : vector<16x32xbf16>, vector<32x32xbf16>, vector<16x32xf32> -> vector<16x32xf32>
    %229 = arith.truncf %222 : vector<1x32xf32> to vector<1x32xbf16>
    %c32 = arith.constant 32 : index
    %c0_210 = arith.constant 0 : index
    %230 = vector.load %arg6[%c32, %c0_210] : memref<64x32xbf16, #tpu.memory_space<vmem>>, vector<32x32xbf16>
    %cst_211 = arith.constant dense<0.000000e+00> : vector<1x32xf32>
    %231 = tpu.matmul %229, %230, %cst_211 {dimension_numbers = #tpu.dot_dimension_numbers<[1], [0], [0], [1], [0, 0, 1, 1], [], []>} : vector<1x32xbf16>, vector<32x32xbf16>, vector<1x32xf32> -> vector<1x32xf32>
    %232 = vector.broadcast %231 : vector<1x32xf32> to vector<16x32xf32>
    %233 = arith.addf %228, %232 : vector<16x32xf32>
    %234 = vector.broadcast %223 : vector<1x32xf32> to vector<16x32xf32>
    %235 = arith.addf %233, %234 : vector<16x32xf32>
    %236 = math.tanh %235 : vector<16x32xf32>
    %237 = vector.broadcast %224 : vector<1x32xf32> to vector<16x32xf32>
    %238 = arith.mulf %236, %237 : vector<16x32xf32>
    %cst_212 = arith.constant dense<0.000000e+00> : vector<16xf32>
    %239 = vector.multi_reduction <add>, %238, %cst_212 [1] : vector<16x32xf32> to vector<16xf32>
    %240 = vector.shape_cast %239 : vector<16xf32> to vector<16x1xf32>
    %241 = vector.broadcast %225 : vector<1x1xf32> to vector<16x1xf32>
    %242 = arith.addf %240, %241 : vector<16x1xf32>
    %cst_213 = arith.constant dense<0xFF800000> : vector<1xf32>
    %243 = vector.multi_reduction <maximumf>, %242, %cst_213 [0] : vector<16x1xf32> to vector<1xf32>
    %244 = vector.shape_cast %243 : vector<1xf32> to vector<1x1xf32>
    %245 = vector.broadcast %244 : vector<1x1xf32> to vector<16x1xf32>
    %246 = arith.subf %242, %245 : vector<16x1xf32>
    %247 = math.exp %246 : vector<16x1xf32>
    %cst_214 = arith.constant dense<0.000000e+00> : vector<1xf32>
    %248 = vector.multi_reduction <add>, %247, %cst_214 [0] : vector<16x1xf32> to vector<1xf32>
    %249 = vector.shape_cast %248 : vector<1xf32> to vector<1x1xf32>
    %250 = tpu.reciprocal %249 {approx = true} : vector<1x1xf32> -> vector<1x1xf32>
    %251 = vector.broadcast %250 : vector<1x1xf32> to vector<16x1xf32>
    %252 = arith.mulf %247, %251 : vector<16x1xf32>
    %253 = vector.broadcast %252 : vector<16x1xf32> to vector<16x32xf32>
    %254 = arith.mulf %221, %253 : vector<16x32xf32>
    %cst_215 = arith.constant dense<0.000000e+00> : vector<32xf32>
    %255 = vector.multi_reduction <add>, %254, %cst_215 [0] : vector<16x32xf32> to vector<32xf32>
    %256 = vector.shape_cast %255 : vector<32xf32> to vector<1x32xf32>
    %cst_216 = arith.constant 0.000000e+00 : f32
    %257 = vector.broadcast %cst_216 : f32 to vector<8x128xf32>
    %c0_217 = arith.constant 0 : index
    %c0_218 = arith.constant 0 : index
    %258 = vector.load %arg12[%c0_217, %c0_218] : memref<8x128xf32, #tpu.memory_space<vmem>>, vector<8x128xf32>
    tpu.vector_store %arg12[%c0_217, %c0_218], %257 {strides = array<i32>} : memref<8x128xf32, #tpu.memory_space<vmem>>, vector<8x128xf32>,
    %c0_219 = arith.constant 0 : index
    %c0_220 = arith.constant 0 : index
    %259 = vector.load %arg11[%c0_219, %c0_220] : memref<8x128xf32, #tpu.memory_space<vmem>>, vector<1x32xf32>
    %c1_221 = arith.constant 1 : index
    %c0_222 = arith.constant 0 : index
    %260 = vector.load %arg11[%c1_221, %c0_222] : memref<8x128xf32, #tpu.memory_space<vmem>>, vector<1x32xf32>
    %261 = tpu.concatenate %256, %259 in 1 : vector<1x32xf32>, vector<1x32xf32> -> vector<1x64xf32>
    %262 = arith.truncf %261 : vector<1x64xf32> to vector<1x64xbf16>
    %c0_223 = arith.constant 0 : index
    %c0_224 = arith.constant 0 : index
    %c0_225 = arith.constant 0 : index
    %263 = vector.load %arg7[%c0_223, %c0_224, %c0_225] : memref<1x64x128xbf16, #tpu.memory_space<vmem>>, vector<1x64x128xbf16>
    %264 = vector.shape_cast %263 : vector<1x64x128xbf16> to vector<64x128xbf16>
    %cst_226 = arith.constant dense<0.000000e+00> : vector<1x128xf32>
    %265 = tpu.matmul %262, %264, %cst_226 {dimension_numbers = #tpu.dot_dimension_numbers<[1], [0], [0], [1], [0, 0, 1, 1], [], []>} : vector<1x64xbf16>, vector<64x128xbf16>, vector<1x128xf32> -> vector<1x128xf32>
    %c0_227 = arith.constant 0 : index
    %c0_228 = arith.constant 0 : index
    %c0_229 = arith.constant 0 : index
    %266 = vector.load %arg8[%c0_227, %c0_228, %c0_229] : memref<1x1x128xf32, #tpu.memory_space<vmem>>, vector<1x1x128xf32>
    %267 = vector.shape_cast %266 : vector<1x1x128xf32> to vector<1x128xf32>
    %268 = arith.addf %265, %267 : vector<1x128xf32>
    %269 = vector.extract_strided_slice %268 {offsets = [0, 0], sizes = [1, 32], strides = [1, 1]} : vector<1x128xf32> to vector<1x32xf32>
    %270 = arith.negf %269 : vector<1x32xf32>
    %271 = math.exp %270 : vector<1x32xf32>
    %cst_230 = arith.constant 1.000000e+00 : f32
    %272 = vector.broadcast %cst_230 : f32 to vector<1x32xf32>
    %273 = arith.addf %272, %271 : vector<1x32xf32>
    %274 = arith.divf %272, %273 : vector<1x32xf32>
    %275 = vector.extract_strided_slice %268 {offsets = [0, 32], sizes = [1, 32], strides = [1, 1]} : vector<1x128xf32> to vector<1x32xf32>
    %276 = arith.negf %275 : vector<1x32xf32>
    %277 = math.exp %276 : vector<1x32xf32>
    %cst_231 = arith.constant 1.000000e+00 : f32
    %278 = vector.broadcast %cst_231 : f32 to vector<1x32xf32>
    %279 = arith.addf %278, %277 : vector<1x32xf32>
    %280 = arith.divf %278, %279 : vector<1x32xf32>
    %281 = vector.extract_strided_slice %268 {offsets = [0, 64], sizes = [1, 32], strides = [1, 1]} : vector<1x128xf32> to vector<1x32xf32>
    %282 = math.tanh %281 : vector<1x32xf32>
    %283 = vector.extract_strided_slice %268 {offsets = [0, 96], sizes = [1, 32], strides = [1, 1]} : vector<1x128xf32> to vector<1x32xf32>
    %284 = arith.negf %283 : vector<1x32xf32>
    %285 = math.exp %284 : vector<1x32xf32>
    %cst_232 = arith.constant 1.000000e+00 : f32
    %286 = vector.broadcast %cst_232 : f32 to vector<1x32xf32>
    %287 = arith.addf %286, %285 : vector<1x32xf32>
    %288 = arith.divf %286, %287 : vector<1x32xf32>
    %289 = arith.mulf %280, %260 : vector<1x32xf32>
    %290 = arith.mulf %274, %282 : vector<1x32xf32>
    %291 = arith.addf %289, %290 : vector<1x32xf32>
    %292 = math.tanh %291 : vector<1x32xf32>
    %293 = arith.mulf %288, %292 : vector<1x32xf32>
    %c0_233 = arith.constant 0 : index
    %c0_234 = arith.constant 0 : index
    %294 = vector.load %arg12[%c0_233, %c0_234] : memref<8x128xf32, #tpu.memory_space<vmem>>, vector<1x32xf32>
    tpu.vector_store %arg12[%c0_233, %c0_234], %293 {strides = array<i32>} : memref<8x128xf32, #tpu.memory_space<vmem>>, vector<1x32xf32>,
    %c1_235 = arith.constant 1 : index
    %c0_236 = arith.constant 0 : index
    %295 = vector.load %arg12[%c1_235, %c0_236] : memref<8x128xf32, #tpu.memory_space<vmem>>, vector<1x32xf32>
    tpu.vector_store %arg12[%c1_235, %c0_236], %291 {strides = array<i32>} : memref<8x128xf32, #tpu.memory_space<vmem>>, vector<1x32xf32>,
    %c6_237 = arith.constant 6 : index
    %c0_238 = arith.constant 0 : index
    %296 = vector.load %arg10[%c6_237, %c0_238] : memref<8x128xf32, #tpu.memory_space<vmem>>, vector<1x128xf32>
    %297 = arith.truncf %293 : vector<1x32xf32> to vector<1x32xbf16>
    %c0_239 = arith.constant 0 : index
    %c0_240 = arith.constant 0 : index
    %298 = vector.load %arg9[%c0_239, %c0_240] : memref<32x128xbf16, #tpu.memory_space<vmem>>, vector<32x128xbf16>
    %cst_241 = arith.constant dense<0.000000e+00> : vector<1x128xf32>
    %299 = tpu.matmul %297, %298, %cst_241 {dimension_numbers = #tpu.dot_dimension_numbers<[1], [0], [0], [1], [0, 0, 1, 1], [], []>} : vector<1x32xbf16>, vector<32x128xbf16>, vector<1x128xf32> -> vector<1x128xf32>
    %300 = arith.addf %299, %296 : vector<1x128xf32>
    %c2_242 = arith.constant 2 : index
    %c0_243 = arith.constant 0 : index
    %301 = vector.load %arg12[%c2_242, %c0_243] : memref<8x128xf32, #tpu.memory_space<vmem>>, vector<1x128xf32>
    tpu.vector_store %arg12[%c2_242, %c0_243], %300 {strides = array<i32>} : memref<8x128xf32, #tpu.memory_space<vmem>>, vector<1x128xf32>,
    return
  }
}

</mosaic_0001>

<bundles_post_ra>
// kernel: darqn_forward.1
= control target key start
LH: loop header
LB: loop body
LE: loop exit
PB: predicated region body
PF: predicated region fallthrough
CT: control target
= control target key end

     0   :  { %vm178_vm0 = vcmask 523264   ;;  %vm391_vm1 = vcmask 1040384   ;;  %vm381_vm2 = vcmask 793600   ;;  %vm555_vm3 = vcmask 261120   ;;  %s4858_s14 = smov 32   ;;  %s4859_s21 = smov 64   ;;  %s6416_s1 = inlined_call_operand.vmem [shape: bf16[64,32], index: 1, kind: input, shape index: {}]   ;;  %s6417_s10 = inlined_call_operand.vmem [shape: f32[8,128], index: 10, kind: input, shape index: {}]   ;;  %s6418_s0 = inlined_call_operand.vmem [shape: bf16[225,64], index: 0, kind: input, shape index: {}]   ;;  %s6419_s2 = inlined_call_operand.vmem [shape: bf16[16,36,225], index: 2, kind: input, shape index: {}]   ;;  %s6420_s3 = inlined_call_operand.vmem [shape: bf16[16,32,64], index: 3, kind: input, shape index: {}]   ;;  %s6421_s5 = inlined_call_operand.vmem [shape: bf16[9,64,32], index: 5, kind: input, shape index: {}]   ;;  %s6422_s4 = inlined_call_operand.vmem [shape: bf16[9,16,36], index: 4, kind: input, shape index: {}]   ;;  %s6423_s6 = inlined_call_operand.vmem [shape: bf16[64,32], index: 6, kind: input, shape index: {}]   ;;  %s6424_s11 = inlined_call_operand.vmem [shape: f32[8,128], index: 11, kind: input, shape index: {}, may-alias: {11,12}]   ;;  %s6425_s12 = inlined_call_operand.vmem [shape: f32[8,128], index: 12, kind: output, shape index: {}, may-alias: {11,12}]   ;;  %s6426_s7 = inlined_call_operand.vmem [shape: bf16[1,64,128], index: 7, kind: input, shape index: {}]   ;;  %s6427_s8 = inlined_call_operand.vmem [shape: f32[1,1,128], index: 8, kind: input, shape index: {}]   ;;  %s6428_s9 = inlined_call_operand.vmem [shape: bf16[32,128], index: 9, kind: input, shape index: {}]  }
   0x1   :  { %v4673_v0 = vld [vmem:[%s6416_s1 + $0x18] sm:$0xff]  ;;  %v4672_v1 = vld [vmem:[%s6416_s1 + $0x10] sm:$0xff]  ;;  %v4671_v2 = vld [vmem:[%s6416_s1 + $0x8] sm:$0xff]  ;;  %vm2646_vm4 = vcmask 1041408   ;;  %vm2642_vm5 = vcmask 293888   ;;  %vm3430_vm6 = vcmask 7168  }
   0x2   :  { %228 = vmatpush.bf16.msra.mxu0 %v4673_v0  ;;  %v4670_v3 = vld [vmem:[%s6416_s1] sm:$0xff]  ;;  %v4657_v5 = vld [vmem:[%s6418_s0 + $0x8] sm:$0xff]  ;;  %v4658_v6 = vld [vmem:[%s6418_s0 + $0x10] sm:$0xff]  ;;  %vm3582_vm11 = vcmask 253952  }
   0x3   :  { %v4656_v4 = vld [vmem:[%s6418_s0] sm:$0xff]  ;;  %v4659_v7 = vld [vmem:[%s6418_s0 + $0x18] sm:$0xff]  ;;  %v4661_v9 = vld [vmem:[%s6418_s0 + $0x28] sm:$0xff] }
   0x4   :  { %v4660_v8 = vld [vmem:[%s6418_s0 + $0x20] sm:$0xff]  ;;  %v4662_v10 = vld [vmem:[%s6418_s0 + $0x30] sm:$0xff]  ;;  %v4663_v11 = vld [vmem:[%s6418_s0 + $0x38] sm:$0xff] }
   0x5   :  { %v4664_v12 = vld [vmem:[%s6418_s0 + $0x40] sm:$0xff]  ;;  %v4665_v21 = vld [vmem:[%s6418_s0 + $0x48] sm:$0xff]  ;;  %v4666_v29 = vld [vmem:[%s6418_s0 + $0x50] sm:$0xff] }
   0x6   :  { %229 = vmatpush.bf16.msra.mxu0 %v4672_v1  ;;  %v4976_v14 = vld [vmem:[%s6417_s10] ss:$0 sm:$0xff]  ;;  %v4667_v37 = vld [vmem:[%s6418_s0 + $0x58] sm:$0xff]  ;;  %v4669_v43 = vld [vmem:[%s6418_s0 + $0x68] sm:$0xff] }
   0x7   :  { %v4668_v40 = vld [vmem:[%s6418_s0 + $0x60] sm:$0xff]  ;;  %v71_v46 = vld [vmem:[%s6418_s0 + $0x70] sm:$0x1] }
   0x8   :  { %v138_v47 = vunpack.c.l.b16 %v71_v46 }
   0xa   :  { %230 = vmatpush.bf16.msra.mxu0 %v4671_v2  ;;  %v153_v48 = vpack.c.b16 %v138_v47, %v138_v47 }
   0xe   :  { %231 = vmatpush.bf16.msra.mxu0 %v4670_v3 }
  0x11   :  { %3703 = vmatmul.msk.bf16.vlgmr.msra.gmra.mxu0 %vm178_vm0, %v4656_v4 }
  0x21   :  { %3704 = vmatmul.msk.bf16.gmra.mxu0 %vm178_vm0, %v4657_v5 }
  0x31   :  { %3705 = vmatmul.msk.bf16.gmra.mxu0 %vm178_vm0, %v4658_v6 }
  0x41   :  { %3706 = vmatmul.msk.bf16.gmra.mxu0 %vm178_vm0, %v4659_v7 }
  0x51   :  { %3707 = vmatmul.msk.bf16.gmra.mxu0 %vm178_vm0, %v4660_v8 }
  0x61   :  { %3708 = vmatmul.msk.bf16.gmra.mxu0 %vm178_vm0, %v4661_v9 }
  0x71   :  { %3709 = vmatmul.msk.bf16.gmra.mxu0 %vm178_vm0, %v4662_v10 }
  0x81   :  { %3710 = vmatmul.msk.bf16.gmra.mxu0 %vm178_vm0, %v4663_v11 }
  0x8e   :  { %v233_v13 = vpop.f32.mrf.mxu0 }
  0x8f   :  { %v234_v15 = vadd.f32 %v4976_v14, %v233_v13 }
  0x91   :  { %3711 = vmatmul.msk.bf16.gmra.mxu0 %vm178_vm0, %v4664_v12  ;;  %v307_v18 = vmax.f32 %v234_v15, 0.0 }
  0x96   :  { %v235_v16 = vpop.f32.mrf.mxu0 }
  0x97   :  { %v236_v17 = vadd.f32 %v4976_v14, %v235_v16 }
  0x99   :  { %v308_v19 = vmax.f32 %v236_v17, 0.0 }
  0x9b   :  { %v4981_v20 = vpack.c.bf16 %v308_v19, %v307_v18 }
  0x9e   :  { %v238_v22 = vpop.f32.mrf.mxu0 }
  0x9f   :  { %v239_v23 = vadd.f32 %v4976_v14, %v238_v22 }
  0xa1   :  { %3712 = vmatmul.msk.bf16.gmra.mxu0 %vm178_vm0, %v4665_v21  ;;  %v309_v26 = vmax.f32 %v239_v23, 0.0  ;;  %v3911_v23 = vld [vmem:[%s6419_s2 + $0xc8] sm:$0xf] }
  0xa6   :  { %v240_v24 = vpop.f32.mrf.mxu0 }
  0xa7   :  { %v241_v25 = vadd.f32 %v4976_v14, %v240_v24  ;;  %v4705_v24 = vld [vmem:[%s6419_s2 + $0xcc] sm:$0xf0] }
  0xa9   :  { %v310_v27 = vmax.f32 %v241_v25, 0.0  ;;  %v3912_v25 = vor.u32 %v4705_v24, %v3911_v23 }
  0xab   :  { %v4989_v28 = vpack.c.bf16 %v310_v27, %v309_v26 }
  0xae   :  { %v243_v30 = vpop.f32.mrf.mxu0 }
  0xaf   :  { %v244_v31 = vadd.f32 %v4976_v14, %v243_v30  ;;  %v3919_v30 = vld [vmem:[%s6419_s2 + $0xd8] sm:$0xf] }
  0xb1   :  { %3713 = vmatmul.msk.bf16.gmra.mxu0 %vm178_vm0, %v4666_v29  ;;  %v311_v34 = vmax.f32 %v244_v31, 0.0  ;;  %v4685_v29 = vld [vmem:[%s6420_s3 + $0x18] sm:$0xff]  ;;  %v4707_v31 = vld [vmem:[%s6419_s2 + $0xdc] sm:$0xf0] }
  0xb6   :  { %v245_v32 = vpop.f32.mrf.mxu0 }
  0xb7   :  { %v246_v33 = vadd.f32 %v4976_v14, %v245_v32  ;;  %v3920_v32 = vor.u32 %v4707_v31, %v3919_v30  ;;  %v3952_v30 = vld [vmem:[%s6419_s2 + $0xf8] sm:$0xf0] }
  0xb9   :  { %v312_v35 = vmax.f32 %v246_v33, 0.0  ;;  %v4856_v33 = vmov 0  }
  0xba   :  { %4830 = vset.pattern.permute.xlu1 %v4856_v33  ;;  %4831 = vset.pattern.permute.xlu0 %v4856_v33 }
  0xbb   :  { %v4997_v36 = vpack.c.bf16 %v312_v35, %v311_v34  ;;  %v4684_v34 = vld [vmem:[%s6420_s3 + $0x10] sm:$0xff]  ;;  %v3720_v35 = vld [vmem:[%s6419_s2] sm:$0xf] }
  0xbe   :  { %v248_v38 = vpop.f32.mrf.mxu0 }
  0xbf   :  { %v249_v9 = vadd.f32 %v4976_v14, %v248_v38 }
  0xc1   :  { %3714 = vmatmul.msk.bf16.gmra.mxu0 %vm178_vm0, %v4667_v37  ;;  %v313_v15 = vmax.f32 %v249_v9, 0.0  ;;  %v4675_v37 = vld [vmem:[%s6419_s2 + $0x4] sm:$0xf0] }
  0xc6   :  { %v250_v39 = vpop.f32.mrf.mxu0 }
  0xc7   :  { %v251_v6 = vadd.f32 %v4976_v14, %v250_v39  ;;  %v3721_v39 = vor.u32 %v4675_v37, %v3720_v35  ;;  %v4720_v35 = vld [vmem:[%s6420_s3 + $0x70] sm:$0xff]  ;;  %v356_v37 = vld [vmem:[%s6419_s2 + $0x20] sm:$0x33] }
  0xc9   :  { %v314_v12 = vmax.f32 %v251_v6, 0.0 }
  0xcb   :  { %v5049_v16 = vpack.c.bf16 %v314_v12, %v313_v15 }
  0xce   :  { %v253_v41 = vpop.f32.mrf.mxu0 }
  0xcf   :  { %v254_v4 = vadd.f32 %v4976_v14, %v253_v41  ;;  %v5094_v41 = vld [vmem:[%s6419_s2 + $0xe8] sm:$0x33] }
  0xd1   :  { %3715 = vmatmul.msk.bf16.gmra.mxu0 %vm178_vm0, %v4668_v40  ;;  %v315_v10 = vmax.f32 %v254_v4, 0.0 }
  0xd6   :  { %v255_v42 = vpop.f32.mrf.mxu0 }
  0xd7   :  { %v256_v1 = vadd.f32 %v4976_v14, %v255_v42  ;;  %v1077_v42 = vunpack.c.l.b16 %v5094_v41 }
  0xd9   :  { %v316_v7 = vmax.f32 %v256_v1, 0.0 }
  0xdb   :  { %v5044_v13 = vpack.c.bf16 %v316_v7, %v315_v10 }
  0xde   :  { %v258_v44 = vpop.f32.mrf.mxu0 }
  0xdf   :  { %v259_v62 = vadd.f32 %v4976_v14, %v258_v44 }
  0xe1   :  { %3716 = vmatmul.msk.bf16.gmra.mxu0 %vm178_vm0, %v4669_v43  ;;  %v317_v5 = vmax.f32 %v259_v62, 0.0  ;;  %v1083_v43 = vpack.c.b16 %v1077_v42, %v1077_v42  ;;  %v4681_v42 = vld [vmem:[%s6419_s2 + $0x2c] sm:$0xf0] }
  0xe6   :  { %v260_v45 = vpop.f32.mrf.mxu0 }
  0xe7   :  { %v261_v59 = vadd.f32 %v4976_v14, %v260_v45 }
  0xe9   :  { %v318_v2 = vmax.f32 %v261_v59, 0.0 }
  0xeb   :  { %v5036_v8 = vpack.c.bf16 %v318_v2, %v317_v5 }
  0xee   :  { %v263_v49 = vpop.f32.mrf.mxu0 }
  0xef   :  { %v264_v56 = vadd.f32 %v4976_v14, %v263_v49  ;;  %v393_v49 = vsel %vm391_vm1, 65535, %v4856_v33 }
  0xf1   :  { %3717 = vmatmul.msk.bf16.gmra.mxu0 %vm178_vm0, %v153_v48  ;;  %v319_v63 = vmax.f32 %v264_v56, 0.0 }
  0xf6   :  { %v265_v50 = vpop.f32.mrf.mxu0 }
  0xf7   :  { %v266_v54 = vadd.f32 %v4976_v14, %v265_v50 }
  0xf9   :  { %v320_v60 = vmax.f32 %v266_v54, 0.0 }
  0xfb   :  { %v5029_v3 = vpack.c.bf16 %v320_v60, %v319_v63 }
  0xfe   :  { %v268_v51 = vpop.f32.mrf.mxu0 }
  0xff   :  { %v269_v52 = vadd.f32 %v4976_v14, %v268_v51 }
 0x101   :  { %v321_v57 = vmax.f32 %v269_v52, 0.0 }
 0x106   :  { %v270_v53 = vpop.f32.mrf.mxu0 }
 0x107   :  { %v271_v55 = vadd.f32 %v4976_v14, %v270_v53 }
 0x109   :  { %v322_v58 = vmax.f32 %v271_v55, 0.0 }
 0x10b   :  { %v5020_v61 = vpack.c.bf16 %v322_v58, %v321_v57 }
 0x10d   :  { %397 = vmatpush.bf16.msra.mxu1 %v5020_v61  ;;  %489 = vmatpush.bf16.msra.mxu3 %v5020_v61 }
 0x10e   :  { %1097 = vmatpush.bf16.msrb.mxu0 %v5020_v61  ;;  %v5026_v0 = vpop.f32.mrf.mxu0 }
 0x10f   :  { %v274_v23 = vadd.f32 %v4976_v14, %v5026_v0  ;;  %v3722_v0 = vld [vmem:[%s6419_s2 + $0x8] sm:$0xf0] }
 0x111   :  { %398 = vmatpush.bf16.msra.mxu1 %v5029_v3  ;;  %490 = vmatpush.bf16.msra.mxu3 %v5029_v3 }
 0x112   :  { %1098 = vmatpush.bf16.msrb.mxu0 %v5029_v3 }
 0x115   :  { %399 = vmatpush.bf16.msra.mxu1 %v5036_v8  ;;  %491 = vmatpush.bf16.msra.mxu3 %v5036_v8 }
 0x116   :  { %1099 = vmatpush.bf16.msrb.mxu0 %v5036_v8  ;;  %v5042_v11 = vpop.f32.mrf.mxu0 }
 0x119   :  { %400 = vmatpush.bf16.msra.mxu1 %v5044_v13  ;;  %492 = vmatpush.bf16.msra.mxu3 %v5044_v13 }
 0x11a   :  { %1100 = vmatpush.bf16.msrb.mxu0 %v5044_v13 }
 0x11d   :  { %401 = vmatpush.bf16.msra.mxu1 %v5049_v16  ;;  %493 = vmatpush.bf16.msra.mxu3 %v5049_v16 }
 0x11e   :  { %1101 = vmatpush.bf16.msrb.mxu0 %v5049_v16  ;;  %v5054_v17 = vpop.f32.mrf.mxu0 }
 0x11f   :  { %v279_v12 = vadd.f32 %v4976_v14, %v5054_v17  ;;  %v4677_v17 = vld [vmem:[%s6419_s2 + $0x14] sm:$0xf0] }
 0x121   :  { %402 = vmatpush.bf16.msra.mxu1 %v4997_v36  ;;  %494 = vmatpush.bf16.msra.mxu3 %v4997_v36  ;;  %v325_v24 = vmax.f32 %v279_v12, 0.0  ;;  %v4679_v12 = vld [vmem:[%s6420_s3 + $0x8] sm:$0xff] }
 0x122   :  { %1102 = vmatpush.bf16.msrb.mxu0 %v4997_v36 }
 0x125   :  { %403 = vmatpush.bf16.msra.mxu1 %v4989_v28  ;;  %495 = vmatpush.bf16.msra.mxu3 %v4989_v28 }
 0x126   :  { %1103 = vmatpush.bf16.msrb.mxu0 %v4989_v28  ;;  %v5062_v18 = vpop.f32.mrf.mxu0 }
 0x127   :  { %v281_v7 = vadd.f32 %v4976_v14, %v5062_v18  ;;  %v3728_v18 = vld [vmem:[%s6419_s2 + $0x10] sm:$0xf] }
 0x129   :  { %404 = vmatpush.bf16.msra.mxu1 %v4981_v20  ;;  %496 = vmatpush.bf16.msra.mxu3 %v4981_v20 }
 0x12a   :  { %1104 = vmatpush.bf16.msrb.mxu0 %v4981_v20 }
 0x12c   :  { %405 = vmatmul.bf16.vlgmr.msra.gmra.mxu1 %v3721_v39 }
 0x12d   :  { %1105 = vmatmul.bf16.vlgmr.msrb.gmra.mxu0 %v3912_v25  ;;  %571 = vmatpush.bf16.msrb.mxu1 %v4685_v29  ;;  %v4710_v29 = vld [vmem:[%s6419_s2 + $0xf4] sm:$0xf] }
 0x12e   :  { %v283_v19 = vpop.f32.mrf.mxu0  ;;  %615 = vmatpush.bf16.msrb.mxu3 %v4679_v12 }
 0x12f   :  { %v284_v5 = vadd.f32 %v4976_v14, %v283_v19  ;;  %v276_v19 = vadd.f32 %v4976_v14, %v5042_v11  ;;  %v3729_v11 = vor.u32 %v4677_v17, %v3728_v18  ;;  %v4678_v17 = vld [vmem:[%s6420_s3] sm:$0xff] }
 0x131   :  { %572 = vmatpush.bf16.msrb.mxu1 %v4684_v34  ;;  %v327_v15 = vmax.f32 %v284_v5, 0.0  ;;  %v324_v25 = vmax.f32 %v276_v19, 0.0  ;;  %v3955_v34 = vor.u32 %v4710_v29, %v3952_v30  ;;  %v3794_v5 = vld [vmem:[%s6419_s2 + $0x50] sm:$0xf]  ;;  %v4689_v19 = vld [vmem:[%s6419_s2 + $0x64] sm:$0xf0] }
 0x132   :  { %616 = vmatpush.bf16.msrb.mxu3 %v4678_v17  ;;  %v3833_v29 = vld [vmem:[%s6419_s2 + $0x78] sm:$0xf]  ;;  %v4693_v30 = vld [vmem:[%s6419_s2 + $0x7c] sm:$0xf0]  ;;  %v4715_v17 = vld [vmem:[%s6420_s3 + $0x68] sm:$0xff] }
 0x136   :  { %v285_v21 = vpop.f32.mrf.mxu0 }
 0x137   :  { %v286_v1 = vadd.f32 %v4976_v14, %v285_v21  ;;  %v326_v21 = vmax.f32 %v281_v7, 0.0 }
 0x139   :  { %v328_v9 = vmax.f32 %v286_v1, 0.0 }
 0x13c   :  { %410 = vmatmul.bf16.gmra.mxu1 %v3729_v11 }
 0x13d   :  { %1110 = vmatmul.bf16.gmra.mxu0 %v3920_v32  ;;  %v4721_v32 = vld [vmem:[%s6420_s3 + $0x78] sm:$0xff] }
 0x13e   :  { %v288_v22 = vpop.f32.mrf.mxu0 }
 0x13f   :  { %v289_v62 = vadd.f32 %v4976_v14, %v288_v22  ;;  %v5132_v22 = vpack.c.bf16 %v328_v9, %v327_v15  ;;  %v3802_v15 = vld [vmem:[%s6419_s2 + $0x60] sm:$0xf] }
 0x140   :  { %v3803_v18 = vor.u32 %v4689_v19, %v3802_v15 }
 0x141   :  { %v329_v6 = vmax.f32 %v289_v62, 0.0  ;;  %v3754_v62 = vld [vmem:[%s6419_s2 + $0x40] sm:$0xf0] }
 0x146   :  { %v290_v26 = vpop.f32.mrf.mxu0 }
 0x147   :  { %v291_v58 = vadd.f32 %v4976_v14, %v290_v26  ;;  %v5145_v26 = vpack.c.bf16 %v326_v21, %v325_v24  ;;  %v5274_v24 = vld [vmem:[%s6419_s2 + $0x70] sm:$0x33] }
 0x148   :  { %v651_v11 = vunpack.c.l.b16 %v5274_v24 }
 0x149   :  { %v330_v2 = vmax.f32 %v291_v58, 0.0 }
 0x14b   :  { %v5123_v10 = vpack.c.bf16 %v330_v2, %v329_v6  ;;  %v4687_v6 = vld [vmem:[%s6419_s2 + $0x54] sm:$0xf0] }
 0x14c   :  { %v3795_v7 = vor.u32 %v4687_v6, %v3794_v5 }
 0x14d   :  { %1115 = vmatmul.bf16.gmra.mxu0 %v1083_v43 }
 0x14e   :  { %v293_v27 = vpop.f32.mrf.mxu0 }
 0x14f   :  { %v294_v56 = vadd.f32 %v4976_v14, %v293_v27  ;;  %v323_v27 = vmax.f32 %v274_v23, 0.0 }
 0x151   :  { %v331_v63 = vmax.f32 %v294_v56, 0.0  ;;  %v5162_v31 = vpack.c.bf16 %v324_v25, %v323_v27  ;;  %v3741_v56 = vld [vmem:[%s6419_s2 + $0x48] sm:$0x33]  ;;  %v657_v25 = vpack.c.b16 %v651_v11, %v651_v11 }
 0x152   :  { %v470_v1 = vunpack.c.h.b16 %v3741_v56 }
 0x154   :  { %v476_v2 = vpack.c.b16 %v470_v1, %v470_v1  ;;  %v3872_v1 = vld [vmem:[%s6419_s2 + $0xa0] sm:$0xf] }
 0x156   :  { %v295_v38 = vpop.f32.mrf.mxu0 }
 0x157   :  { %v296_v52 = vadd.f32 %v4976_v14, %v295_v38  ;;  %v370_v38 = vunpack.c.l.b16 %v356_v37 }
 0x159   :  { %v332_v59 = vmax.f32 %v296_v52, 0.0  ;;  %v376_v39 = vpack.c.b16 %v370_v38, %v370_v38  ;;  %v4680_v52 = vld [vmem:[%s6419_s2 + $0x2c] sm:$0xf] }
 0x15b   :  { %v5115_v4 = vpack.c.bf16 %v332_v59, %v331_v63  ;;  %415 = vmatmul.bf16.gmra.mxu1 %v376_v39  ;;  %v4682_v59 = vld [vmem:[%s6419_s2 + $0x3c] sm:$0xf] }
 0x15c   :  { %v3757_v63 = vor.u32 %v4682_v59, %v3754_v62 }
 0x15e   :  { %v298_v40 = vpop.f32.mrf.mxu0 }
 0x15f   :  { %v299_v50 = vadd.f32 %v4976_v14, %v298_v40  ;;  %v3744_v40 = vld [vmem:[%s6419_s2 + $0x28] sm:$0xf] }
 0x160   :  { %v3745_v43 = vor.u32 %v4681_v42, %v3744_v40 }
 0x161   :  { %v333_v57 = vmax.f32 %v299_v50, 0.0  ;;  %v371_v50 = vunpack.c.h.b16 %v356_v37 }
 0x162   :  { %497 = vmatmul.bf16.vlgmr.msra.gmra.mxu3 %v3745_v43  ;;  %v3841_v43 = vld [vmem:[%s6419_s2 + $0x88] sm:$0xf] }
 0x166   :  { %v300_v44 = vpop.f32.mrf.mxu0 }
 0x167   :  { %v301_v47 = vadd.f32 %v4976_v14, %v300_v44  ;;  %v4676_v44 = vld [vmem:[%s6419_s2 + $0x14] sm:$0xf] }
 0x169   :  { %v334_v53 = vmax.f32 %v301_v47, 0.0  ;;  %v3752_v47 = vld [vmem:[%s6419_s2 + $0x38] sm:$0xf] }
 0x16b   :  { %v5108_v60 = vpack.c.bf16 %v334_v53, %v333_v57  ;;  %v3746_v53 = vld [vmem:[%s6419_s2 + $0x30] sm:$0xf0]  ;;  %v469_v57 = vunpack.c.l.b16 %v3741_v56 }
 0x16d   :  { %v475_v58 = vpack.c.b16 %v469_v57, %v469_v57 }
 0x16e   :  { %v303_v45 = vpop.f32.mrf.mxu0 }
 0x16f   :  { %v304_v46 = vadd.f32 %v4976_v14, %v303_v45  ;;  %v4674_v14 = vld [vmem:[%s6419_s2 + $0x4] sm:$0xf]  ;;  %v3730_v45 = vld [vmem:[%s6419_s2 + $0x18] sm:$0xf0] }
 0x170   :  { %v3725_v33 = vor.u32 %v4674_v14, %v3722_v0 }
 0x171   :  { %v335_v48 = vmax.f32 %v304_v46, 0.0  ;;  %v3733_v46 = vor.u32 %v4676_v44, %v3730_v45  ;;  %v4695_v44 = vld [vmem:[%s6419_s2 + $0x8c] sm:$0xf0] }
 0x173   :  { %v350_v51 = vpack.c.bf16 %v335_v48, %v335_v48  ;;  %v4683_v48 = vld [vmem:[%s6419_s2 + $0x3c] sm:$0xf0] }
 0x175   :  { %v5101_v54 = vand.u32 %v393_v49, %v350_v51  ;;  %v3753_v49 = vor.u32 %v4683_v48, %v3752_v47  ;;  %v377_v51 = vpack.c.b16 %v371_v50, %v371_v50  ;;  %v3842_v48 = vor.u32 %v4695_v44, %v3841_v43  ;;  %v3913_v43 = vld [vmem:[%s6419_s2 + $0xd0] sm:$0xf0] }
 0x176   :  { %v305_v55 = vpop.f32.mrf.mxu0 }
 0x177   :  { %421 = vmatpush.bf16.msra.mxu2 %v5101_v54  ;;  %695 = vmatpush.bf16.msra.mxu1 %v5101_v54  ;;  %v3749_v55 = vor.u32 %v4680_v52, %v3746_v53  ;;  %v5302_v52 = vld [vmem:[%s6419_s2 + $0x98] sm:$0x33] }
 0x178   :  { %1263 = vmatpush.bf16.msra.mxu0 %v5101_v54  ;;  %502 = vmatmul.bf16.gmra.mxu3 %v3753_v49  ;;  %v793_v53 = vunpack.c.l.b16 %v5302_v52 }
 0x17a   :  { %v799_v57 = vpack.c.b16 %v793_v53, %v793_v53 }
 0x17b   :  { %422 = vmatpush.bf16.msra.mxu2 %v5108_v60  ;;  %696 = vmatpush.bf16.msra.mxu1 %v5108_v60 }
 0x17c   :  { %1264 = vmatpush.bf16.msra.mxu0 %v5108_v60 }
 0x17f   :  { %423 = vmatpush.bf16.msra.mxu2 %v5115_v4  ;;  %697 = vmatpush.bf16.msra.mxu1 %v5115_v4 }
 0x180   :  { %1265 = vmatpush.bf16.msra.mxu0 %v5115_v4 }
 0x183   :  { %424 = vmatpush.bf16.msra.mxu2 %v5123_v10  ;;  %698 = vmatpush.bf16.msra.mxu1 %v5123_v10 }
 0x184   :  { %1266 = vmatpush.bf16.msra.mxu0 %v5123_v10 }
 0x187   :  { %425 = vmatpush.bf16.msra.mxu2 %v5132_v22  ;;  %699 = vmatpush.bf16.msra.mxu1 %v5132_v22 }
 0x188   :  { %1267 = vmatpush.bf16.msra.mxu0 %v5132_v22  ;;  %507 = vmatmul.bf16.gmra.mxu3 %v475_v58 }
 0x18b   :  { %426 = vmatpush.bf16.msra.mxu2 %v5145_v26  ;;  %700 = vmatpush.bf16.msra.mxu1 %v5145_v26 }
 0x18c   :  { %1268 = vmatpush.bf16.msra.mxu0 %v5145_v26 }
 0x18f   :  { %427 = vmatpush.bf16.msra.mxu2 %v5162_v31  ;;  %701 = vmatpush.bf16.msra.mxu1 %v5162_v31 }
 0x190   :  { %1269 = vmatpush.bf16.msra.mxu0 %v5162_v31 }
 0x192   :  { %3734 = vmatmul.msk.bf16.vlgmr.msra.gmra.mxu2 %vm381_vm2, %v3725_v33 }
 0x193   :  { %513 = vmatpush.bf16.msrb.mxu2 %v5101_v54  ;;  %3964 = vmatmul.msk.bf16.vlgmr.msra.gmra.mxu0 %vm381_vm2, %v3955_v34 }
 0x194   :  { %1462 = vmatpush.bf16.msrb.mxu0 %v4721_v32 }
 0x197   :  { %514 = vmatpush.bf16.msrb.mxu2 %v5108_v60 }
 0x198   :  { %1463 = vmatpush.bf16.msrb.mxu0 %v4720_v35  ;;  %v3834_v35 = vor.u32 %v4693_v30, %v3833_v29  ;;  %v5336_v30 = vld [vmem:[%s6419_s2 + $0xc0] sm:$0x33] }
 0x19b   :  { %515 = vmatpush.bf16.msrb.mxu2 %v5115_v4 }
 0x19c   :  { %1665 = vmatpush.bf16.msra.mxu0 %v5020_v61 }
 0x19f   :  { %516 = vmatpush.bf16.msrb.mxu2 %v5123_v10 }
 0x1a0   :  { %1666 = vmatpush.bf16.msra.mxu0 %v5029_v3 }
 0x1a2   :  { %3735 = vmatmul.msk.bf16.gmra.mxu2 %vm381_vm2, %v3733_v46 }
 0x1a3   :  { %517 = vmatpush.bf16.msrb.mxu2 %v5132_v22 }
 0x1a4   :  { %1667 = vmatpush.bf16.msra.mxu0 %v5036_v8 }
 0x1a7   :  { %518 = vmatpush.bf16.msrb.mxu2 %v5145_v26 }
 0x1a8   :  { %1668 = vmatpush.bf16.msra.mxu0 %v5044_v13 }
 0x1a9   :  { %v406_v9 = vpop.f32.mrf.mxu1 }
 0x1ab   :  { %519 = vmatpush.bf16.msrb.mxu2 %v5162_v31 }
 0x1ac   :  { %1669 = vmatpush.bf16.msra.mxu0 %v5049_v16 }
 0x1af   :  { %671 = vmatpush.bf16.msra.mxu2 %v5020_v61 }
 0x1b0   :  { %1670 = vmatpush.bf16.msra.mxu0 %v4997_v36 }
 0x1b1   :  { %v408_v21 = vpop.f32.mrf.mxu1 }
 0x1b2   :  { %3736 = vmatmul.msk.bf16.gmra.mxu2 %vm381_vm2, %v377_v51 }
 0x1b3   :  { %672 = vmatpush.bf16.msra.mxu2 %v5029_v3 }
 0x1b4   :  { %1671 = vmatpush.bf16.msra.mxu0 %v4989_v28 }
 0x1b7   :  { %673 = vmatpush.bf16.msra.mxu2 %v5036_v8 }
 0x1b8   :  { %1672 = vmatpush.bf16.msra.mxu0 %v4981_v20 }
 0x1b9   :  { %v411_v23 = vpop.f32.mrf.mxu1 }
 0x1bb   :  { %674 = vmatpush.bf16.msra.mxu2 %v5044_v13 }
 0x1bf   :  { %675 = vmatpush.bf16.msra.mxu2 %v5049_v16 }
 0x1c1   :  { %v413_v27 = vpop.f32.mrf.mxu1 }
 0x1c2   :  { %3758 = vmatmul.msk.bf16.vlgmr.msrb.gmra.mxu2 %vm381_vm2, %v3749_v55 }
 0x1c3   :  { %676 = vmatpush.bf16.msra.mxu2 %v4997_v36 }
 0x1c7   :  { %677 = vmatpush.bf16.msra.mxu2 %v4989_v28 }
 0x1cb   :  { %678 = vmatpush.bf16.msra.mxu2 %v4981_v20 }
 0x1cf   :  { %813 = vmatpush.bf16.msrb.mxu2 %v5020_v61 }
 0x1d2   :  { %3759 = vmatmul.msk.bf16.gmra.mxu2 %vm381_vm2, %v3757_v63 }
 0x1d3   :  { %814 = vmatpush.bf16.msrb.mxu2 %v5029_v3 }
 0x1d7   :  { %815 = vmatpush.bf16.msrb.mxu2 %v5036_v8 }
 0x1d8   :  { %v416_v0 = vpop.f32.mrf.mxu1 }
 0x1db   :  { %816 = vmatpush.bf16.msrb.mxu2 %v5044_v13 }
 0x1df   :  { %817 = vmatpush.bf16.msrb.mxu2 %v5049_v16 }
 0x1e0   :  { %v418_v37 = vpop.f32.mrf.mxu1 }
 0x1e2   :  { %3760 = vmatmul.msk.bf16.gmra.mxu2 %vm381_vm2, %v476_v2  ;;  %v4699_v2 = vld [vmem:[%s6419_s2 + $0xa4] sm:$0xf0] }
 0x1e3   :  { %818 = vmatpush.bf16.msrb.mxu2 %v4997_v36 }
 0x1e5   :  { %v498_v39 = vpop.f32.mrf.mxu3 }
 0x1e7   :  { %819 = vmatpush.bf16.msrb.mxu2 %v4989_v28 }
 0x1eb   :  { %820 = vmatpush.bf16.msrb.mxu2 %v4981_v20 }
 0x1ed   :  { %v500_v42 = vpop.f32.mrf.mxu3 }
 0x1f2   :  { %679 = vmatmul.bf16.vlgmr.msra.gmra.mxu2 %v3795_v7 }
 0x1f3   :  { %955 = vmatpush.bf16.msra.mxu2 %v5020_v61 }
 0x1f7   :  { %956 = vmatpush.bf16.msra.mxu2 %v5029_v3 }
 0x1fb   :  { %957 = vmatpush.bf16.msra.mxu2 %v5036_v8  ;;  %v503_v50 = vpop.f32.mrf.mxu3 }
 0x1ff   :  { %958 = vmatpush.bf16.msra.mxu2 %v5044_v13 }
 0x202   :  { %684 = vmatmul.bf16.gmra.mxu2 %v3803_v18  ;;  %v4701_v18 = vld [vmem:[%s6419_s2 + $0xb4] sm:$0xf0] }
 0x203   :  { %959 = vmatpush.bf16.msra.mxu2 %v5049_v16  ;;  %v505_v58 = vpop.f32.mrf.mxu3 }
 0x207   :  { %960 = vmatpush.bf16.msra.mxu2 %v4997_v36 }
 0x20b   :  { %961 = vmatpush.bf16.msra.mxu2 %v4989_v28  ;;  %v508_v63 = vpop.f32.mrf.mxu3 }
 0x20f   :  { %962 = vmatpush.bf16.msra.mxu2 %v4981_v20 }
 0x212   :  { %689 = vmatmul.bf16.gmra.mxu2 %v657_v25 }
 0x213   :  { %v510_v12 = vpop.f32.mrf.mxu3 }
 0x215   :  { %v429_v14 = vpop.f32.mrf.mxu2 }
 0x216   :  { %v430_v33 = vadd.f32 %v429_v14, %v406_v9  ;;  %v3873_v9 = vor.u32 %v4699_v2, %v3872_v1  ;;  %v4714_v14 = vld [vmem:[%s6420_s3 + $0x60] sm:$0xff] }
 0x21d   :  { %v431_v32 = vpop.f32.mrf.mxu2 }
 0x21e   :  { %v432_v34 = vadd.f32 %v431_v32, %v408_v21  ;;  %v3880_v21 = vld [vmem:[%s6419_s2 + $0xb0] sm:$0xf] }
 0x220   :  { %v443_v38 = vpack.c.bf16 %v432_v34, %v430_v33  ;;  %v935_v33 = vunpack.c.l.b16 %v5336_v30 }
 0x222   :  { %3784 = vmatmul.msk.bf16.vlgmr.msrb.gmra.mxu3 %vm555_vm3, %v443_v38  ;;  %821 = vmatmul.bf16.vlgmr.msrb.gmra.mxu2 %v3834_v35  ;;  %v941_v37 = vpack.c.b16 %v935_v33, %v935_v33 }
 0x223   :  { %1121 = vmatpush.bf16.msrb.mxu2 %v5101_v54 }
 0x225   :  { %v434_v40 = vpop.f32.mrf.mxu2 }
 0x226   :  { %v435_v46 = vadd.f32 %v434_v40, %v411_v23  ;;  %v3796_v40 = vld [vmem:[%s6419_s2 + $0x58] sm:$0xf0] }
 0x227   :  { %1122 = vmatpush.bf16.msrb.mxu2 %v5108_v60 }
 0x22b   :  { %1123 = vmatpush.bf16.msrb.mxu2 %v5115_v4 }
 0x22d   :  { %v436_v45 = vpop.f32.mrf.mxu2 }
 0x22e   :  { %v437_v47 = vadd.f32 %v436_v45, %v413_v27  ;;  %v3881_v27 = vor.u32 %v4701_v18, %v3880_v21  ;;  %v3843_v21 = vld [vmem:[%s6419_s2 + $0x90] sm:$0xf0]  ;;  %v4709_v18 = vld [vmem:[%s6420_s3 + $0x58] sm:$0xff] }
 0x22f   :  { %1124 = vmatpush.bf16.msrb.mxu2 %v5123_v10 }
 0x230   :  { %v444_v49 = vpack.c.bf16 %v437_v47, %v435_v46 }
 0x232   :  { %3785 = vmatmul.msk.bf16.gmra.mxu3 %vm555_vm3, %v444_v49  ;;  %826 = vmatmul.bf16.gmra.mxu2 %v3842_v48  ;;  %v4688_v48 = vld [vmem:[%s6419_s2 + $0x64] sm:$0xf]  ;;  %v3804_v49 = vld [vmem:[%s6419_s2 + $0x68] sm:$0xf0] }
 0x233   :  { %1125 = vmatpush.bf16.msrb.mxu2 %v5132_v22 }
 0x235   :  { %v439_v51 = vpop.f32.mrf.mxu2 }
 0x236   :  { %v440_v55 = vadd.f32 %v439_v51, %v416_v0  ;;  %v3921_v51 = vld [vmem:[%s6419_s2 + $0xe0] sm:$0xf0] }
 0x237   :  { %1126 = vmatpush.bf16.msrb.mxu2 %v5145_v26 }
 0x238   :  { %v445_v59 = vpack.c.bf16 %v440_v55, %v440_v55  ;;  %v3807_v55 = vor.u32 %v4688_v48, %v3804_v49  ;;  %v4691_v48 = vld [vmem:[%s6420_s3 + $0x28] sm:$0xff] }
 0x239   :  { %752 = vmatpush.bf16.msra.mxu3 %v4691_v48 }
 0x23b   :  { %1127 = vmatpush.bf16.msrb.mxu2 %v5162_v31 }
 0x23d   :  { %v441_v56 = vpop.f32.mrf.mxu2 }
 0x242   :  { %3786 = vmatmul.msk.bf16.gmra.mxu3 %vm555_vm3, %v445_v59  ;;  %831 = vmatmul.bf16.gmra.mxu2 %v799_v57  ;;  %v652_v59 = vunpack.c.h.b16 %v5274_v24  ;;  %v3835_v24 = vld [vmem:[%s6419_s2 + $0x80] sm:$0xf0] }
 0x244   :  { %v658_v1 = vpack.c.b16 %v652_v59, %v652_v59 }
 0x245   :  { %v521_v62 = vpop.f32.mrf.mxu2 }
 0x246   :  { %v522_v6 = vadd.f32 %v521_v62, %v498_v39  ;;  %v4686_v39 = vld [vmem:[%s6419_s2 + $0x54] sm:$0xf] }
 0x247   :  { %v3799_v45 = vor.u32 %v4686_v39, %v3796_v40  ;;  %v4698_v40 = vld [vmem:[%s6419_s2 + $0xa4] sm:$0xf] }
 0x24d   :  { %v523_v5 = vpop.f32.mrf.mxu2 }
 0x24e   :  { %v524_v7 = vadd.f32 %v523_v5, %v500_v42  ;;  %v4704_v42 = vld [vmem:[%s6419_s2 + $0xcc] sm:$0xf] }
 0x24f   :  { %v3916_v46 = vor.u32 %v4704_v42, %v3913_v43 }
 0x250   :  { %v535_v15 = vpack.c.bf16 %v524_v7, %v522_v6 }
 0x252   :  { %3773 = vmatmul.msk.bf16.vlgmr.msrb.gmra.mxu1 %vm555_vm3, %v535_v15  ;;  %963 = vmatmul.bf16.vlgmr.msra.gmra.mxu2 %v3873_v9 }
 0x253   :  { %837 = vmatpush.bf16.msrb.mxu1 %v5101_v54  ;;  %1320 = vmatpush.bf16.msra.mxu2 %v4715_v17 }
 0x255   :  { %v526_v19 = vpop.f32.mrf.mxu2 }
 0x256   :  { %v527_v11 = vadd.f32 %v526_v19, %v503_v50  ;;  %v4706_v50 = vld [vmem:[%s6419_s2 + $0xdc] sm:$0xf]  ;;  %v4694_v19 = vld [vmem:[%s6419_s2 + $0x8c] sm:$0xf] }
 0x257   :  { %838 = vmatpush.bf16.msrb.mxu1 %v5108_v60  ;;  %1321 = vmatpush.bf16.msra.mxu2 %v4714_v14  ;;  %v3924_v56 = vor.u32 %v4706_v50, %v3921_v51  ;;  %v1106_v50 = vpop.f32.mrf.mxu0 }
 0x25b   :  { %839 = vmatpush.bf16.msrb.mxu1 %v5115_v4 }
 0x25d   :  { %v528_v23 = vpop.f32.mrf.mxu2 }
 0x25e   :  { %v529_v25 = vadd.f32 %v528_v23, %v505_v58  ;;  %v1078_v58 = vunpack.c.h.b16 %v5094_v41  ;;  %v4692_v41 = vld [vmem:[%s6419_s2 + $0x7c] sm:$0xf] }
 0x25f   :  { %840 = vmatpush.bf16.msrb.mxu1 %v5123_v10  ;;  %v3838_v9 = vor.u32 %v4692_v41, %v3835_v24 }
 0x260   :  { %v536_v0 = vpack.c.bf16 %v529_v25, %v527_v11  ;;  %v3846_v11 = vor.u32 %v4694_v19, %v3843_v21  ;;  %v4708_v25 = vld [vmem:[%s6420_s3 + $0x50] sm:$0xff] }
 0x262   :  { %3774 = vmatmul.msk.bf16.gmra.mxu1 %vm555_vm3, %v536_v0  ;;  %968 = vmatmul.bf16.gmra.mxu2 %v3881_v27  ;;  %v794_v0 = vunpack.c.h.b16 %v5302_v52  ;;  %v3874_v52 = vld [vmem:[%s6419_s2 + $0xa8] sm:$0xf0] }
 0x263   :  { %841 = vmatpush.bf16.msrb.mxu1 %v5132_v22  ;;  %v3877_v43 = vor.u32 %v4698_v40, %v3874_v52 }
 0x264   :  { %v800_v33 = vpack.c.b16 %v794_v0, %v794_v0 }
 0x265   :  { %v531_v29 = vpop.f32.mrf.mxu2 }
 0x266   :  { %v532_v32 = vadd.f32 %v531_v29, %v508_v63  ;;  %v1084_v63 = vpack.c.b16 %v1078_v58, %v1078_v58  ;;  %v3882_v58 = vld [vmem:[%s6419_s2 + $0xb8] sm:$0xf0] }
 0x267   :  { %842 = vmatpush.bf16.msrb.mxu1 %v5145_v26 }
 0x268   :  { %v537_v35 = vpack.c.bf16 %v532_v32, %v532_v32 }
 0x26b   :  { %843 = vmatpush.bf16.msrb.mxu1 %v5162_v31 }
 0x26d   :  { %v533_v34 = vpop.f32.mrf.mxu2 }
 0x272   :  { %3775 = vmatmul.msk.bf16.gmra.mxu1 %vm555_vm3, %v537_v35  ;;  %973 = vmatmul.bf16.gmra.mxu2 %v941_v37 }
 0x275   :  { %v5341_v38 = vpop.f32.mrf.mxu2 }
 0x27d   :  { %v5355_v44 = vpop.f32.mrf.mxu2 }
 0x282   :  { %3808 = vmatmul.msk.bf16.vlgmr.msra.gmra.mxu1 %vm381_vm2, %v3799_v45  ;;  %3925 = vmatmul.msk.bf16.vlgmr.msrb.gmra.mxu2 %vm381_vm2, %v3916_v46 }
 0x283   :  { %979 = vmatpush.bf16.msra.mxu1 %v5101_v54  ;;  %1523 = vmatpush.bf16.msrb.mxu2 %v5020_v61 }
 0x285   :  { %v5361_v47 = vpop.f32.mrf.mxu2 }
 0x287   :  { %980 = vmatpush.bf16.msra.mxu1 %v5108_v60  ;;  %1524 = vmatpush.bf16.msrb.mxu2 %v5029_v3 }
 0x28b   :  { %981 = vmatpush.bf16.msra.mxu1 %v5115_v4  ;;  %1525 = vmatpush.bf16.msrb.mxu2 %v5036_v8 }
 0x28d   :  { %v5379_v53 = vpop.f32.mrf.mxu2 }
 0x28f   :  { %982 = vmatpush.bf16.msra.mxu1 %v5123_v10  ;;  %1526 = vmatpush.bf16.msrb.mxu2 %v5044_v13 }
 0x292   :  { %3809 = vmatmul.msk.bf16.gmra.mxu1 %vm381_vm2, %v3807_v55  ;;  %3926 = vmatmul.msk.bf16.gmra.mxu2 %vm381_vm2, %v3924_v56  ;;  %v4690_v55 = vld [vmem:[%s6420_s3 + $0x20] sm:$0xff]  ;;  %v4700_v56 = vld [vmem:[%s6419_s2 + $0xb4] sm:$0xf] }
 0x293   :  { %983 = vmatpush.bf16.msra.mxu1 %v5132_v22  ;;  %1527 = vmatpush.bf16.msrb.mxu2 %v5049_v16 }
 0x294   :  { %753 = vmatpush.bf16.msra.mxu3 %v4690_v55 }
 0x295   :  { %v5387_v57 = vpop.f32.mrf.mxu2 }
 0x297   :  { %984 = vmatpush.bf16.msra.mxu1 %v5145_v26  ;;  %1528 = vmatpush.bf16.msrb.mxu2 %v4997_v36 }
 0x29b   :  { %985 = vmatpush.bf16.msra.mxu1 %v5162_v31  ;;  %1529 = vmatpush.bf16.msrb.mxu2 %v4989_v28 }
 0x29d   :  { %v692_v62 = vpop.f32.mrf.mxu2 }
 0x29e   :  { %v3885_v62 = vor.u32 %v4700_v56, %v3882_v58 }
 0x29f   :  { %1530 = vmatpush.bf16.msrb.mxu2 %v4981_v20 }
 0x2a2   :  { %3810 = vmatmul.msk.bf16.gmra.mxu1 %vm381_vm2, %v658_v1  ;;  %3927 = vmatmul.msk.bf16.gmra.mxu2 %vm381_vm2, %v1084_v63 }
 0x2a5   :  { %v618_v2 = vpop.f32.mrf.mxu3  ;;  %v5398_v5 = vpop.f32.mrf.mxu2 }
 0x2ad   :  { %v5406_v6 = vpop.f32.mrf.mxu3  ;;  %v5408_v7 = vpop.f32.mrf.mxu2 }
 0x2b2   :  { %3847 = vmatmul.msk.bf16.vlgmr.msrb.gmra.mxu1 %vm381_vm2, %v3838_v9  ;;  %v936_v9 = vunpack.c.h.b16 %v5336_v30 }
 0x2b3   :  { %1178 = vmatpush.bf16.msrb.mxu1 %v4709_v18 }
 0x2b4   :  { %v942_v21 = vpack.c.b16 %v936_v9, %v936_v9 }
 0x2b5   :  { %v623_v12 = vpop.f32.mrf.mxu3  ;;  %v5411_v15 = vpop.f32.mrf.mxu2 }
 0x2b7   :  { %1179 = vmatpush.bf16.msrb.mxu1 %v4708_v25 }
 0x2bd   :  { %v5422_v17 = vpop.f32.mrf.mxu3  ;;  %v5424_v23 = vpop.f32.mrf.mxu2 }
 0x2c2   :  { %3848 = vmatmul.msk.bf16.gmra.mxu1 %vm381_vm2, %v3846_v11 }
 0x2c5   :  { %v628_v27 = vpop.f32.mrf.mxu3  ;;  %v5430_v14 = vpop.f32.mrf.mxu2 }
 0x2cd   :  { %v630_v29 = vpop.f32.mrf.mxu3  ;;  %v834_v32 = vpop.f32.mrf.mxu2 }
 0x2cf   :  { %v574_v34 = vpop.f32.mrf.mxu1 }
 0x2d0   :  { %v5433_v35 = vadd.f32 %v618_v2, %v574_v34  ;;  %v1108_v2 = vpop.f32.mrf.mxu0 }
 0x2d2   :  { %3849 = vmatmul.msk.bf16.gmra.mxu1 %vm381_vm2, %v800_v33 }
 0x2d5   :  { %v5436_v37 = vpop.f32.mrf.mxu2 }
 0x2d7   :  { %v5438_v39 = vpop.f32.mrf.mxu1 }
 0x2dd   :  { %v5446_v42 = vpop.f32.mrf.mxu2 }
 0x2df   :  { %v579_v45 = vpop.f32.mrf.mxu1 }
 0x2e0   :  { %v5448_v46 = vadd.f32 %v623_v12, %v579_v45  ;;  %v1111_v12 = vpop.f32.mrf.mxu0  ;;  %v4697_v45 = vld [vmem:[%s6420_s3 + $0x38] sm:$0xff] }
 0x2e1   :  { %894 = vmatpush.bf16.msrb.mxu3 %v4697_v45 }
 0x2e2   :  { %3886 = vmatmul.msk.bf16.vlgmr.msra.gmra.mxu1 %vm381_vm2, %v3877_v43 }
 0x2e3   :  { %1381 = vmatpush.bf16.msra.mxu1 %v5020_v61 }
 0x2e5   :  { %v5455_v49 = vpop.f32.mrf.mxu2 }
 0x2e7   :  { %1382 = vmatpush.bf16.msra.mxu1 %v5029_v3  ;;  %v5458_v51 = vpop.f32.mrf.mxu1 }
 0x2e8   :  { %v1113_v11 = vpop.f32.mrf.mxu0 }
 0x2eb   :  { %1383 = vmatpush.bf16.msra.mxu1 %v5036_v8 }
 0x2ed   :  { %v5470_v59 = vpop.f32.mrf.mxu2 }
 0x2ef   :  { %1384 = vmatpush.bf16.msra.mxu1 %v5044_v13  ;;  %v584_v63 = vpop.f32.mrf.mxu1 }
 0x2f0   :  { %v5473_v1 = vadd.f32 %v628_v27, %v584_v63  ;;  %v1116_v30 = vpop.f32.mrf.mxu0  ;;  %v4702_v63 = vld [vmem:[%s6420_s3 + $0x40] sm:$0xff] }
 0x2f2   :  { %3887 = vmatmul.msk.bf16.gmra.mxu1 %vm381_vm2, %v3885_v62 }
 0x2f3   :  { %1385 = vmatpush.bf16.msra.mxu1 %v5049_v16 }
 0x2f5   :  { %v5477_v41 = vpop.f32.mrf.mxu2 }
 0x2f7   :  { %1386 = vmatpush.bf16.msra.mxu1 %v4997_v36  ;;  %v586_v24 = vpop.f32.mrf.mxu1 }
 0x2fb   :  { %1387 = vmatpush.bf16.msra.mxu1 %v4989_v28 }
 0x2fd   :  { %v976_v19 = vpop.f32.mrf.mxu2 }
 0x2ff   :  { %1388 = vmatpush.bf16.msra.mxu1 %v4981_v20  ;;  %v703_v18 = vpop.f32.mrf.mxu1 }
 0x300   :  { %v704_v0 = vadd.f32 %v703_v18, %v5341_v38  ;;  %v4696_v38 = vld [vmem:[%s6420_s3 + $0x30] sm:$0xff] }
 0x301   :  { %895 = vmatpush.bf16.msrb.mxu3 %v4696_v38  ;;  %v3997_v38 = vld [vmem:[%s6419_s2 + $0x128] sm:$0xf] }
 0x302   :  { %3888 = vmatmul.msk.bf16.gmra.mxu1 %vm381_vm2, %v942_v21 }
 0x305   :  { %v1129_v25 = vpop.f32.mrf.mxu2 }
 0x306   :  { %v1130_v33 = vadd.f32 %v1129_v25, %v1106_v50  ;;  %v4703_v50 = vld [vmem:[%s6420_s3 + $0x48] sm:$0xff] }
 0x307   :  { %v705_v27 = vpop.f32.mrf.mxu1 }
 0x308   :  { %v706_v29 = vadd.f32 %v705_v27, %v5355_v44  ;;  %v1118_v44 = vpop.f32.mrf.mxu0 }
 0x309   :  { %v4719_v44 = vld [vmem:[%s6419_s2 + $0x12c] sm:$0xf0] }
 0x30a   :  { %v717_v32 = vpack.c.bf16 %v706_v29, %v704_v0 }
 0x30c   :  { %3823 = vmatmul.msk.bf16.vlgmr.msra.gmra.mxu3 %vm555_vm3, %v717_v32 }
 0x30d   :  { %v1131_v34 = vpop.f32.mrf.mxu2  ;;  %1036 = vmatpush.bf16.msra.mxu3 %v4703_v50  ;;  %v4732_v50 = vld [vmem:[%s6420_s3 + $0x90] sm:$0xff] }
 0x30e   :  { %v1132_v40 = vadd.f32 %v1131_v34, %v1108_v2  ;;  %v3989_v34 = vld [vmem:[%s6419_s2 + $0x118] sm:$0xf] }
 0x30f   :  { %v708_v52 = vpop.f32.mrf.mxu1 }
 0x310   :  { %v1143_v43 = vpack.c.bf16 %v1132_v40, %v1130_v33  ;;  %v709_v56 = vadd.f32 %v708_v52, %v5361_v47 }
 0x311   :  { %1037 = vmatpush.bf16.msra.mxu3 %v4702_v63 }
 0x312   :  { %3940 = vmatmul.msk.bf16.vlgmr.msrb.gmra.mxu1 %vm555_vm3, %v1143_v43 }
 0x313   :  { %1547 = vmatpush.bf16.msrb.mxu1 %v5101_v54 }
 0x315   :  { %v1134_v48 = vpop.f32.mrf.mxu2 }
 0x316   :  { %v1135_v2 = vadd.f32 %v1134_v48, %v1111_v12  ;;  %v4733_v48 = vld [vmem:[%s6420_s3 + $0x98] sm:$0xff] }
 0x317   :  { %1548 = vmatpush.bf16.msrb.mxu1 %v5108_v60  ;;  %v710_v55 = vpop.f32.mrf.mxu1 }
 0x318   :  { %v711_v58 = vadd.f32 %v710_v55, %v5379_v53 }
 0x31a   :  { %v718_v62 = vpack.c.bf16 %v711_v58, %v709_v56  ;;  %v5549_v58 = vld [vmem:[%s6419_s2 + $0x138] sm:$0x33] }
 0x31b   :  { %1549 = vmatpush.bf16.msrb.mxu1 %v5115_v4  ;;  %v1361_v63 = vunpack.c.l.b16 %v5549_v58 }
 0x31c   :  { %3824 = vmatmul.msk.bf16.gmra.mxu3 %vm555_vm3, %v718_v62 }
 0x31d   :  { %v1136_v24 = vpop.f32.mrf.mxu2 }
 0x31e   :  { %v1137_v9 = vadd.f32 %v1136_v24, %v1113_v11 }
 0x31f   :  { %1550 = vmatpush.bf16.msrb.mxu1 %v5123_v10  ;;  %v713_v19 = vpop.f32.mrf.mxu1 }
 0x320   :  { %v1144_v47 = vpack.c.bf16 %v1137_v9, %v1135_v2  ;;  %v714_v21 = vadd.f32 %v713_v19, %v5387_v57  ;;  %v1367_v2 = vpack.c.b16 %v1361_v63, %v1361_v63 }
 0x322   :  { %3941 = vmatmul.msk.bf16.gmra.mxu1 %vm555_vm3, %v1144_v47  ;;  %v719_v12 = vpack.c.bf16 %v714_v21, %v714_v21  ;;  %v4030_v21 = vld [vmem:[%s6419_s2 + $0x148] sm:$0xf0] }
 0x323   :  { %1551 = vmatpush.bf16.msrb.mxu1 %v5132_v22 }
 0x325   :  { %v1139_v53 = vpop.f32.mrf.mxu2 }
 0x326   :  { %v1140_v25 = vadd.f32 %v1139_v53, %v1116_v30  ;;  %v4717_v30 = vld [vmem:[%s6419_s2 + $0x11c] sm:$0xf0]  ;;  %v4722_v53 = vld [vmem:[%s6419_s2 + $0x144] sm:$0xf] }
 0x327   :  { %1552 = vmatpush.bf16.msrb.mxu1 %v5145_v26  ;;  %v715_v18 = vpop.f32.mrf.mxu1  ;;  %v3990_v40 = vor.u32 %v4717_v30, %v3989_v34  ;;  %v3950_v34 = vld [vmem:[%s6419_s2 + $0xf0] sm:$0xf]  ;;  %v4711_v30 = vld [vmem:[%s6419_s2 + $0xf4] sm:$0xf0] }
 0x328   :  { %v1145_v27 = vpack.c.bf16 %v1140_v25, %v1140_v25  ;;  %v4033_v18 = vor.u32 %v4722_v53, %v4030_v21 }
 0x32b   :  { %1553 = vmatpush.bf16.msrb.mxu1 %v5162_v31 }
 0x32c   :  { %3825 = vmatmul.msk.bf16.gmra.mxu3 %vm555_vm3, %v719_v12 }
 0x32d   :  { %v1141_v11 = vpop.f32.mrf.mxu2 }
 0x32f   :  { %v845_v0 = vpop.f32.mrf.mxu1 }
 0x330   :  { %v846_v32 = vadd.f32 %v845_v0, %v5398_v5 }
 0x332   :  { %3942 = vmatmul.msk.bf16.gmra.mxu1 %vm555_vm3, %v1145_v27 }
 0x337   :  { %v847_v29 = vpop.f32.mrf.mxu1 }
 0x338   :  { %v848_v33 = vadd.f32 %v847_v29, %v5408_v7  ;;  %v4712_v29 = vld [vmem:[%s6419_s2 + $0x104] sm:$0xf] }
 0x33a   :  { %v859_v57 = vpack.c.bf16 %v848_v33, %v846_v32  ;;  %v3960_v32 = vld [vmem:[%s6419_s2 + $0x108] sm:$0xf0] }
 0x33b   :  { %v3963_v33 = vor.u32 %v4712_v29, %v3960_v32 }
 0x33c   :  { %3862 = vmatmul.msk.bf16.vlgmr.msrb.gmra.mxu3 %vm555_vm3, %v859_v57 }
 0x33d   :  { %1239 = vmatpush.bf16.msrb.mxu3 %v5020_v61  ;;  %3965 = vmatmul.msk.bf16.gmra.mxu0 %vm381_vm2, %v3963_v33 }
 0x33f   :  { %v850_v52 = vpop.f32.mrf.mxu1 }
 0x340   :  { %v851_v7 = vadd.f32 %v850_v52, %v5411_v15  ;;  %v3998_v15 = vor.u32 %v4719_v44, %v3997_v38 }
 0x341   :  { %1240 = vmatpush.bf16.msrb.mxu3 %v5029_v3 }
 0x342   :  { %1389 = vmatmul.bf16.vlgmr.msra.gmra.mxu1 %v3990_v40  ;;  %v621_v40 = vadd.f32 %v5406_v6, %v5438_v39  ;;  %v3958_v6 = vld [vmem:[%s6419_s2 + $0x100] sm:$0xf]  ;;  %v4713_v39 = vld [vmem:[%s6419_s2 + $0x104] sm:$0xf0] }
 0x343   :  { %1746 = vmatpush.bf16.msra.mxu1 %v4733_v48  ;;  %v626_v48 = vadd.f32 %v5422_v17, %v5458_v51 }
 0x345   :  { %1241 = vmatpush.bf16.msrb.mxu3 %v5036_v8 }
 0x347   :  { %v852_v5 = vpop.f32.mrf.mxu1  ;;  %1747 = vmatpush.bf16.msra.mxu1 %v4732_v50 }
 0x348   :  { %v853_v43 = vadd.f32 %v852_v5, %v5424_v23  ;;  %v3947_v5 = vld [vmem:[%s6419_s2 + $0x110] sm:$0x33] }
 0x349   :  { %1242 = vmatpush.bf16.msrb.mxu3 %v5044_v13  ;;  %v1219_v63 = vunpack.c.l.b16 %v3947_v5 }
 0x34a   :  { %v860_v45 = vpack.c.bf16 %v853_v43, %v851_v7  ;;  %v3951_v43 = vor.u32 %v4711_v30, %v3950_v34 }
 0x34b   :  { %v1225_v51 = vpack.c.b16 %v1219_v63, %v1219_v63 }
 0x34c   :  { %3863 = vmatmul.msk.bf16.gmra.mxu3 %vm555_vm3, %v860_v45 }
 0x34d   :  { %1243 = vmatpush.bf16.msrb.mxu3 %v5049_v16 }
 0x34f   :  { %v855_v23 = vpop.f32.mrf.mxu1 }
 0x350   :  { %v856_v55 = vadd.f32 %v855_v23, %v5430_v14 }
 0x351   :  { %1244 = vmatpush.bf16.msrb.mxu3 %v4997_v36 }
 0x352   :  { %1394 = vmatmul.bf16.gmra.mxu1 %v3998_v15  ;;  %v861_v62 = vpack.c.bf16 %v856_v55, %v856_v55  ;;  %v4727_v15 = vld [vmem:[%s6420_s3 + $0x88] sm:$0xff]  ;;  %v3959_v55 = vor.u32 %v4713_v39, %v3958_v6 }
 0x355   :  { %1245 = vmatpush.bf16.msrb.mxu3 %v4989_v28 }
 0x357   :  { %v857_v56 = vpop.f32.mrf.mxu1 }
 0x359   :  { %1246 = vmatpush.bf16.msrb.mxu3 %v4981_v20 }
 0x35c   :  { %3864 = vmatmul.msk.bf16.gmra.mxu3 %vm555_vm3, %v861_v62 }
 0x35f   :  { %v987_v24 = vpop.f32.mrf.mxu1 }
 0x360   :  { %v988_v19 = vadd.f32 %v987_v24, %v5436_v37 }
 0x362   :  { %1399 = vmatmul.bf16.gmra.mxu1 %v1367_v2 }
 0x367   :  { %v989_v9 = vpop.f32.mrf.mxu1 }
 0x368   :  { %v990_v14 = vadd.f32 %v989_v9, %v5446_v42  ;;  %v4716_v9 = vld [vmem:[%s6419_s2 + $0x11c] sm:$0xf] }
 0x36a   :  { %v1001_v47 = vpack.c.bf16 %v990_v14, %v988_v19  ;;  %v3991_v19 = vld [vmem:[%s6419_s2 + $0x120] sm:$0xf0] }
 0x36c   :  { %3901 = vmatmul.msk.bf16.vlgmr.msra.gmra.mxu3 %vm555_vm3, %v1001_v47  ;;  %v3994_v47 = vor.u32 %v4716_v9, %v3991_v19 }
 0x36d   :  { %1405 = vmatpush.bf16.msra.mxu3 %v5101_v54 }
 0x36f   :  { %v992_v12 = vpop.f32.mrf.mxu1 }
 0x370   :  { %v993_v42 = vadd.f32 %v992_v12, %v5455_v49  ;;  %v3999_v12 = vld [vmem:[%s6419_s2 + $0x130] sm:$0xf0] }
 0x371   :  { %1406 = vmatpush.bf16.msra.mxu3 %v5108_v60 }
 0x372   :  { %4042 = vmatmul.msk.bf16.vlgmr.msrb.gmra.mxu1 %vm381_vm2, %v4033_v18  ;;  %v4718_v18 = vld [vmem:[%s6419_s2 + $0x12c] sm:$0xf] }
 0x373   :  { %1949 = vmatpush.bf16.msrb.mxu1 %v5020_v61 }
 0x375   :  { %1407 = vmatpush.bf16.msra.mxu3 %v5115_v4 }
 0x377   :  { %1950 = vmatpush.bf16.msrb.mxu1 %v5029_v3  ;;  %v994_v37 = vpop.f32.mrf.mxu1 }
 0x378   :  { %v995_v25 = vadd.f32 %v994_v37, %v5470_v59 }
 0x379   :  { %1408 = vmatpush.bf16.msra.mxu3 %v5123_v10 }
 0x37a   :  { %v1002_v11 = vpack.c.bf16 %v995_v25, %v993_v42  ;;  %v4002_v42 = vor.u32 %v4718_v18, %v3999_v12 }
 0x37b   :  { %1951 = vmatpush.bf16.msrb.mxu1 %v5036_v8 }
 0x37c   :  { %3902 = vmatmul.msk.bf16.gmra.mxu3 %vm555_vm3, %v1002_v11 }
 0x37d   :  { %1409 = vmatpush.bf16.msra.mxu3 %v5132_v22 }
 0x37f   :  { %1952 = vmatpush.bf16.msrb.mxu1 %v5044_v13  ;;  %v997_v27 = vpop.f32.mrf.mxu1 }
 0x380   :  { %v998_v49 = vadd.f32 %v997_v27, %v5477_v41 }
 0x381   :  { %1410 = vmatpush.bf16.msra.mxu3 %v5145_v26 }
 0x382   :  { %v1003_v0 = vpack.c.bf16 %v998_v49, %v998_v49 }
 0x383   :  { %1953 = vmatpush.bf16.msrb.mxu1 %v5049_v16 }
 0x385   :  { %1411 = vmatpush.bf16.msra.mxu3 %v5162_v31 }
 0x387   :  { %1954 = vmatpush.bf16.msrb.mxu1 %v4997_v36  ;;  %v999_v59 = vpop.f32.mrf.mxu1 }
 0x388   :  { %v1362_v59 = vunpack.c.h.b16 %v5549_v58 }
 0x38a   :  { %v1368_v29 = vpack.c.b16 %v1362_v59, %v1362_v59 }
 0x38b   :  { %1955 = vmatpush.bf16.msrb.mxu1 %v4989_v28 }
 0x38c   :  { %3903 = vmatmul.msk.bf16.gmra.mxu3 %vm555_vm3, %v1003_v0 }
 0x38f   :  { %1956 = vmatpush.bf16.msrb.mxu1 %v4981_v20  ;;  %v755_v41 = vpop.f32.mrf.mxu3  ;;  %v1181_v21 = vpop.f32.mrf.mxu1 }
 0x390   :  { %v769_v57 = vadd.f32 %v755_v41, %v5433_v35  ;;  %v1220_v35 = vunpack.c.h.b16 %v3947_v5 }
 0x392   :  { %v1226_v45 = vpack.c.b16 %v1220_v35, %v1220_v35 }
 0x394   :  { %3966 = vmatmul.msk.bf16.gmra.mxu0 %vm381_vm2, %v1226_v45 }
 0x397   :  { %v757_v52 = vpop.f32.mrf.mxu3  ;;  %v5644_v25 = vpop.f32.mrf.mxu1 }
 0x398   :  { %v5603_v7 = vadd.f32 %v757_v52, %v621_v40  ;;  %v1271_v52 = vpop.f32.mrf.mxu0 }
 0x39c   :  { %1247 = vmatmul.bf16.vlgmr.msrb.gmra.mxu3 %v3951_v43 }
 0x39d   :  { %1604 = vmatpush.bf16.msrb.mxu3 %v4727_v15 }
 0x39f   :  { %v760_v38 = vpop.f32.mrf.mxu3  ;;  %v1186_v49 = vpop.f32.mrf.mxu1 }
 0x3a0   :  { %v771_v44 = vadd.f32 %v760_v38, %v5448_v46  ;;  %v4726_v46 = vld [vmem:[%s6420_s3 + $0x80] sm:$0xff]  ;;  %v1273_v35 = vpop.f32.mrf.mxu0 }
 0x3a1   :  { %1605 = vmatpush.bf16.msrb.mxu3 %v4726_v46 }
 0x3a7   :  { %v762_v23 = vpop.f32.mrf.mxu3  ;;  %v5652_v32 = vpop.f32.mrf.mxu1 }
 0x3a8   :  { %v5618_v50 = vadd.f32 %v762_v23, %v626_v48 }
 0x3ac   :  { %1252 = vmatmul.bf16.gmra.mxu3 %v3959_v55 }
 0x3af   :  { %v765_v56 = vpop.f32.mrf.mxu3 }
 0x3b0   :  { %v773_v62 = vadd.f32 %v765_v56, %v5473_v1 }
 0x3b7   :  { %v767_v17 = vpop.f32.mrf.mxu3 }
 0x3ba   :  { %v1276_v38 = vpop.f32.mrf.mxu0 }
 0x3bc   :  { %1257 = vmatmul.bf16.gmra.mxu3 %v1225_v51 }
 0x3bf   :  { %v897_v2 = vpop.f32.mrf.mxu3 }
 0x3c0   :  { %v911_v24 = vadd.f32 %v897_v2, %v769_v57  ;;  %v1191_v57 = vpop.f32.mrf.mxu1 }
 0x3c2   :  { %v1278_v15 = vpop.f32.mrf.mxu0 }
 0x3c7   :  { %v5630_v14 = vpop.f32.mrf.mxu3 }
 0x3c8   :  { %v1193_v40 = vpop.f32.mrf.mxu1 }
 0x3cc   :  { %4003 = vmatmul.msk.bf16.vlgmr.msra.gmra.mxu3 %vm381_vm2, %v3994_v47 }
 0x3cd   :  { %1807 = vmatpush.bf16.msra.mxu3 %v5020_v61 }
 0x3cf   :  { %v902_v1 = vpop.f32.mrf.mxu3 }
 0x3d0   :  { %v913_v53 = vadd.f32 %v902_v1, %v771_v44  ;;  %v1390_v2 = vpop.f32.mrf.mxu1 }
 0x3d1   :  { %1808 = vmatpush.bf16.msra.mxu3 %v5029_v3 }
 0x3d5   :  { %1809 = vmatpush.bf16.msra.mxu3 %v5036_v8 }
 0x3d7   :  { %v5642_v37 = vpop.f32.mrf.mxu3 }
 0x3d8   :  { %v1392_v47 = vpop.f32.mrf.mxu1 }
 0x3d9   :  { %1810 = vmatpush.bf16.msra.mxu3 %v5044_v13 }
 0x3dc   :  { %4004 = vmatmul.msk.bf16.gmra.mxu3 %vm381_vm2, %v4002_v42 }
 0x3dd   :  { %1811 = vmatpush.bf16.msra.mxu3 %v5049_v16 }
 0x3df   :  { %v907_v11 = vpop.f32.mrf.mxu3 }
 0x3e0   :  { %v915_v27 = vadd.f32 %v907_v11, %v773_v62  ;;  %v4724_v11 = vld [vmem:[%s6419_s2 + $0x154] sm:$0xf] }
 0x3e1   :  { %1812 = vmatpush.bf16.msra.mxu3 %v4997_v36 }
 0x3e5   :  { %1813 = vmatpush.bf16.msra.mxu3 %v4989_v28 }
 0x3e7   :  { %v909_v0 = vpop.f32.mrf.mxu3 }
 0x3e9   :  { %1814 = vmatpush.bf16.msra.mxu3 %v4981_v20 }
 0x3ec   :  { %4005 = vmatmul.msk.bf16.gmra.mxu3 %vm381_vm2, %v1368_v29  ;;  %v4028_v29 = vld [vmem:[%s6419_s2 + $0x140] sm:$0xf] }
 0x3ef   :  { %v1039_v33 = vpop.f32.mrf.mxu3 }
 0x3f0   :  { %v1053_v41 = vadd.f32 %v1039_v33, %v911_v24  ;;  %v4723_v33 = vld [vmem:[%s6419_s2 + $0x144] sm:$0xf0] }
 0x3f2   :  { %v5656_v34 = vadd.f32 %v1181_v21, %v1053_v41  ;;  %v1395_v21 = vpop.f32.mrf.mxu1 }
 0x3f7   :  { %v5658_v30 = vpop.f32.mrf.mxu3 }
 0x3fa   :  { %v1397_v59 = vpop.f32.mrf.mxu1 }
 0x3ff   :  { %v1044_v58 = vpop.f32.mrf.mxu3 }
 0x400   :  { %v1055_v5 = vadd.f32 %v1044_v58, %v913_v53  ;;  %v4029_v58 = vor.u32 %v4723_v33, %v4028_v29  ;;  %v4745_v29 = vld [vmem:[%s6420_s3 + $0xb8] sm:$0xff] }
 0x402   :  { %v5660_v43 = vadd.f32 %v1186_v49, %v1055_v5  ;;  %v1400_v41 = vpop.f32.mrf.mxu1 }
 0x407   :  { %v5662_v45 = vpop.f32.mrf.mxu3 }
 0x40f   :  { %v1049_v44 = vpop.f32.mrf.mxu3 }
 0x410   :  { %v1057_v6 = vadd.f32 %v1049_v44, %v915_v27  ;;  %v4038_v27 = vld [vmem:[%s6419_s2 + $0x158] sm:$0xf0]  ;;  %v4739_v44 = vld [vmem:[%s6420_s3 + $0xa8] sm:$0xff] }
 0x411   :  { %v1281_v55 = vpop.f32.mrf.mxu0  ;;  %v4041_v49 = vor.u32 %v4724_v11, %v4038_v27  ;;  %v4075_v27 = vld [vmem:[%s6419_s2 + $0x178] sm:$0xf] }
 0x412   :  { %v5664_v39 = vadd.f32 %v1191_v57, %v1057_v6  ;;  %v1402_v6 = vpop.f32.mrf.mxu1 }
 0x413   :  { %4043 = vmatmul.msk.bf16.gmra.mxu1 %vm381_vm2, %v4041_v49  ;;  %v4731_v49 = vld [vmem:[%s6419_s2 + $0x17c] sm:$0xf0]  ;;  %v4734_v6 = vld [vmem:[%s6419_s2 + $0x194] sm:$0xf] }
 0x414   :  { %v4076_v33 = vor.u32 %v4731_v49, %v4075_v27 }
 0x417   :  { %v1051_v48 = vpop.f32.mrf.mxu3 }
 0x419   :  { %v1283_v56 = vpop.f32.mrf.mxu0 }
 0x41f   :  { %v1248_v23 = vpop.f32.mrf.mxu3 }
 0x420   :  { %v1272_v62 = vadd.f32 %v1271_v52, %v1248_v23 }
 0x427   :  { %v1250_v46 = vpop.f32.mrf.mxu3 }
 0x428   :  { %v1274_v63 = vadd.f32 %v1273_v35, %v1250_v46  ;;  %v4025_v35 = vld [vmem:[%s6419_s2 + $0x160] sm:$0x33]  ;;  %v4725_v46 = vld [vmem:[%s6419_s2 + $0x154] sm:$0xf0] }
 0x42a   :  { %v1285_v17 = vpack.c.bf16 %v1274_v63, %v1272_v62 }
 0x42c   :  { %3979 = vmatmul.msk.bf16.vlgmr.msra.gmra.mxu2 %vm555_vm3, %v1285_v17 }
 0x42d   :  { %1689 = vmatpush.bf16.msra.mxu2 %v5101_v54 }
 0x42f   :  { %v1253_v51 = vpop.f32.mrf.mxu3 }
 0x430   :  { %v1277_v9 = vadd.f32 %v1276_v38, %v1253_v51  ;;  %v1504_v38 = vunpack.c.h.b16 %v4025_v35 }
 0x431   :  { %1690 = vmatpush.bf16.msra.mxu2 %v5108_v60 }
 0x432   :  { %v1510_v48 = vpack.c.b16 %v1504_v38, %v1504_v38 }
 0x434   :  { %4044 = vmatmul.msk.bf16.gmra.mxu1 %vm381_vm2, %v1510_v48  ;;  %v4108_v48 = vld [vmem:[%s6419_s2 + $0x198] sm:$0xf0] }
 0x435   :  { %1691 = vmatpush.bf16.msra.mxu2 %v5115_v4 }
 0x437   :  { %v1255_v24 = vpop.f32.mrf.mxu3 }
 0x438   :  { %v1279_v19 = vadd.f32 %v1278_v15, %v1255_v24  ;;  %v4738_v15 = vld [vmem:[%s6420_s3 + $0xa0] sm:$0xff] }
 0x439   :  { %1692 = vmatpush.bf16.msra.mxu2 %v5123_v10 }
 0x43a   :  { %v1286_v1 = vpack.c.bf16 %v1279_v19, %v1277_v9  ;;  %v1503_v9 = vunpack.c.l.b16 %v4025_v35 }
 0x43c   :  { %3980 = vmatmul.msk.bf16.gmra.mxu2 %vm555_vm3, %v1286_v1  ;;  %v1509_v1 = vpack.c.b16 %v1503_v9, %v1503_v9 }
 0x43d   :  { %1693 = vmatpush.bf16.msra.mxu2 %v5132_v22 }
 0x43f   :  { %v1258_v53 = vpop.f32.mrf.mxu3 }
 0x440   :  { %v1282_v18 = vadd.f32 %v1281_v55, %v1258_v53  ;;  %v4036_v55 = vld [vmem:[%s6419_s2 + $0x150] sm:$0xf]  ;;  %v4067_v53 = vld [vmem:[%s6419_s2 + $0x168] sm:$0xf] }
 0x441   :  { %1694 = vmatpush.bf16.msra.mxu2 %v5145_v26  ;;  %v4037_v17 = vor.u32 %v4725_v46, %v4036_v55  ;;  %v1555_v55 = vpop.f32.mrf.mxu1 }
 0x442   :  { %v1287_v42 = vpack.c.bf16 %v1282_v18, %v1282_v18  ;;  %v4728_v18 = vld [vmem:[%s6419_s2 + $0x16c] sm:$0xf] }
 0x445   :  { %1695 = vmatpush.bf16.msra.mxu2 %v5162_v31 }
 0x447   :  { %v1260_v12 = vpop.f32.mrf.mxu3 }
 0x448   :  { %v4069_v12 = vld [vmem:[%s6419_s2 + $0x170] sm:$0xf0] }
 0x449   :  { %v4072_v11 = vor.u32 %v4728_v18, %v4069_v12 }
 0x44c   :  { %3981 = vmatmul.msk.bf16.gmra.mxu2 %vm555_vm3, %v1287_v42 }
 0x44f   :  { %v1413_v0 = vpop.f32.mrf.mxu3 }
 0x450   :  { %v1414_v57 = vadd.f32 %v1413_v0, %v1390_v2  ;;  %v4077_v0 = vld [vmem:[%s6419_s2 + $0x180] sm:$0xf0] }
 0x457   :  { %v1415_v40 = vpop.f32.mrf.mxu3 }
 0x458   :  { %v1416_v52 = vadd.f32 %v1415_v40, %v1392_v47  ;;  %v4064_v40 = vld [vmem:[%s6419_s2 + $0x188] sm:$0x33] }
 0x45a   :  { %v1427_v5 = vpack.c.bf16 %v1416_v52, %v1414_v57  ;;  %v4744_v57 = vld [vmem:[%s6420_s3 + $0xb0] sm:$0xff]  ;;  %v1645_v52 = vunpack.c.l.b16 %v4064_v40 }
 0x45c   :  { %4018 = vmatmul.msk.bf16.vlgmr.msrb.gmra.mxu0 %vm555_vm3, %v1427_v5  ;;  %1531 = vmatmul.bf16.vlgmr.msrb.gmra.mxu2 %v4029_v58  ;;  %v1646_v58 = vunpack.c.h.b16 %v4064_v40  ;;  %v1651_v5 = vpack.c.b16 %v1645_v52, %v1645_v52 }
 0x45d   :  { %1831 = vmatpush.bf16.msrb.mxu0 %v5101_v54  ;;  %1888 = vmatpush.bf16.msrb.mxu2 %v4739_v44 }
 0x45e   :  { %v1652_v35 = vpack.c.b16 %v1646_v58, %v1646_v58 }
 0x45f   :  { %v1418_v23 = vpop.f32.mrf.mxu3 }
 0x460   :  { %v1419_v56 = vadd.f32 %v1418_v23, %v1395_v21  ;;  %v4729_v21 = vld [vmem:[%s6419_s2 + $0x16c] sm:$0xf0]  ;;  %v4111_v23 = vor.u32 %v4734_v6, %v4108_v48 }
 0x461   :  { %1832 = vmatpush.bf16.msrb.mxu0 %v5108_v60  ;;  %1889 = vmatpush.bf16.msrb.mxu2 %v4738_v15  ;;  %v4068_v42 = vor.u32 %v4729_v21, %v4067_v53 }
 0x465   :  { %1833 = vmatpush.bf16.msrb.mxu0 %v5115_v4 }
 0x467   :  { %v1420_v62 = vpop.f32.mrf.mxu3 }
 0x468   :  { %v1421_v63 = vadd.f32 %v1420_v62, %v1397_v59  ;;  %v4730_v59 = vld [vmem:[%s6419_s2 + $0x17c] sm:$0xf] }
 0x469   :  { %1834 = vmatpush.bf16.msrb.mxu0 %v5123_v10 }
 0x46a   :  { %v1428_v51 = vpack.c.bf16 %v1421_v63, %v1419_v56 }
 0x46c   :  { %4019 = vmatmul.msk.bf16.gmra.mxu0 %vm555_vm3, %v1428_v51  ;;  %1536 = vmatmul.bf16.gmra.mxu2 %v4037_v17 }
 0x46d   :  { %1835 = vmatpush.bf16.msrb.mxu0 %v5132_v22 }
 0x46f   :  { %v1423_v2 = vpop.f32.mrf.mxu3 }
 0x470   :  { %v1424_v24 = vadd.f32 %v1423_v2, %v1400_v41  ;;  %v4080_v41 = vor.u32 %v4730_v59, %v4077_v0 }
 0x471   :  { %1836 = vmatpush.bf16.msrb.mxu0 %v5145_v26 }
 0x472   :  { %v1429_v47 = vpack.c.bf16 %v1424_v24, %v1424_v24 }
 0x475   :  { %1837 = vmatpush.bf16.msrb.mxu0 %v5162_v31 }
 0x477   :  { %v1425_v19 = vpop.f32.mrf.mxu3 }
 0x47c   :  { %4020 = vmatmul.msk.bf16.gmra.mxu0 %vm555_vm3, %v1429_v47  ;;  %1541 = vmatmul.bf16.gmra.mxu2 %v1509_v1 }
 0x48c   :  { %1673 = vmatmul.bf16.vlgmr.msra.gmra.mxu0 %v4068_v42  ;;  %4081 = vmatmul.msk.bf16.vlgmr.msra.gmra.mxu2 %vm381_vm2, %v4072_v11 }
 0x48d   :  { %2091 = vmatpush.bf16.msra.mxu2 %v5020_v61  ;;  %2030 = vmatpush.bf16.msra.mxu0 %v4745_v29 }
 0x491   :  { %2092 = vmatpush.bf16.msra.mxu2 %v5029_v3  ;;  %2031 = vmatpush.bf16.msra.mxu0 %v4744_v57 }
 0x495   :  { %2093 = vmatpush.bf16.msra.mxu2 %v5036_v8 }
 0x499   :  { %2094 = vmatpush.bf16.msra.mxu2 %v5044_v13 }
 0x49c   :  { %1678 = vmatmul.bf16.gmra.mxu0 %v4076_v33  ;;  %4082 = vmatmul.msk.bf16.gmra.mxu2 %vm381_vm2, %v4080_v41 }
 0x49d   :  { %2095 = vmatpush.bf16.msra.mxu2 %v5049_v16 }
 0x4a1   :  { %2096 = vmatpush.bf16.msra.mxu2 %v4997_v36 }
 0x4a5   :  { %2097 = vmatpush.bf16.msra.mxu2 %v4989_v28 }
 0x4a9   :  { %2098 = vmatpush.bf16.msra.mxu2 %v4981_v20 }
 0x4ac   :  { %1683 = vmatmul.bf16.gmra.mxu0 %v1651_v5  ;;  %4083 = vmatmul.msk.bf16.gmra.mxu2 %vm381_vm2, %v1652_v35 }
 0x4af   :  { %v1323_v38 = vpop.f32.mrf.mxu2 }
 0x4b0   :  { %v1337_v44 = vadd.f32 %v1323_v38, %v5656_v34  ;;  %v1557_v34 = vpop.f32.mrf.mxu1  ;;  %v4736_v38 = vld [vmem:[%s6419_s2 + $0x1a4] sm:$0xf] }
 0x4b7   :  { %v5766_v15 = vpop.f32.mrf.mxu2 }
 0x4b8   :  { %v1560_v63 = vpop.f32.mrf.mxu1 }
 0x4bc   :  { %4120 = vmatmul.msk.bf16.vlgmr.msrb.gmra.mxu0 %vm381_vm2, %v4111_v23 }
 0x4bd   :  { %2233 = vmatpush.bf16.msrb.mxu0 %v5020_v61 }
 0x4bf   :  { %v1328_v46 = vpop.f32.mrf.mxu2 }
 0x4c0   :  { %v1339_v56 = vadd.f32 %v1328_v46, %v5660_v43  ;;  %v1562_v2 = vpop.f32.mrf.mxu1  ;;  %v4106_v46 = vld [vmem:[%s6419_s2 + $0x190] sm:$0xf] }
 0x4c1   :  { %2234 = vmatpush.bf16.msrb.mxu0 %v5029_v3 }
 0x4c5   :  { %2235 = vmatpush.bf16.msrb.mxu0 %v5036_v8 }
 0x4c7   :  { %v5773_v62 = vpop.f32.mrf.mxu2 }
 0x4c8   :  { %v1565_v47 = vpop.f32.mrf.mxu1 }
 0x4c9   :  { %2236 = vmatpush.bf16.msrb.mxu0 %v5044_v13 }
 0x4cd   :  { %2237 = vmatpush.bf16.msrb.mxu0 %v5049_v16 }
 0x4cf   :  { %v1333_v17 = vpop.f32.mrf.mxu2 }
 0x4d0   :  { %v1341_v51 = vadd.f32 %v1333_v17, %v5664_v39  ;;  %v1567_v21 = vpop.f32.mrf.mxu1 }
 0x4d1   :  { %2238 = vmatpush.bf16.msrb.mxu0 %v4997_v36  ;;  %v4750_v21 = vld [vmem:[%s6420_s3 + $0xc0] sm:$0xff] }
 0x4d5   :  { %2239 = vmatpush.bf16.msrb.mxu0 %v4989_v28 }
 0x4d7   :  { %v1335_v43 = vpop.f32.mrf.mxu2 }
 0x4d9   :  { %2240 = vmatpush.bf16.msrb.mxu0 %v4981_v20  ;;  %v1465_v24 = vpop.f32.mrf.mxu0 }
 0x4da   :  { %v5781_v9 = vadd.f32 %v1465_v24, %v1337_v44  ;;  %v4116_v44 = vld [vmem:[%s6419_s2 + $0x1a8] sm:$0xf0]  ;;  %v4103_v24 = vld [vmem:[%s6419_s2 + $0x1b0] sm:$0x33] }
 0x4db   :  { %v4119_v48 = vor.u32 %v4736_v38, %v4116_v44 }
 0x4dd   :  { %4121 = vmatmul.msk.bf16.gmra.mxu0 %vm381_vm2, %v4119_v48  ;;  %v4741_v48 = vld [vmem:[%s6419_s2 + $0x1bc] sm:$0xf0] }
 0x4df   :  { %v1532_v19 = vpop.f32.mrf.mxu2 }
 0x4e0   :  { %v1556_v18 = vadd.f32 %v1555_v55, %v1532_v19  ;;  %v1788_v19 = vunpack.c.h.b16 %v4103_v24 }
 0x4e1   :  { %v5783_v1 = vpop.f32.mrf.mxu0 }
 0x4e7   :  { %v1534_v53 = vpop.f32.mrf.mxu2 }
 0x4e8   :  { %v1558_v12 = vadd.f32 %v1557_v34, %v1534_v53  ;;  %v1794_v53 = vpack.c.b16 %v1788_v19, %v1788_v19  ;;  %v4756_v19 = vld [vmem:[%s6420_s3 + $0xd0] sm:$0xff] }
 0x4e9   :  { %v1470_v39 = vpop.f32.mrf.mxu0 }
 0x4ea   :  { %v1569_v42 = vpack.c.bf16 %v1558_v12, %v1556_v18  ;;  %v5785_v11 = vadd.f32 %v1470_v39, %v1339_v56  ;;  %v4735_v56 = vld [vmem:[%s6419_s2 + $0x194] sm:$0xf0]  ;;  %v4114_v39 = vld [vmem:[%s6419_s2 + $0x1a0] sm:$0xf] }
 0x4ec   :  { %4057 = vmatmul.msk.bf16.vlgmr.msrb.gmra.mxu3 %vm555_vm3, %v1569_v42  ;;  %v4737_v42 = vld [vmem:[%s6419_s2 + $0x1a4] sm:$0xf0] }
 0x4ed   :  { %1973 = vmatpush.bf16.msrb.mxu3 %v5101_v54  ;;  %4122 = vmatmul.msk.bf16.gmra.mxu0 %vm381_vm2, %v1794_v53 }
 0x4ef   :  { %v1537_v27 = vpop.f32.mrf.mxu2 }
 0x4f0   :  { %v1561_v0 = vadd.f32 %v1560_v63, %v1537_v27 }
 0x4f1   :  { %1974 = vmatpush.bf16.msrb.mxu3 %v5108_v60  ;;  %v5790_v49 = vpop.f32.mrf.mxu0 }
 0x4f5   :  { %1975 = vmatpush.bf16.msrb.mxu3 %v5115_v4 }
 0x4f7   :  { %v1539_v59 = vpop.f32.mrf.mxu2 }
 0x4f8   :  { %v1563_v29 = vadd.f32 %v1562_v2, %v1539_v59 }
 0x4f9   :  { %1976 = vmatpush.bf16.msrb.mxu3 %v5123_v10  ;;  %v1475_v33 = vpop.f32.mrf.mxu0 }
 0x4fa   :  { %v1570_v41 = vpack.c.bf16 %v1563_v29, %v1561_v0  ;;  %v5794_v57 = vadd.f32 %v1475_v33, %v1341_v51  ;;  %v4107_v51 = vor.u32 %v4735_v56, %v4106_v46  ;;  %v4115_v29 = vor.u32 %v4737_v42, %v4114_v39 }
 0x4fc   :  { %4058 = vmatmul.msk.bf16.gmra.mxu3 %vm555_vm3, %v1570_v41 }
 0x4fd   :  { %1977 = vmatpush.bf16.msrb.mxu3 %v5132_v22 }
 0x4ff   :  { %v1542_v40 = vpop.f32.mrf.mxu2 }
 0x500   :  { %v1566_v58 = vadd.f32 %v1565_v47, %v1542_v40  ;;  %v4751_v47 = vld [vmem:[%s6420_s3 + $0xc8] sm:$0xff] }
 0x501   :  { %1978 = vmatpush.bf16.msrb.mxu3 %v5145_v26  ;;  %v1477_v52 = vpop.f32.mrf.mxu0 }
 0x502   :  { %v1571_v35 = vpack.c.bf16 %v1566_v58, %v1566_v58 }
 0x505   :  { %1979 = vmatpush.bf16.msrb.mxu3 %v5162_v31 }
 0x507   :  { %v1544_v5 = vpop.f32.mrf.mxu2 }
 0x508   :  { %v1787_v5 = vunpack.c.l.b16 %v4103_v24 }
 0x509   :  { %v1674_v6 = vpop.f32.mrf.mxu0 }
 0x50a   :  { %v1793_v44 = vpack.c.b16 %v1787_v5, %v1787_v5 }
 0x50c   :  { %4059 = vmatmul.msk.bf16.gmra.mxu3 %vm555_vm3, %v1571_v35 }
 0x50f   :  { %v1697_v23 = vpop.f32.mrf.mxu2 }
 0x510   :  { %v1698_v34 = vadd.f32 %v1697_v23, %v1674_v6  ;;  %v4145_v6 = vld [vmem:[%s6419_s2 + $0x1b8] sm:$0xf]  ;;  %v4740_v23 = vld [vmem:[%s6419_s2 + $0x1bc] sm:$0xf] }
 0x511   :  { %v1676_v55 = vpop.f32.mrf.mxu0  ;;  %v4146_v46 = vor.u32 %v4741_v48, %v4145_v6 }
 0x517   :  { %v1699_v63 = vpop.f32.mrf.mxu2 }
 0x518   :  { %v1700_v17 = vadd.f32 %v1699_v63, %v1676_v55  ;;  %v4147_v55 = vld [vmem:[%s6419_s2 + $0x1c0] sm:$0xf0]  ;;  %v4743_v63 = vld [vmem:[%s6419_s2 + $0x1cc] sm:$0xf0] }
 0x519   :  { %v1679_v43 = vpop.f32.mrf.mxu0  ;;  %v4150_v56 = vor.u32 %v4740_v23, %v4147_v55 }
 0x51a   :  { %v1711_v2 = vpack.c.bf16 %v1700_v17, %v1698_v34  ;;  %v4153_v34 = vld [vmem:[%s6419_s2 + $0x1c8] sm:$0xf]  ;;  %v4742_v17 = vld [vmem:[%s6419_s2 + $0x1cc] sm:$0xf] }
 0x51c   :  { %4096 = vmatmul.msk.bf16.vlgmr.msra.gmra.mxu1 %vm555_vm3, %v1711_v2  ;;  %1815 = vmatmul.bf16.vlgmr.msra.gmra.mxu3 %v4107_v51  ;;  %v4155_v51 = vld [vmem:[%s6419_s2 + $0x1d0] sm:$0xf0]  ;;  %v4154_v2 = vor.u32 %v4743_v63, %v4153_v34 }
 0x51d   :  { %2115 = vmatpush.bf16.msra.mxu1 %v5101_v54  ;;  %2172 = vmatpush.bf16.msra.mxu3 %v4751_v47  ;;  %v4158_v24 = vor.u32 %v4742_v17, %v4155_v51  ;;  %v4142_v47 = vld [vmem:[%s6419_s2 + $0x1d8] sm:$0x33] }
 0x51e   :  { %v1929_v53 = vunpack.c.l.b16 %v4142_v47 }
 0x51f   :  { %v1702_v18 = vpop.f32.mrf.mxu2 }
 0x520   :  { %v1703_v27 = vadd.f32 %v1702_v18, %v1679_v43  ;;  %v4757_v43 = vld [vmem:[%s6420_s3 + $0xd8] sm:$0xff]  ;;  %v1935_v18 = vpack.c.b16 %v1929_v53, %v1929_v53  ;;  %v4748_v53 = vld [vmem:[%s6419_s2 + $0x1f4] sm:$0xf] }
 0x521   :  { %2116 = vmatpush.bf16.msra.mxu1 %v5108_v60  ;;  %v1681_v12 = vpop.f32.mrf.mxu0  ;;  %2173 = vmatpush.bf16.msra.mxu3 %v4750_v21  ;;  %v1930_v21 = vunpack.c.h.b16 %v4142_v47 }
 0x525   :  { %2117 = vmatpush.bf16.msra.mxu1 %v5115_v4 }
 0x527   :  { %v1704_v59 = vpop.f32.mrf.mxu2 }
 0x528   :  { %v1705_v0 = vadd.f32 %v1704_v59, %v1681_v12  ;;  %v1936_v12 = vpack.c.b16 %v1930_v21, %v1930_v21  ;;  %v4186_v59 = vld [vmem:[%s6419_s2 + $0x1e8] sm:$0xf0]  ;;  %v4194_v21 = vld [vmem:[%s6419_s2 + $0x1f8] sm:$0xf0] }
 0x529   :  { %2118 = vmatpush.bf16.msra.mxu1 %v5123_v10  ;;  %v1684_v33 = vpop.f32.mrf.mxu0 }
 0x52a   :  { %v1712_v41 = vpack.c.bf16 %v1705_v0, %v1703_v27  ;;  %v4746_v27 = vld [vmem:[%s6419_s2 + $0x1e4] sm:$0xf] }
 0x52c   :  { %4097 = vmatmul.msk.bf16.gmra.mxu1 %vm555_vm3, %v1712_v41  ;;  %1820 = vmatmul.bf16.gmra.mxu3 %v4115_v29  ;;  %v4189_v29 = vor.u32 %v4746_v27, %v4186_v59  ;;  %v4184_v27 = vld [vmem:[%s6419_s2 + $0x1e0] sm:$0xf]  ;;  %v4747_v59 = vld [vmem:[%s6419_s2 + $0x1e4] sm:$0xf0] }
 0x52d   :  { %2119 = vmatpush.bf16.msra.mxu1 %v5132_v22 }
 0x52f   :  { %v1707_v40 = vpop.f32.mrf.mxu2 }
 0x530   :  { %v1708_v58 = vadd.f32 %v1707_v40, %v1684_v33 }
 0x531   :  { %2120 = vmatpush.bf16.msra.mxu1 %v5145_v26  ;;  %v1686_v52 = vpop.f32.mrf.mxu0 }
 0x532   :  { %v1713_v38 = vpack.c.bf16 %v1708_v58, %v1708_v58 }
 0x535   :  { %2121 = vmatpush.bf16.msra.mxu1 %v5162_v31 }
 0x537   :  { %v1709_v35 = vpop.f32.mrf.mxu2 }
 0x539   :  { %v1839_v33 = vpop.f32.mrf.mxu0 }
 0x53c   :  { %4098 = vmatmul.msk.bf16.gmra.mxu1 %vm555_vm3, %v1713_v38  ;;  %1825 = vmatmul.bf16.gmra.mxu3 %v1793_v44 }
 0x54c   :  { %1957 = vmatmul.bf16.vlgmr.msrb.gmra.mxu1 %v4146_v46  ;;  %4159 = vmatmul.msk.bf16.vlgmr.msrb.gmra.mxu3 %vm381_vm2, %v4150_v56 }
 0x54d   :  { %2375 = vmatpush.bf16.msrb.mxu3 %v5020_v61  ;;  %2314 = vmatpush.bf16.msrb.mxu1 %v4757_v43 }
 0x551   :  { %2376 = vmatpush.bf16.msrb.mxu3 %v5029_v3  ;;  %2315 = vmatpush.bf16.msrb.mxu1 %v4756_v19 }
 0x555   :  { %2377 = vmatpush.bf16.msrb.mxu3 %v5036_v8 }
 0x559   :  { %2378 = vmatpush.bf16.msrb.mxu3 %v5044_v13 }
 0x55c   :  { %1962 = vmatmul.bf16.gmra.mxu1 %v4154_v2  ;;  %4160 = vmatmul.msk.bf16.gmra.mxu3 %vm381_vm2, %v4158_v24 }
 0x55d   :  { %2379 = vmatpush.bf16.msrb.mxu3 %v5049_v16 }
 0x561   :  { %2380 = vmatpush.bf16.msrb.mxu3 %v4997_v36 }
 0x565   :  { %2381 = vmatpush.bf16.msrb.mxu3 %v4989_v28 }
 0x569   :  { %2382 = vmatpush.bf16.msrb.mxu3 %v4981_v20 }
 0x56c   :  { %1967 = vmatmul.bf16.gmra.mxu1 %v1935_v18  ;;  %4161 = vmatmul.msk.bf16.gmra.mxu3 %vm381_vm2, %v1936_v12  ;;  %v4197_v12 = vor.u32 %v4748_v53, %v4194_v21 }
 0x56f   :  { %v1607_v39 = vpop.f32.mrf.mxu3 }
 0x570   :  { %v1621_v42 = vadd.f32 %v1607_v39, %v5781_v9  ;;  %v1841_v9 = vpop.f32.mrf.mxu0 }
 0x577   :  { %v5891_v0 = vpop.f32.mrf.mxu3 }
 0x578   :  { %v1844_v58 = vpop.f32.mrf.mxu0 }
 0x57c   :  { %4198 = vmatmul.msk.bf16.vlgmr.msra.gmra.mxu1 %vm381_vm2, %v4189_v29 }
 0x57d   :  { %2517 = vmatpush.bf16.msra.mxu1 %v5020_v61 }
 0x57f   :  { %v1612_v41 = vpop.f32.mrf.mxu3 }
 0x580   :  { %v1623_v40 = vadd.f32 %v1612_v41, %v5785_v11  ;;  %v1846_v11 = vpop.f32.mrf.mxu0 }
 0x581   :  { %2518 = vmatpush.bf16.msra.mxu1 %v5029_v3 }
 0x585   :  { %2519 = vmatpush.bf16.msra.mxu1 %v5036_v8 }
 0x587   :  { %v5898_v52 = vpop.f32.mrf.mxu3 }
 0x588   :  { %v1849_v44 = vpop.f32.mrf.mxu0 }
 0x589   :  { %2520 = vmatpush.bf16.msra.mxu1 %v5044_v13 }
 0x58c   :  { %4199 = vmatmul.msk.bf16.gmra.mxu1 %vm381_vm2, %v4197_v12  ;;  %v4233_v12 = vld [vmem:[%s6419_s2 + $0x220] sm:$0xf0] }
 0x58d   :  { %2521 = vmatpush.bf16.msra.mxu1 %v5049_v16 }
 0x58f   :  { %v1617_v5 = vpop.f32.mrf.mxu3 }
 0x590   :  { %v1625_v35 = vadd.f32 %v1617_v5, %v5794_v57  ;;  %v1851_v6 = vpop.f32.mrf.mxu0  ;;  %v4181_v5 = vld [vmem:[%s6419_s2 + $0x200] sm:$0x33] }
 0x591   :  { %2522 = vmatpush.bf16.msra.mxu1 %v4997_v36 }
 0x595   :  { %2523 = vmatpush.bf16.msra.mxu1 %v4989_v28 }
 0x597   :  { %v1619_v61 = vpop.f32.mrf.mxu3 }
 0x599   :  { %2524 = vmatpush.bf16.msra.mxu1 %v4981_v20  ;;  %v1749_v3 = vpop.f32.mrf.mxu1 }
 0x59a   :  { %v5906_v8 = vadd.f32 %v1749_v3, %v1621_v42 }
 0x59f   :  { %v1816_v38 = vpop.f32.mrf.mxu3 }
 0x5a0   :  { %v1840_v48 = vadd.f32 %v1839_v33, %v1816_v38  ;;  %v4192_v38 = vld [vmem:[%s6419_s2 + $0x1f0] sm:$0xf] }
 0x5a1   :  { %v5908_v13 = vpop.f32.mrf.mxu1 }
 0x5a7   :  { %v1818_v16 = vpop.f32.mrf.mxu3 }
 0x5a8   :  { %v1842_v23 = vadd.f32 %v1841_v9, %v1818_v16 }
 0x5a9   :  { %v1754_v57 = vpop.f32.mrf.mxu1 }
 0x5aa   :  { %v1853_v55 = vpack.c.bf16 %v1842_v23, %v1840_v48  ;;  %v5910_v36 = vadd.f32 %v1754_v57, %v1623_v40  ;;  %v4185_v40 = vor.u32 %v4747_v59, %v4184_v27 }
 0x5ac   :  { %4135 = vmatmul.msk.bf16.vlgmr.msrb.gmra.mxu2 %vm555_vm3, %v1853_v55 }
 0x5ad   :  { %2257 = vmatpush.bf16.msrb.mxu2 %v5101_v54 }
 0x5af   :  { %v1821_v20 = vpop.f32.mrf.mxu3 }
 0x5b0   :  { %v1845_v56 = vadd.f32 %v1844_v58, %v1821_v20 }
 0x5b1   :  { %2258 = vmatpush.bf16.msrb.mxu2 %v5108_v60  ;;  %v5915_v28 = vpop.f32.mrf.mxu1 }
 0x5b5   :  { %2259 = vmatpush.bf16.msrb.mxu2 %v5115_v4 }
 0x5b7   :  { %v1823_v46 = vpop.f32.mrf.mxu3 }
 0x5b8   :  { %v1847_v34 = vadd.f32 %v1846_v11, %v1823_v46 }
 0x5b9   :  { %2260 = vmatpush.bf16.msrb.mxu2 %v5123_v10  ;;  %v1759_v63 = vpop.f32.mrf.mxu1 }
 0x5ba   :  { %v1854_v17 = vpack.c.bf16 %v1847_v34, %v1845_v56  ;;  %v5919_v51 = vadd.f32 %v1759_v63, %v1625_v35  ;;  %v2072_v35 = vunpack.c.h.b16 %v4181_v5  ;;  %v2071_v34 = vunpack.c.l.b16 %v4181_v5 }
 0x5bc   :  { %4136 = vmatmul.msk.bf16.gmra.mxu2 %vm555_vm3, %v1854_v17  ;;  %v2078_v61 = vpack.c.b16 %v2072_v35, %v2072_v35 }
 0x5bd   :  { %2261 = vmatpush.bf16.msrb.mxu2 %v5132_v22 }
 0x5be   :  { %4200 = vmatmul.msk.bf16.gmra.mxu1 %vm381_vm2, %v2078_v61 }
 0x5bf   :  { %v1826_v43 = vpop.f32.mrf.mxu3 }
 0x5c0   :  { %v1850_v24 = vadd.f32 %v1849_v44, %v1826_v43  ;;  %v4749_v44 = vld [vmem:[%s6419_s2 + $0x1f4] sm:$0xf0]  ;;  %v2077_v43 = vpack.c.b16 %v2071_v34, %v2071_v34 }
 0x5c1   :  { %2262 = vmatpush.bf16.msrb.mxu2 %v5145_v26  ;;  %v1761_v2 = vpop.f32.mrf.mxu1  ;;  %v4193_v23 = vor.u32 %v4749_v44, %v4192_v38 }
 0x5c2   :  { %v1855_v47 = vpack.c.bf16 %v1850_v24, %v1850_v24  ;;  %v4752_v2 = vld [vmem:[%s6419_s2 + $0x20c] sm:$0xf]  ;;  %v4225_v24 = vld [vmem:[%s6419_s2 + $0x210] sm:$0xf0] }
 0x5c3   :  { %v4228_v53 = vor.u32 %v4752_v2, %v4225_v24 }
 0x5c5   :  { %2263 = vmatpush.bf16.msrb.mxu2 %v5162_v31 }
 0x5c7   :  { %v1828_v19 = vpop.f32.mrf.mxu3 }
 0x5c8   :  { %v4223_v19 = vld [vmem:[%s6419_s2 + $0x208] sm:$0xf] }
 0x5c9   :  { %v1958_v18 = vpop.f32.mrf.mxu1 }
 0x5cc   :  { %4137 = vmatmul.msk.bf16.gmra.mxu2 %vm555_vm3, %v1855_v47  ;;  %v4753_v47 = vld [vmem:[%s6419_s2 + $0x20c] sm:$0xf0] }
 0x5cd   :  { %v4224_v21 = vor.u32 %v4753_v47, %v4223_v19 }
 0x5cf   :  { %v1981_v39 = vpop.f32.mrf.mxu3 }
 0x5d0   :  { %v1982_v29 = vadd.f32 %v1981_v39, %v1958_v18  ;;  %v4754_v18 = vld [vmem:[%s6419_s2 + $0x21c] sm:$0xf]  ;;  %v4231_v39 = vld [vmem:[%s6419_s2 + $0x218] sm:$0xf] }
 0x5d1   :  { %v1960_v42 = vpop.f32.mrf.mxu1  ;;  %v4236_v27 = vor.u32 %v4754_v18, %v4233_v12 }
 0x5d7   :  { %v1983_v33 = vpop.f32.mrf.mxu3 }
 0x5d8   :  { %v1984_v41 = vadd.f32 %v1983_v33, %v1960_v42  ;;  %v4755_v42 = vld [vmem:[%s6419_s2 + $0x21c] sm:$0xf0] }
 0x5d9   :  { %v1963_v9 = vpop.f32.mrf.mxu1  ;;  %v4232_v59 = vor.u32 %v4755_v42, %v4231_v39 }
 0x5da   :  { %v1995_v58 = vpack.c.bf16 %v1984_v41, %v1982_v29  ;;  %v4220_v29 = vld [vmem:[%s6419_s2 + $0x228] sm:$0x33] }
 0x5db   :  { %v2214_v33 = vunpack.c.h.b16 %v4220_v29  ;;  %v2213_v41 = vunpack.c.l.b16 %v4220_v29 }
 0x5dc   :  { %4174 = vmatmul.msk.bf16.vlgmr.msra.gmra.mxu0 %vm555_vm3, %v1995_v58  ;;  %2099 = vmatmul.bf16.vlgmr.msra.gmra.mxu2 %v4185_v40 }
 0x5dd   :  { %2399 = vmatpush.bf16.msra.mxu0 %v5101_v54  ;;  %v2220_v40 = vpack.c.b16 %v2214_v33, %v2214_v33  ;;  %v4760_v33 = vld [vmem:[%s6419_s2 + $0x244] sm:$0xf] }
 0x5df   :  { %v1986_v11 = vpop.f32.mrf.mxu3 }
 0x5e0   :  { %v1987_v16 = vadd.f32 %v1986_v11, %v1963_v9  ;;  %v2219_v9 = vpack.c.b16 %v2213_v41, %v2213_v41 }
 0x5e1   :  { %2400 = vmatpush.bf16.msra.mxu0 %v5108_v60  ;;  %v1965_v3 = vpop.f32.mrf.mxu1 }
 0x5e5   :  { %2401 = vmatpush.bf16.msra.mxu0 %v5115_v4 }
 0x5e7   :  { %v1988_v6 = vpop.f32.mrf.mxu3 }
 0x5e8   :  { %v1989_v48 = vadd.f32 %v1988_v6, %v1965_v3 }
 0x5e9   :  { %2402 = vmatpush.bf16.msra.mxu0 %v5123_v10  ;;  %v1968_v57 = vpop.f32.mrf.mxu1 }
 0x5ea   :  { %v1996_v55 = vpack.c.bf16 %v1989_v48, %v1987_v16 }
 0x5ec   :  { %4175 = vmatmul.msk.bf16.gmra.mxu0 %vm555_vm3, %v1996_v55  ;;  %2104 = vmatmul.bf16.gmra.mxu2 %v4193_v23 }
 0x5ed   :  { %2403 = vmatpush.bf16.msra.mxu0 %v5132_v22 }
 0x5ef   :  { %v1991_v20 = vpop.f32.mrf.mxu3 }
 0x5f0   :  { %v1992_v56 = vadd.f32 %v1991_v20, %v1968_v57 }
 0x5f1   :  { %2404 = vmatpush.bf16.msra.mxu0 %v5145_v26  ;;  %v1970_v46 = vpop.f32.mrf.mxu1 }
 0x5f2   :  { %v1997_v17 = vpack.c.bf16 %v1992_v56, %v1992_v56 }
 0x5f5   :  { %2405 = vmatpush.bf16.msra.mxu0 %v5162_v31 }
 0x5f7   :  { %v1993_v63 = vpop.f32.mrf.mxu3 }
 0x5f9   :  { %v2123_v61 = vpop.f32.mrf.mxu1 }
 0x5fc   :  { %4176 = vmatmul.msk.bf16.gmra.mxu0 %vm555_vm3, %v1997_v17  ;;  %2109 = vmatmul.bf16.gmra.mxu2 %v2077_v43 }
 0x601   :  { %v2125_v38 = vpop.f32.mrf.mxu1 }
 0x609   :  { %v2128_v16 = vpop.f32.mrf.mxu1 }
 0x60c   :  { %4237 = vmatmul.msk.bf16.vlgmr.msrb.gmra.mxu2 %vm381_vm2, %v4228_v53  ;;  %2241 = vmatmul.bf16.vlgmr.msrb.gmra.mxu0 %v4224_v21 }
 0x611   :  { %v2130_v57 = vpop.f32.mrf.mxu1 }
 0x61c   :  { %4238 = vmatmul.msk.bf16.gmra.mxu2 %vm381_vm2, %v4236_v27  ;;  %2246 = vmatmul.bf16.gmra.mxu0 %v4232_v59 }
 0x62c   :  { %4239 = vmatmul.msk.bf16.gmra.mxu2 %vm381_vm2, %v2220_v40  ;;  %2251 = vmatmul.bf16.gmra.mxu0 %v2219_v9 }
 0x62f   :  { %v1891_v58 = vpop.f32.mrf.mxu2 }
 0x630   :  { %v1905_v5 = vadd.f32 %v1891_v58, %v5906_v8  ;;  %v4759_v58 = vld [vmem:[%s6419_s2 + $0x234] sm:$0xf0] }
 0x637   :  { %v5990_v35 = vpop.f32.mrf.mxu2 }
 0x63b   :  { %v2133_v8 = vpop.f32.mrf.mxu1 }
 0x63f   :  { %v1896_v11 = vpop.f32.mrf.mxu2 }
 0x640   :  { %v1907_v3 = vadd.f32 %v1896_v11, %v5910_v36 }
 0x643   :  { %v2135_v63 = vpop.f32.mrf.mxu1 }
 0x647   :  { %v5993_v44 = vpop.f32.mrf.mxu2 }
 0x64f   :  { %v1901_v6 = vpop.f32.mrf.mxu2 }
 0x650   :  { %v1909_v48 = vadd.f32 %v1901_v6, %v5919_v51  ;;  %v4259_v6 = vld [vmem:[%s6419_s2 + $0x250] sm:$0x33] }
 0x657   :  { %v1903_v23 = vpop.f32.mrf.mxu2 }
 0x659   :  { %v2033_v55 = vpop.f32.mrf.mxu0 }
 0x65a   :  { %v5996_v20 = vadd.f32 %v2033_v55, %v1905_v5 }
 0x65f   :  { %v2100_v46 = vpop.f32.mrf.mxu2 }
 0x660   :  { %v2124_v17 = vadd.f32 %v2123_v61, %v2100_v46  ;;  %v4270_v46 = vld [vmem:[%s6419_s2 + $0x240] sm:$0xf] }
 0x661   :  { %v5998_v56 = vpop.f32.mrf.mxu0 }
 0x667   :  { %v2102_v34 = vpop.f32.mrf.mxu2 }
 0x668   :  { %v2126_v36 = vadd.f32 %v2125_v38, %v2102_v34 }
 0x669   :  { %v2038_v43 = vpop.f32.mrf.mxu0 }
 0x66a   :  { %v2137_v2 = vpack.c.bf16 %v2126_v36, %v2124_v17  ;;  %v6000_v24 = vadd.f32 %v2038_v43, %v1907_v3 }
 0x66c   :  { %4213 = vmatmul.msk.bf16.vlgmr.msra.gmra.mxu3 %vm555_vm3, %v2137_v2 }
 0x66d   :  { %2541 = vmatpush.bf16.msra.mxu3 %v5101_v54 }
 0x66f   :  { %v2105_v51 = vpop.f32.mrf.mxu2 }
 0x670   :  { %v2129_v53 = vadd.f32 %v2128_v16, %v2105_v51 }
 0x671   :  { %2542 = vmatpush.bf16.msra.mxu3 %v5108_v60  ;;  %v6005_v19 = vpop.f32.mrf.mxu0  ;;  %v4758_v60 = vld [vmem:[%s6419_s2 + $0x234] sm:$0xf] }
 0x675   :  { %2543 = vmatpush.bf16.msra.mxu3 %v5115_v4  ;;  %v4264_v4 = vld [vmem:[%s6419_s2 + $0x238] sm:$0xf0] }
 0x676   :  { %v4267_v42 = vor.u32 %v4758_v60, %v4264_v4  ;;  %v4301_v60 = vld [vmem:[%s6419_s2 + $0x258] sm:$0xf]  ;;  %v4765_v4 = vld [vmem:[%s6419_s2 + $0x25c] sm:$0xf0] }
 0x677   :  { %v2107_v47 = vpop.f32.mrf.mxu2 }
 0x678   :  { %v2131_v21 = vadd.f32 %v2130_v57, %v2107_v47  ;;  %4276 = vmatmul.msk.bf16.vlgmr.msra.gmra.mxu0 %vm381_vm2, %v4267_v42  ;;  %v4303_v42 = vld [vmem:[%s6419_s2 + $0x260] sm:$0xf0] }
 0x679   :  { %2544 = vmatpush.bf16.msra.mxu3 %v5123_v10  ;;  %v2043_v18 = vpop.f32.mrf.mxu0 }
 0x67a   :  { %v2138_v12 = vpack.c.bf16 %v2131_v21, %v2129_v53  ;;  %v6009_v39 = vadd.f32 %v2043_v18, %v1909_v48  ;;  %v2356_v48 = vunpack.c.h.b16 %v4259_v6  ;;  %v2355_v21 = vunpack.c.l.b16 %v4259_v6 }
 0x67c   :  { %4214 = vmatmul.msk.bf16.gmra.mxu3 %vm555_vm3, %v2138_v12  ;;  %v2362_v57 = vpack.c.b16 %v2356_v48, %v2356_v48 }
 0x67d   :  { %2545 = vmatpush.bf16.msra.mxu3 %v5132_v22 }
 0x67f   :  { %v2110_v54 = vpop.f32.mrf.mxu2 }
 0x680   :  { %v2134_v27 = vadd.f32 %v2133_v8, %v2110_v54  ;;  %v4761_v8 = vld [vmem:[%s6419_s2 + $0x244] sm:$0xf0]  ;;  %v2361_v54 = vpack.c.b16 %v2355_v21, %v2355_v21 }
 0x681   :  { %2546 = vmatpush.bf16.msra.mxu3 %v5145_v26  ;;  %v2045_v10 = vpop.f32.mrf.mxu0  ;;  %v4272_v26 = vld [vmem:[%s6419_s2 + $0x248] sm:$0xf0]  ;;  %v4271_v36 = vor.u32 %v4761_v8, %v4270_v46  ;;  %v4762_v46 = vld [vmem:[%s6420_s3 + $0xe0] sm:$0xff] }
 0x682   :  { %v2139_v29 = vpack.c.bf16 %v2134_v27, %v2134_v27  ;;  %v4275_v40 = vor.u32 %v4760_v33, %v4272_v26  ;;  %v4764_v10 = vld [vmem:[%s6419_s2 + $0x25c] sm:$0xf]  ;;  %v4302_v27 = vor.u32 %v4765_v4, %v4301_v60  ;;  %v4766_v33 = vld [vmem:[%s6419_s2 + $0x26c] sm:$0xf]  ;;  %v4311_v26 = vld [vmem:[%s6419_s2 + $0x270] sm:$0xf0] }
 0x685   :  { %2547 = vmatpush.bf16.msra.mxu3 %v5162_v31  ;;  %v4262_v31 = vld [vmem:[%s6419_s2 + $0x230] sm:$0xf] }
 0x686   :  { %v4263_v3 = vor.u32 %v4759_v58, %v4262_v31 }
 0x687   :  { %v2112_v59 = vpop.f32.mrf.mxu2 }
 0x688   :  { %4277 = vmatmul.msk.bf16.gmra.mxu0 %vm381_vm2, %v4275_v40  ;;  %v4306_v59 = vor.u32 %v4764_v10, %v4303_v42  ;;  %v4314_v40 = vor.u32 %v4766_v33, %v4311_v26 }
 0x689   :  { %v2242_v22 = vpop.f32.mrf.mxu0 }
 0x68c   :  { %4215 = vmatmul.msk.bf16.gmra.mxu3 %vm555_vm3, %v2139_v29  ;;  %v4767_v29 = vld [vmem:[%s6419_s2 + $0x26c] sm:$0xf0] }
 0x68f   :  { %v2265_v41 = vpop.f32.mrf.mxu2 }
 0x690   :  { %v2266_v61 = vadd.f32 %v2265_v41, %v2242_v22  ;;  %v4309_v22 = vld [vmem:[%s6419_s2 + $0x268] sm:$0xf] }
 0x691   :  { %v2244_v9 = vpop.f32.mrf.mxu0  ;;  %v4310_v41 = vor.u32 %v4767_v29, %v4309_v22 }
 0x697   :  { %v2267_v5 = vpop.f32.mrf.mxu2 }
 0x698   :  { %v2268_v11 = vadd.f32 %v2267_v5, %v2244_v9  ;;  %4278 = vmatmul.msk.bf16.gmra.mxu0 %vm381_vm2, %v2362_v57  ;;  %v4298_v9 = vld [vmem:[%s6419_s2 + $0x278] sm:$0x33] }
 0x699   :  { %v2247_v38 = vpop.f32.mrf.mxu0  ;;  %v2498_v31 = vunpack.c.h.b16 %v4298_v9  ;;  %v2497_v58 = vunpack.c.l.b16 %v4298_v9 }
 0x69a   :  { %v2279_v16 = vpack.c.bf16 %v2268_v11, %v2266_v61 }
 0x69b   :  { %v2504_v5 = vpack.c.b16 %v2498_v31, %v2498_v31  ;;  %v2503_v61 = vpack.c.b16 %v2497_v58, %v2497_v58 }
 0x69c   :  { %4252 = vmatmul.msk.bf16.vlgmr.msrb.gmra.mxu1 %vm555_vm3, %v2279_v16  ;;  %2383 = vmatmul.bf16.vlgmr.msrb.gmra.mxu3 %v4263_v3 }
 0x69f   :  { %v2270_v23 = vpop.f32.mrf.mxu2 }
 0x6a0   :  { %v2271_v63 = vadd.f32 %v2270_v23, %v2247_v38  ;;  %v4763_v23 = vld [vmem:[%s6420_s3 + $0xe8] sm:$0xff] }
 0x6a1   :  { %v2249_v55 = vpop.f32.mrf.mxu0  ;;  %2456 = vmatpush.bf16.msra.mxu2 %v4763_v23 }
 0x6a5   :  { %2457 = vmatpush.bf16.msra.mxu2 %v4762_v46 }
 0x6a7   :  { %v2272_v34 = vpop.f32.mrf.mxu2 }
 0x6a8   :  { %v2273_v17 = vadd.f32 %v2272_v34, %v2249_v55 }
 0x6a9   :  { %v2252_v43 = vpop.f32.mrf.mxu0 }
 0x6aa   :  { %v2280_v2 = vpack.c.bf16 %v2273_v17, %v2271_v63 }
 0x6ac   :  { %4253 = vmatmul.msk.bf16.gmra.mxu1 %vm555_vm3, %v2280_v2  ;;  %2388 = vmatmul.bf16.gmra.mxu3 %v4271_v36 }
 0x6af   :  { %v2275_v51 = vpop.f32.mrf.mxu2 }
 0x6b0   :  { %v2276_v53 = vadd.f32 %v2275_v51, %v2252_v43 }
 0x6b1   :  { %v2254_v47 = vpop.f32.mrf.mxu0 }
 0x6b2   :  { %v2281_v12 = vpack.c.bf16 %v2276_v53, %v2276_v53 }
 0x6b7   :  { %v2277_v18 = vpop.f32.mrf.mxu2 }
 0x6bc   :  { %4254 = vmatmul.msk.bf16.gmra.mxu1 %vm555_vm3, %v2281_v12  ;;  %2393 = vmatmul.bf16.gmra.mxu3 %v2361_v54 }
 0x6cc   :  { %2525 = vmatmul.bf16.vlgmr.msra.gmra.mxu1 %v4302_v27  ;;  %4315 = vmatmul.msk.bf16.vlgmr.msra.gmra.mxu3 %vm381_vm2, %v4306_v59 }
 0x6dc   :  { %2530 = vmatmul.bf16.gmra.mxu1 %v4310_v41  ;;  %4316 = vmatmul.msk.bf16.gmra.mxu3 %vm381_vm2, %v4314_v40 }
 0x6ec   :  { %4317 = vmatmul.msk.bf16.gmra.mxu3 %vm381_vm2, %v2504_v5  ;;  %2535 = vmatmul.bf16.gmra.mxu1 %v2503_v61 }
 0x6ef   :  { %v2175_v11 = vpop.f32.mrf.mxu3 }
 0x6f0   :  { %v2189_v3 = vadd.f32 %v2175_v11, %v5996_v20  ;;  %v912_v20 = vadd.f32 %v5630_v14, %v5603_v7  ;;  %v914_v14 = vadd.f32 %v5642_v37, %v5618_v50 }
 0x6f2   :  { %v1054_v8 = vadd.f32 %v5658_v30, %v912_v20 }
 0x6f4   :  { %v1196_v17 = vadd.f32 %v5644_v25, %v1054_v8  ;;  %v1056_v25 = vadd.f32 %v5662_v45, %v914_v14 }
 0x6f5   :  { %v2407_v48 = vpop.f32.mrf.mxu0 }
 0x6f6   :  { %v1338_v36 = vadd.f32 %v5766_v15, %v1196_v17 }
 0x6f7   :  { %v2177_v38 = vpop.f32.mrf.mxu3 }
 0x6f8   :  { %v1480_v43 = vadd.f32 %v5783_v1, %v1338_v36 }
 0x6fa   :  { %v1622_v51 = vadd.f32 %v5891_v0, %v1480_v43  ;;  %v1198_v0 = vadd.f32 %v5652_v32, %v1056_v25 }
 0x6fc   :  { %v1764_v21 = vadd.f32 %v5908_v13, %v1622_v51  ;;  %v1340_v13 = vadd.f32 %v5773_v62, %v1198_v0 }
 0x6fd   :  { %v2409_v55 = vpop.f32.mrf.mxu0 }
 0x6fe   :  { %v1906_v30 = vadd.f32 %v5990_v35, %v1764_v21  ;;  %v1482_v60 = vadd.f32 %v5790_v49, %v1340_v13 }
 0x6ff   :  { %v2180_v16 = vpop.f32.mrf.mxu3 }
 0x700   :  { %v2191_v6 = vadd.f32 %v2180_v16, %v6000_v24  ;;  %v2048_v15 = vadd.f32 %v5998_v56, %v1906_v30  ;;  %v1624_v50 = vadd.f32 %v5898_v52, %v1482_v60  ;;  %v4769_v52 = vld [vmem:[%s6420_s3 + $0xf8] sm:$0xff] }
 0x701   :  { %2598 = vmatpush.bf16.msrb.mxu0 %v4769_v52 }
 0x702   :  { %v2190_v1 = vadd.f32 %v2177_v38, %v2048_v15  ;;  %v1766_v56 = vadd.f32 %v5915_v28, %v1624_v50 }
 0x704   :  { %v1908_v59 = vadd.f32 %v5993_v44, %v1766_v56  ;;  %v4768_v44 = vld [vmem:[%s6420_s3 + $0xf0] sm:$0xff] }
 0x705   :  { %v2412_v63 = vpop.f32.mrf.mxu0  ;;  %2599 = vmatpush.bf16.msrb.mxu0 %v4768_v44 }
 0x706   :  { %v2050_v32 = vadd.f32 %v6005_v19, %v1908_v59 }
 0x707   :  { %v2182_v57 = vpop.f32.mrf.mxu3 }
 0x708   :  { %v2192_v49 = vadd.f32 %v2182_v57, %v2050_v32 }
 0x70d   :  { %v2414_v47 = vpop.f32.mrf.mxu0 }
 0x70f   :  { %v2185_v34 = vpop.f32.mrf.mxu3 }
 0x710   :  { %v2193_v24 = vadd.f32 %v2185_v34, %v6009_v39 }
 0x715   :  { %v2417_v18 = vpop.f32.mrf.mxu0 }
 0x717   :  { %v2187_v2 = vpop.f32.mrf.mxu3 }
 0x719   :  { %v2317_v53 = vpop.f32.mrf.mxu1 }
 0x71a   :  { %v6096_v7 = vadd.f32 %v2317_v53, %v2189_v3 }
 0x71d   :  { %v2419_v10 = vpop.f32.mrf.mxu0 }
 0x71f   :  { %v2384_v39 = vpop.f32.mrf.mxu3 }
 0x720   :  { %v2408_v37 = vadd.f32 %v2407_v48, %v2384_v39 }
 0x721   :  { %v2319_v12 = vpop.f32.mrf.mxu1 }
 0x722   :  { %v2332_v54 = vadd.f32 %v2319_v12, %v2190_v1  ;;  %v4833_v12 = vld [vmem:[%s6417_s10 + $0x1] ss:$0 sm:$0xff] }
 0x727   :  { %v2386_v4 = vpop.f32.mrf.mxu3 }
 0x728   :  { %v2410_v35 = vadd.f32 %v2409_v55, %v2386_v4 }
 0x729   :  { %v2322_v45 = vpop.f32.mrf.mxu1 }
 0x72a   :  { %v2421_v42 = vpack.c.bf16 %v2410_v35, %v2408_v37  ;;  %v6108_v27 = vadd.f32 %v2322_v45, %v2191_v6 }
 0x72c   :  { %4291 = vmatmul.msk.bf16.vlgmr.msra.gmra.mxu2 %vm555_vm3, %v2421_v42 }
 0x72f   :  { %v2389_v62 = vpop.f32.mrf.mxu3 }
 0x730   :  { %v2413_v28 = vadd.f32 %v2412_v63, %v2389_v62 }
 0x731   :  { %v2324_v22 = vpop.f32.mrf.mxu1 }
 0x732   :  { %v2334_v29 = vadd.f32 %v2324_v22, %v2192_v49 }
 0x737   :  { %v2391_v33 = vpop.f32.mrf.mxu3 }
 0x738   :  { %v2415_v26 = vadd.f32 %v2414_v47, %v2391_v33 }
 0x739   :  { %v2327_v41 = vpop.f32.mrf.mxu1 }
 0x73a   :  { %v2422_v40 = vpack.c.bf16 %v2415_v26, %v2413_v28  ;;  %v2335_v9 = vadd.f32 %v2327_v41, %v2193_v24 }
 0x73c   :  { %4292 = vmatmul.msk.bf16.gmra.mxu2 %vm555_vm3, %v2422_v40 }
 0x73f   :  { %v2394_v19 = vpop.f32.mrf.mxu3 }
 0x740   :  { %v2418_v58 = vadd.f32 %v2417_v18, %v2394_v19 }
 0x741   :  { %v2329_v31 = vpop.f32.mrf.mxu1 }
 0x742   :  { %v2423_v11 = vpack.c.bf16 %v2418_v58, %v2418_v58  ;;  %v4773_v31 = vld [vmem:[%s6421_s5 + $0x10] sm:$0xff]  ;;  %v4772_v58 = vld [vmem:[%s6421_s5 + $0x8] sm:$0xff] }
 0x747   :  { %v2396_v5 = vpop.f32.mrf.mxu3 }
 0x748   :  { %v4771_v5 = vld [vmem:[%s6421_s5] sm:$0xff] }
 0x749   :  { %v2526_v61 = vpop.f32.mrf.mxu1 }
 0x74c   :  { %4293 = vmatmul.msk.bf16.gmra.mxu2 %vm555_vm3, %v2423_v11  ;;  %v4790_v11 = vld [vmem:[%s6422_s4 + $0x20] sm:$0xff] }
 0x74f   :  { %v2549_v3 = vpop.f32.mrf.mxu3 }
 0x750   :  { %v2550_v6 = vadd.f32 %v2549_v3, %v2526_v61  ;;  %v4780_v61 = vld [vmem:[%s6422_s4 + $0x10] sm:$0xff]  ;;  %v4779_v3 = vld [vmem:[%s6421_s5 + $0x38] sm:$0xff] }
 0x751   :  { %v2528_v38 = vpop.f32.mrf.mxu1  ;;  %2739 = vmatpush.bf16.msrb.mxu3 %v4779_v3 }
 0x757   :  { %v2551_v16 = vpop.f32.mrf.mxu3 }
 0x758   :  { %v2552_v48 = vadd.f32 %v2551_v16, %v2528_v38  ;;  %v4778_v38 = vld [vmem:[%s6421_s5 + $0x30] sm:$0xff]  ;;  %v4777_v16 = vld [vmem:[%s6421_s5 + $0x28] sm:$0xff] }
 0x759   :  { %v2531_v23 = vpop.f32.mrf.mxu1  ;;  %2740 = vmatpush.bf16.msrb.mxu3 %v4778_v38 }
 0x75a   :  { %v2563_v57 = vpack.c.bf16 %v2552_v48, %v2550_v6  ;;  %v4776_v6 = vld [vmem:[%s6421_s5 + $0x20] sm:$0xff]  ;;  %v4784_v48 = vld [vmem:[%s6421_s5 + $0x58] sm:$0xff] }
 0x75c   :  { %4330 = vmatmul.msk.bf16.vlgmr.msrb.gmra.mxu0 %vm555_vm3, %v2563_v57  ;;  %v4782_v57 = vld [vmem:[%s6421_s5 + $0x48] sm:$0xff] }
 0x75d   :  { %2741 = vmatpush.bf16.msrb.mxu3 %v4777_v16 }
 0x75f   :  { %v2554_v55 = vpop.f32.mrf.mxu3 }
 0x760   :  { %v2555_v8 = vadd.f32 %v2554_v55, %v2531_v23  ;;  %v4783_v23 = vld [vmem:[%s6421_s5 + $0x50] sm:$0xff]  ;;  %v4781_v55 = vld [vmem:[%s6421_s5 + $0x40] sm:$0xff] }
 0x761   :  { %v2533_v46 = vpop.f32.mrf.mxu1  ;;  %2742 = vmatpush.bf16.msrb.mxu3 %v4776_v6 }
 0x765   :  { %2856 = vmatpush.bf16.msra.mxu3 %v4784_v48 }
 0x767   :  { %v2556_v20 = vpop.f32.mrf.mxu3 }
 0x768   :  { %v2557_v34 = vadd.f32 %v2556_v20, %v2533_v46  ;;  %v4800_v20 = vld [vmem:[%s6422_s4 + $0x30] sm:$0xff] }
 0x769   :  { %v2536_v24 = vpop.f32.mrf.mxu1  ;;  %2857 = vmatpush.bf16.msra.mxu3 %v4783_v23 }
 0x76a   :  { %v2564_v63 = vpack.c.bf16 %v2557_v34, %v2555_v8 }
 0x76c   :  { %4331 = vmatmul.msk.bf16.gmra.mxu0 %vm555_vm3, %v2564_v63 }
 0x76d   :  { %2858 = vmatpush.bf16.msra.mxu3 %v4782_v57 }
 0x76f   :  { %v2559_v17 = vpop.f32.mrf.mxu3 }
 0x770   :  { %v2560_v43 = vadd.f32 %v2559_v17, %v2536_v24 }
 0x771   :  { %v2538_v36 = vpop.f32.mrf.mxu1  ;;  %2859 = vmatpush.bf16.msra.mxu3 %v4781_v55  ;;  %v4818_v55 = vld [vmem:[%s6423_s6 + $0x18] sm:$0xff] }
 0x772   :  { %v2565_v51 = vpack.c.bf16 %v2560_v43, %v2560_v43  ;;  %v4810_v43 = vld [vmem:[%s6422_s4 + $0x40] sm:$0xff] }
 0x777   :  { %v2561_v2 = vpop.f32.mrf.mxu3 }
 0x77c   :  { %4332 = vmatmul.msk.bf16.gmra.mxu0 %vm555_vm3, %v2565_v51 }
 0x7af   :  { %v2459_v47 = vpop.f32.mrf.mxu2 }
 0x7b0   :  { %v2473_v53 = vadd.f32 %v2459_v47, %v6096_v7  ;;  %v4785_v47 = vld [vmem:[%s6422_s4 + $0x18] sm:$0xff] }
 0x7b7   :  { %v2461_v21 = vpop.f32.mrf.mxu2 }
 0x7b8   :  { %v2474_v14 = vadd.f32 %v2461_v21, %v2332_v54  ;;  %v4805_v21 = vld [vmem:[%s6422_s4 + $0x38] sm:$0xff] }
 0x7bf   :  { %v2464_v30 = vpop.f32.mrf.mxu2 }
 0x7c0   :  { %v2475_v54 = vadd.f32 %v2464_v30, %v6108_v27  ;;  %v4774_v27 = vld [vmem:[%s6421_s5 + $0x18] sm:$0xff]  ;;  %v4793_v30 = vld [vmem:[%s6421_s5 + $0x90] sm:$0xff] }
 0x7c7   :  { %v2466_v25 = vpop.f32.mrf.mxu2 }
 0x7c8   :  { %v2476_v45 = vadd.f32 %v2466_v25, %v2334_v29  ;;  %v4770_v29 = vld [vmem:[%s6422_s4] sm:$0xff] }
 0x7cf   :  { %v2469_v15 = vpop.f32.mrf.mxu2 }
 0x7d0   :  { %v2477_v22 = vadd.f32 %v2469_v15, %v2335_v9  ;;  %v4775_v9 = vld [vmem:[%s6422_s4 + $0x8] sm:$0xff] }
 0x7d1   :  { %v4792_v15 = vld [vmem:[%s6421_s5 + $0x88] sm:$0xff] }
 0x7d7   :  { %v2471_v39 = vpop.f32.mrf.mxu2 }
 0x7d8   :  { %v4791_v39 = vld [vmem:[%s6421_s5 + $0x80] sm:$0xff] }
 0x7d9   :  { %v2601_v1 = vpop.f32.mrf.mxu0 }
 0x7da   :  { %v2615_v18 = vadd.f32 %v2601_v1, %v2473_v53  ;;  %v4795_v53 = vld [vmem:[%s6422_s4 + $0x28] sm:$0xff] }
 0x7dc   :  { %v2621_v13 = vadd.f32 %v4833_v12, %v2615_v18 }
 0x7de   :  { %v2626_v50 = vmax.f32 %v2621_v13, 0.0  ;;  %v4803_v13 = vld [vmem:[%s6421_s5 + $0xd0] sm:$0xff] }
 0x7e1   :  { %v2603_v0 = vpop.f32.mrf.mxu0 }
 0x7e2   :  { %v2616_v60 = vadd.f32 %v2603_v0, %v2474_v14  ;;  %v4794_v14 = vld [vmem:[%s6421_s5 + $0x98] sm:$0xff] }
 0x7e3   :  { %v4789_v0 = vld [vmem:[%s6421_s5 + $0x78] sm:$0xff] }
 0x7e4   :  { %v2622_v4 = vadd.f32 %v4833_v12, %v2616_v60  ;;  %2934 = vmatpush.bf16.msra.mxu0 %v4789_v0 }
 0x7e6   :  { %v2627_v37 = vmax.f32 %v2622_v4, 0.0  ;;  %v4788_v4 = vld [vmem:[%s6421_s5 + $0x70] sm:$0xff] }
 0x7e8   :  { %v6128_v35 = vpack.c.bf16 %v2627_v37, %v2626_v50  ;;  %v4802_v50 = vld [vmem:[%s6421_s5 + $0xc8] sm:$0xff]  ;;  %2935 = vmatpush.bf16.msra.mxu0 %v4788_v4 }
 0x7e9   :  { %v2606_v7 = vpop.f32.mrf.mxu0  ;;  %v4787_v37 = vld [vmem:[%s6421_s5 + $0x68] sm:$0xff] }
 0x7ea   :  { %v2617_v10 = vadd.f32 %v2606_v7, %v2475_v54 }
 0x7ec   :  { %v2623_v42 = vadd.f32 %v4833_v12, %v2617_v10  ;;  %2936 = vmatpush.bf16.msra.mxu0 %v4787_v37  ;;  %v4786_v10 = vld [vmem:[%s6421_s5 + $0x60] sm:$0xff] }
 0x7ee   :  { %v2628_v62 = vmax.f32 %v2623_v42, 0.0  ;;  %v4813_v42 = vld [vmem:[%s6421_s5 + $0x110] sm:$0xff] }
 0x7f0   :  { %2937 = vmatpush.bf16.msra.mxu0 %v4786_v10 }
 0x7f1   :  { %v2608_v56 = vpop.f32.mrf.mxu0 }
 0x7f2   :  { %v2618_v59 = vadd.f32 %v2608_v56, %v2476_v45  ;;  %v4814_v45 = vld [vmem:[%s6421_s5 + $0x118] sm:$0xff] }
 0x7f3   :  { %v4799_v56 = vld [vmem:[%s6421_s5 + $0xb8] sm:$0xff] }
 0x7f4   :  { %v2624_v32 = vadd.f32 %v4833_v12, %v2618_v59  ;;  %3090 = vmatpush.bf16.msrb.mxu0 %v4799_v56 }
 0x7f6   :  { %v2629_v49 = vmax.f32 %v2624_v32, 0.0  ;;  %v4798_v32 = vld [vmem:[%s6421_s5 + $0xb0] sm:$0xff] }
 0x7f8   :  { %v6131_v52 = vpack.c.bf16 %v2629_v49, %v2628_v62  ;;  %v4812_v62 = vld [vmem:[%s6421_s5 + $0x108] sm:$0xff]  ;;  %3091 = vmatpush.bf16.msrb.mxu0 %v4798_v32 }
 0x7f9   :  { %v2611_v33 = vpop.f32.mrf.mxu0 }
 0x7fa   :  { %v2619_v28 = vadd.f32 %v2611_v33, %v2477_v22  ;;  %v4797_v22 = vld [vmem:[%s6421_s5 + $0xa8] sm:$0xff] }
 0x7fc   :  { %v2625_v26 = vadd.f32 %v4833_v12, %v2619_v28  ;;  %v4804_v12 = vld [vmem:[%s6421_s5 + $0xd8] sm:$0xff]  ;;  %3092 = vmatpush.bf16.msrb.mxu0 %v4797_v22 }
 0x7fe   :  { %v2630_v44 = vmax.f32 %v2625_v26, 0.0  ;;  %v4796_v26 = vld [vmem:[%s6421_s5 + $0xa0] sm:$0xff] }
 0x800   :  { %v2633_v41 = vpack.c.bf16 %v2630_v44, %v2630_v44  ;;  %3093 = vmatpush.bf16.msrb.mxu0 %v4796_v26 }
 0x801   :  { %v2613_v40 = vpop.f32.mrf.mxu0 }
 0x802   :  { %v6133_v19 = vsel %vm2646_vm4, %v2633_v41, 0 }
 0x803   :  { %2655 = vmatpush.bf16.msrb.mxu2 %v6133_v19  ;;  %2689 = vmatpush.bf16.msrb.mxu1 %v6133_v19 }
 0x807   :  { %2656 = vmatpush.bf16.msrb.mxu2 %v6131_v52  ;;  %2690 = vmatpush.bf16.msrb.mxu1 %v6131_v52 }
 0x80b   :  { %2657 = vmatpush.bf16.msrb.mxu2 %v6128_v35  ;;  %2691 = vmatpush.bf16.msrb.mxu1 %v6128_v35 }
 0x80e   :  { %4337 = vmatmul.msk.bf16.vlgmr.msrb.gmra.mxu2 %vm2642_vm5, %v4770_v29  ;;  %4344 = vmatmul.msk.bf16.vlgmr.msrb.gmra.mxu1 %vm2642_vm5, %v4775_v9  ;;  %v4808_v29 = vld [vmem:[%s6421_s5 + $0xf0] sm:$0xff] }
 0x80f   :  { %2780 = vmatpush.bf16.msra.mxu2 %v4774_v27  ;;  %2806 = vmatpush.bf16.msra.mxu1 %v6133_v19 }
 0x813   :  { %2781 = vmatpush.bf16.msra.mxu2 %v4773_v31  ;;  %2807 = vmatpush.bf16.msra.mxu1 %v6131_v52  ;;  %v4807_v31 = vld [vmem:[%s6421_s5 + $0xe8] sm:$0xff] }
 0x817   :  { %2782 = vmatpush.bf16.msra.mxu2 %v4772_v58  ;;  %2808 = vmatpush.bf16.msra.mxu1 %v6128_v35  ;;  %v4806_v58 = vld [vmem:[%s6421_s5 + $0xe0] sm:$0xff] }
 0x81b   :  { %2962 = vmatpush.bf16.msrb.mxu1 %v6133_v19  ;;  %2783 = vmatpush.bf16.msra.mxu2 %v4771_v5 }
 0x81e   :  { %4393 = vmatmul.msk.bf16.vlgmr.msra.gmra.mxu1 %vm2642_vm5, %v4780_v61 }
 0x81f   :  { %2884 = vmatpush.bf16.msrb.mxu2 %v6133_v19  ;;  %2963 = vmatpush.bf16.msrb.mxu1 %v6131_v52 }
 0x823   :  { %2885 = vmatpush.bf16.msrb.mxu2 %v6131_v52  ;;  %2964 = vmatpush.bf16.msrb.mxu1 %v6128_v35 }
 0x827   :  { %3118 = vmatpush.bf16.msra.mxu1 %v6133_v19  ;;  %2886 = vmatpush.bf16.msrb.mxu2 %v6128_v35 }
 0x82b   :  { %3119 = vmatpush.bf16.msra.mxu1 %v6131_v52 }
 0x82e   :  { %4457 = vmatmul.msk.bf16.vlgmr.msrb.gmra.mxu1 %vm2642_vm5, %v4790_v11 }
 0x82f   :  { %3120 = vmatpush.bf16.msra.mxu1 %v6128_v35 }
 0x833   :  { %3274 = vmatpush.bf16.msrb.mxu1 %v6133_v19 }
 0x837   :  { %3275 = vmatpush.bf16.msrb.mxu1 %v6131_v52 }
 0x83b   :  { %3276 = vmatpush.bf16.msrb.mxu1 %v6128_v35 }
 0x83e   :  { %4521 = vmatmul.msk.bf16.vlgmr.msra.gmra.mxu1 %vm2642_vm5, %v4800_v20 }
 0x84e   :  { %4585 = vmatmul.msk.bf16.vlgmr.msrb.gmra.mxu1 %vm2642_vm5, %v4810_v43  ;;  %v4815_v43 = vld [vmem:[%s6423_s6] sm:$0xff] }
 0x88b   :  { %v2693_v46 = vpop.f32.mrf.mxu1 }
 0x891   :  { %v2659_v8 = vpop.f32.mrf.mxu2 }
 0x893   :  { %v2695_v34 = vpop.f32.mrf.mxu1 }
 0x894   :  { %v2698_v24 = vpack.c.bf16 %v2695_v34, %v2693_v46  ;;  %v4817_v46 = vld [vmem:[%s6423_s6 + $0x10] sm:$0xff] }
 0x896   :  { %4369 = vmatmul.msk.bf16.vlgmr.msrb.gmra.mxu3 %vm178_vm0, %v2698_v24 }
 0x897   :  { %3012 = vmatpush.bf16.msrb.mxu3 %v4794_v14 }
 0x899   :  { %v2661_v63 = vpop.f32.mrf.mxu2 }
 0x89a   :  { %v2664_v17 = vpack.c.bf16 %v2661_v63, %v2659_v8  ;;  %v3341_v8 = vld [vmem:[%s6424_s11] sm:$0x1] }
 0x89b   :  { %v2810_v36 = vpop.f32.mrf.mxu1  ;;  %3013 = vmatpush.bf16.msrb.mxu3 %v4793_v30  ;;  %v3350_v24 = vpack.c.bf16 %v3341_v8, %v3341_v8 }
 0x89c   :  { %4386 = vmatmul.msk.bf16.vlgmr.msra.gmra.mxu2 %vm178_vm0, %v2664_v17  ;;  %v4816_v17 = vld [vmem:[%s6423_s6 + $0x8] sm:$0xff] }
 0x89d   :  { %3040 = vmatpush.bf16.msra.mxu2 %v6133_v19 }
 0x89f   :  { %3014 = vmatpush.bf16.msrb.mxu3 %v4792_v15 }
 0x8a1   :  { %3041 = vmatpush.bf16.msra.mxu2 %v6131_v52 }
 0x8a3   :  { %v2812_v2 = vpop.f32.mrf.mxu1  ;;  %3015 = vmatpush.bf16.msrb.mxu3 %v4791_v39 }
 0x8a4   :  { %v2815_v51 = vpack.c.bf16 %v2812_v2, %v2810_v36 }
 0x8a5   :  { %3042 = vmatpush.bf16.msra.mxu2 %v6128_v35 }
 0x8a6   :  { %4418 = vmatmul.msk.bf16.vlgmr.msra.gmra.mxu3 %vm178_vm0, %v2815_v51  ;;  %v4857_v51 = vmov 0.0  }
 0x8a7   :  { %3168 = vmatpush.bf16.msra.mxu3 %v4804_v12  ;;  %3479 = vst [vmem:[%s6425_s12] sm:$0xff] %v4857_v51 }
 0x8ab   :  { %v2966_v25 = vpop.f32.mrf.mxu1  ;;  %3169 = vmatpush.bf16.msra.mxu3 %v4803_v13 }
 0x8ac   :  { %4425 = vmatmul.msk.bf16.vlgmr.msrb.gmra.mxu2 %vm2642_vm5, %v4785_v47 }
 0x8ad   :  { %3196 = vmatpush.bf16.msrb.mxu2 %v6133_v19  ;;  %v4809_v19 = vld [vmem:[%s6421_s5 + $0xf8] sm:$0xff] }
 0x8af   :  { %3170 = vmatpush.bf16.msra.mxu3 %v4802_v50 }
 0x8b1   :  { %3197 = vmatpush.bf16.msrb.mxu2 %v6131_v52  ;;  %v4811_v52 = vld [vmem:[%s6421_s5 + $0x100] sm:$0xff] }
 0x8b3   :  { %v2968_v1 = vpop.f32.mrf.mxu1 }
 0x8b4   :  { %v2971_v18 = vpack.c.bf16 %v2968_v1, %v2966_v25 }
 0x8b5   :  { %3198 = vmatpush.bf16.msrb.mxu2 %v6128_v35  ;;  %v4801_v35 = vld [vmem:[%s6421_s5 + $0xc0] sm:$0xff] }
 0x8b6   :  { %4482 = vmatmul.msk.bf16.vlgmr.msrb.gmra.mxu3 %vm178_vm0, %v2971_v18 }
 0x8b7   :  { %3171 = vmatpush.bf16.msra.mxu3 %v4801_v35 }
 0x8bb   :  { %v3122_v60 = vpop.f32.mrf.mxu1  ;;  %3324 = vmatpush.bf16.msrb.mxu3 %v4814_v45 }
 0x8bc   :  { %4489 = vmatmul.msk.bf16.vlgmr.msra.gmra.mxu2 %vm2642_vm5, %v4795_v53 }
 0x8bd   :  { %3376 = vmatpush.bf16.msra.mxu2 %v4818_v55 }
 0x8bf   :  { %3325 = vmatpush.bf16.msrb.mxu3 %v4813_v42 }
 0x8c1   :  { %3377 = vmatpush.bf16.msra.mxu2 %v4817_v46 }
 0x8c3   :  { %v3124_v7 = vpop.f32.mrf.mxu1  ;;  %3326 = vmatpush.bf16.msrb.mxu3 %v4812_v62 }
 0x8c4   :  { %v3127_v54 = vpack.c.bf16 %v3124_v7, %v3122_v60  ;;  %v4834_v7 = vld [vmem:[%s6417_s10 + $0x2] ss:$0 sm:$0xff] }
 0x8c6   :  { %4546 = vmatmul.msk.bf16.vlgmr.msra.gmra.mxu3 %vm178_vm0, %v3127_v54 }
 0x8c7   :  { %3327 = vmatpush.bf16.msrb.mxu3 %v4811_v52 }
 0x8cb   :  { %v3278_v59 = vpop.f32.mrf.mxu1 }
 0x8cc   :  { %4553 = vmatmul.msk.bf16.vlgmr.msrb.gmra.mxu2 %vm2642_vm5, %v4805_v21 }
 0x8d3   :  { %v3280_v33 = vpop.f32.mrf.mxu1 }
 0x8d4   :  { %v3283_v28 = vpack.c.bf16 %v3280_v33, %v3278_v59 }
 0x8d6   :  { %4610 = vmatmul.msk.bf16.vlgmr.msrb.gmra.mxu3 %vm178_vm0, %v3283_v28  ;;  %v4835_v28 = vld [vmem:[%s6417_s10 + $0x3] ss:$0 sm:$0xff] }
 0x8dc   :  { %4619 = vmatmul.msk.bf16.vlgmr.msra.gmra.mxu2 %vm555_vm3, %v3350_v24 }
 0x919   :  { %v2744_v16 = vpop.f32.mrf.mxu3 }
 0x91f   :  { %v2785_v49 = vpop.f32.mrf.mxu2 }
 0x920   :  { %v2786_v47 = vadd.f32 %v2785_v49, %v2744_v16 }
 0x921   :  { %v2746_v6 = vpop.f32.mrf.mxu3 }
 0x927   :  { %v2787_v44 = vpop.f32.mrf.mxu2 }
 0x928   :  { %v2788_v25 = vadd.f32 %v2787_v44, %v2746_v6 }
 0x929   :  { %v2861_v48 = vpop.f32.mrf.mxu3 }
 0x92a   :  { %v2866_v53 = vadd.f32 %v2861_v48, %v2786_v47 }
 0x92f   :  { %v2888_v41 = vpop.f32.mrf.mxu2 }
 0x931   :  { %v2863_v23 = vpop.f32.mrf.mxu3 }
 0x932   :  { %v2867_v15 = vadd.f32 %v2863_v23, %v2788_v25 }
 0x937   :  { %v2890_v40 = vpop.f32.mrf.mxu2 }
 0x938   :  { %v2893_v27 = vpack.c.bf16 %v2890_v40, %v2888_v41 }
 0x939   :  { %v3017_v57 = vpop.f32.mrf.mxu3 }
 0x93a   :  { %4450 = vmatmul.msk.bf16.vlgmr.msra.gmra.mxu0 %vm178_vm0, %v2893_v27 }
 0x93b   :  { %3246 = vmatpush.bf16.msra.mxu0 %v4809_v19  ;;  %v4836_v19 = vld [vmem:[%s6417_s10 + $0x4] ss:$0 sm:$0xff] }
 0x93f   :  { %v3044_v9 = vpop.f32.mrf.mxu2  ;;  %3247 = vmatpush.bf16.msra.mxu0 %v4808_v29 }
 0x941   :  { %v3019_v34 = vpop.f32.mrf.mxu3 }
 0x943   :  { %3248 = vmatpush.bf16.msra.mxu0 %v4807_v31 }
 0x947   :  { %v3046_v5 = vpop.f32.mrf.mxu2  ;;  %3249 = vmatpush.bf16.msra.mxu0 %v4806_v58 }
 0x948   :  { %v3049_v61 = vpack.c.bf16 %v3046_v5, %v3044_v9 }
 0x949   :  { %v3173_v36 = vpop.f32.mrf.mxu3 }
 0x94a   :  { %4514 = vmatmul.msk.bf16.vlgmr.msrb.gmra.mxu0 %vm178_vm0, %v3049_v61 }
 0x94b   :  { %3405 = vmatpush.bf16.msrb.mxu0 %v4816_v17 }
 0x94f   :  { %v3200_v11 = vpop.f32.mrf.mxu2  ;;  %3406 = vmatpush.bf16.msrb.mxu0 %v4815_v43 }
 0x951   :  { %v3175_v21 = vpop.f32.mrf.mxu3 }
 0x957   :  { %v3202_v3 = vpop.f32.mrf.mxu2 }
 0x958   :  { %v3205_v38 = vpack.c.bf16 %v3202_v3, %v3200_v11 }
 0x959   :  { %v3329_v0 = vpop.f32.mrf.mxu3 }
 0x95a   :  { %4578 = vmatmul.msk.bf16.vlgmr.msra.gmra.mxu0 %vm178_vm0, %v3205_v38  ;;  %v4837_v38 = vld [vmem:[%s6417_s10 + $0x5] ss:$0 sm:$0xff] }
 0x95f   :  { %v3379_v22 = vpop.f32.mrf.mxu2 }
 0x960   :  { %v3383_v33 = vperm.slane %v3379_v22, 0 }
 0x961   :  { %v3331_v45 = vpop.f32.mrf.mxu3 }
 0x967   :  { %v3381_v52 = vpop.f32.mrf.mxu2 }
 0x9b7   :  { %v2939_v20 = vpop.f32.mrf.mxu0 }
 0x9b8   :  { %v2944_v14 = vadd.f32 %v2939_v20, %v2866_v53 }
 0x9ba   :  { %v3022_v39 = vadd.f32 %v3017_v57, %v2944_v14  ;;  %v3480_v14 = vld [vmem:[%s6424_s11] sm:$0x1] }
 0x9bb   :  { %3483 = vrot.lane.b32.xlu2 %v3480_v14, %s4858_s14 }
 0x9bf   :  { %v2941_v63 = vpop.f32.mrf.mxu0 }
 0x9c0   :  { %v2945_v1 = vadd.f32 %v2941_v63, %v2867_v15 }
 0x9c2   :  { %v3023_v13 = vadd.f32 %v3019_v34, %v2945_v1 }
 0x9c7   :  { %v3095_v2 = vpop.f32.mrf.mxu0 }
 0x9c8   :  { %v3100_v18 = vadd.f32 %v3095_v2, %v3022_v39 }
 0x9ca   :  { %v3178_v60 = vadd.f32 %v3173_v36, %v3100_v18 }
 0x9cf   :  { %v3097_v30 = vpop.f32.mrf.mxu0 }
 0x9d0   :  { %v3101_v4 = vadd.f32 %v3097_v30, %v3023_v13 }
 0x9d2   :  { %v3179_v37 = vadd.f32 %v3175_v21, %v3101_v4  ;;  %v4822_v4 = vld [vmem:[%s6426_s7 + $0x18] sm:$0xff] }
 0x9d3   :  { %3528 = vmatpush.bf16.msra.mxu1 %v4822_v4 }
 0x9d7   :  { %v3251_v12 = vpop.f32.mrf.mxu0 }
 0x9d8   :  { %v3256_v50 = vadd.f32 %v3251_v12, %v3178_v60 }
 0x9da   :  { %v3334_v35 = vadd.f32 %v3329_v0, %v3256_v50  ;;  %v4821_v50 = vld [vmem:[%s6426_s7 + $0x10] sm:$0xff] }
 0x9db   :  { %3529 = vmatpush.bf16.msra.mxu1 %v4821_v50 }
 0x9dc   :  { %v6337_v56 = vadd.f32 %v4834_v7, %v3334_v35  ;;  %v4819_v35 = vld [vmem:[%s6426_s7] sm:$0xff] }
 0x9de   :  { %v3339_v32 = vmax.f32 %v6337_v56, 0.0 }
 0x9df   :  { %v3253_v54 = vpop.f32.mrf.mxu0 }
 0x9e0   :  { %v3257_v10 = vadd.f32 %v3253_v54, %v3179_v37  ;;  %v4820_v37 = vld [vmem:[%s6426_s7 + $0x8] sm:$0xff] }
 0x9e1   :  { %3530 = vmatpush.bf16.msra.mxu1 %v4820_v37 }
 0x9e2   :  { %v3335_v42 = vadd.f32 %v3331_v45, %v3257_v10 }
 0x9e4   :  { %v6339_v59 = vadd.f32 %v4834_v7, %v3335_v42  ;;  %v3481_v7 = vld [vmem:[%s6424_s11 + $0x1] sm:$0x1] }
 0x9e5   :  { %3531 = vmatpush.bf16.msra.mxu1 %v4819_v35 }
 0x9e6   :  { %v3340_v62 = vmax.f32 %v6339_v59, 0.0  ;;  %v3496_v59 = vld [vmem:[%s6427_s8] sm:$0x1]  ;;  %s4860_s8 = smov 96  }
 0x9e8   :  { %v3345_v49 = vpack.c.bf16 %v3340_v62, %v3339_v32 }
 0x9ea   :  { %4628 = vmatmul.msk.bf16.vlgmr.msrb.gmra.mxu0 %vm555_vm3, %v3345_v49 }
 0xa67   :  { %v3408_v26 = vpop.f32.mrf.mxu0 }
 0xa68   :  { %v3409_v44 = vadd.f32 %v3408_v26, %v3383_v33 }
 0xa6a   :  { %v3414_v41 = vadd.f32 %v4835_v28, %v3409_v44 }
 0xa6c   :  { %4838 = vtanh.f32 %v3414_v41 }
 0xa6f   :  { %v3410_v40 = vpop.f32.mrf.mxu0 }
 0xa70   :  { %v3411_v27 = vadd.f32 %v3410_v40, %v3383_v33  ;;  %v3484_v40 = vpop.permute.xlu2 %3483 }
 0xa72   :  { %v4839_v29 = vpop.eup %4838  ;;  %v3415_v9 = vadd.f32 %v4835_v28, %v3411_v27 }
 0xa73   :  { %v3419_v31 = vmul.f32 %v4839_v29, %v4836_v19 }
 0xa74   :  { %4840 = vtanh.f32 %v3415_v9 }
 0xa75   :  { %v3421_v58 = vsel %vm555_vm3, %v3419_v31, 0.0 }
 0xa76   :  { %3422 = vadd.xlane.f32.xlu0 %v3421_v58 }
 0xa7a   :  { %v4841_v5 = vpop.eup %4840 }
 0xa7b   :  { %v3420_v61 = vmul.f32 %v4841_v5, %v4836_v19 }
 0xa7d   :  { %v3424_v11 = vsel %vm555_vm3, %v3420_v61, 0.0 }
 0xa7e   :  { %3425 = vadd.xlane.f32.xlu0 %v3424_v11 }
 0xa92   :  { %3558 = vrot.lane.b32.xlu0 %v3481_v7, %s4858_s14 }
 0xae9   :  { %v3423_v3 = vpop.xlane.xlu0 %3422 }
 0xaea   :  { %v3428_v16 = vadd.f32 %v4837_v38, %v3423_v3 }
 0xaec   :  { %v3431_v23 = vsel %vm3430_vm6, %v3428_v16, -inf }
 0xaf1   :  { %v3426_v6 = vpop.xlane.xlu0 %3425 }
 0xaf2   :  { %v3429_v48 = vadd.f32 %v4837_v38, %v3426_v6 }
 0xaf4   :  { %v3432_v57 = vsel %vm3430_vm6, %v3429_v48, -inf }
 0xaf5   :  { %v3433_v55 = vmax.f32 %v3431_v23, %v3432_v57 }
 0xaf7   :  { %v3434_v46 = vrot.slane %v3433_v55, 4 }
 0xaf9   :  { %v3435_v20 = vmax.f32 %v3433_v55, %v3434_v46 }
 0xafb   :  { %v3436_v8 = vrot.slane %v3435_v20, 2 }
 0xafd   :  { %v3437_v34 = vmax.f32 %v3435_v20, %v3436_v8 }
 0xaff   :  { %v3438_v24 = vrot.slane %v3437_v34, 1 }
 0xb01   :  { %v3439_v63 = vmax.f32 %v3437_v34, %v3438_v24 }
 0xb03   :  { %v3440_v17 = vsub.f32 %v3428_v16, %v3439_v63  ;;  %v3441_v36 = vsub.f32 %v3429_v48, %v3439_v63 }
 0xb04   :  { %v3559_v8 = vpop.permute.xlu0 %3558 }
 0xb05   :  { %v3442_v43 = vmul.f32 1.442695, %v3440_v17  ;;  %v3444_v2 = vmul.f32 1.442695, %v3441_v36 }
 0xb07   :  { %4842 = vpow2.f32 %v3442_v43 }
 0xb08   :  { %4844 = vpow2.f32 %v3444_v2 }
 0xb0d   :  { %v4843_v51 = vpop.eup %4842 }
 0xb0e   :  { %v4845_v47 = vpop.eup %4844  ;;  %v3446_v53 = vsel %vm3430_vm6, %v4843_v51, 0.0 }
 0xb0f   :  { %v3447_v21 = vsel %vm3430_vm6, %v4845_v47, 0.0 }
 0xb10   :  { %v3448_v30 = vadd.f32 %v3447_v21, %v3446_v53 }
 0xb12   :  { %v3449_v25 = vrot.slane %v3448_v30, 4 }
 0xb14   :  { %v3450_v15 = vadd.f32 %v3449_v25, %v3448_v30  ;;  %v3589_v30 = vld [vmem:[%s6417_s10 + $0x6] sm:$0x1] }
 0xb16   :  { %v3451_v39 = vrot.slane %v3450_v15, 2 }
 0xb18   :  { %v3452_v1 = vadd.f32 %v3451_v39, %v3450_v15 }
 0xb1a   :  { %v3453_v18 = vrot.slane %v3452_v1, 1 }
 0xb1c   :  { %v3454_v12 = vadd.f32 %v3453_v18, %v3452_v1 }
 0xb1e   :  { %4846 = vrcp.f32 %v3454_v12 }
 0xb24   :  { %v4847_v0 = vpop.eup %4846 }
 0xb25   :  { %v3456_v13 = vmul.f32 %v4847_v0, %v4843_v51  ;;  %v3457_v60 = vmul.f32 %v4847_v0, %v4845_v47  ;;  %v4824_v51 = vld [vmem:[%s6428_s9 + $0x8] sm:$0xff]  ;;  %v4823_v47 = vld [vmem:[%s6428_s9] sm:$0xff] }
 0xb26   :  { %3619 = vmatpush.bf16.msra.mxu3 %v4824_v51 }
 0xb27   :  { %3460 = vperm.xlu1 %4830, %v3456_v13  }
 0xb2a   :  { %3620 = vmatpush.bf16.msra.mxu3 %v4823_v47 }
 0xb2f   :  { %3465 = vperm.xlu1 %4830, %v3457_v60  }
 0xb99   :  { %v3461_v54 = vpop.permute.xlu1 %3460 }
 0xb9a   :  { %v3468_v10 = vmul.f32 %v3461_v54, %v3339_v32 }
 0xb9c   :  { %v3470_v49 = vsel %vm555_vm3, %v3468_v10, 0.0 }
 0xba1   :  { %v3466_v45 = vpop.permute.xlu1 %3465 }
 0xba2   :  { %v3469_v42 = vmul.f32 %v3466_v45, %v3340_v62 }
 0xba4   :  { %v3471_v22 = vsel %vm555_vm3, %v3469_v42, 0.0 }
 0xba5   :  { %v3472_v52 = vadd.f32 %v3471_v22, %v3470_v49 }
 0xba7   :  { %v3473_v33 = vrot.slane %v3472_v52, 4 }
 0xba9   :  { %v3474_v28 = vadd.f32 %v3473_v33, %v3472_v52 }
 0xbab   :  { %v3475_v26 = vrot.slane %v3474_v28, 2 }
 0xbad   :  { %v3476_v44 = vadd.f32 %v3475_v26, %v3474_v28 }
 0xbaf   :  { %v3477_v41 = vrot.slane %v3476_v44, 1 }
 0xbb1   :  { %v3478_v19 = vadd.f32 %v3477_v41, %v3476_v44 }
 0xbb3   :  { %v3486_v27 = vsel %vm555_vm3, %v3478_v19, %v3484_v40 }
 0xbb4   :  { %v3487_v56 = vpack.c.bf16 %v3486_v27, %v3486_v27 }
 0xbb6   :  { %4645 = vmatmul.msk.bf16.vlgmr.msra.gmra.mxu1 %vm178_vm0, %v3487_v56 }
 0xc33   :  { %v3533_v32 = vpop.f32.mrf.mxu1 }
 0xc34   :  { %v3534_v62 = vadd.f32 %v3533_v32, %v3496_v59 }
 0xc36   :  { %4848 = vtanh.f32 %v3534_v62  ;;  %v4646_v31 = vmul.f32 -1.442695, %v3534_v62 }
 0xc38   :  { %4850 = vpow2.f32 %v4646_v31 }
 0xc3b   :  { %v3535_v29 = vpop.f32.mrf.mxu1 }
 0xc3c   :  { %v4849_v9 = vpop.eup %4848 }
 0xc3d   :  { %3563 = vrot.lane.b32.xlu2 %v4849_v9, %s4859_s21 }
 0xc3e   :  { %v4851_v58 = vpop.eup %4850 }
 0xc3f   :  { %v3540_v5 = vadd.f32 1.0, %v4851_v58 }
 0xc41   :  { %4852 = vrcp.f32 %v3540_v5  ;;  %v3552_v6 = vand.u32 2147483648, %v3540_v5  ;;  %vm3546_vm8 = vweird.f32 %v3540_v5  ;;  %v3550_v48 = vand.u32 2147483647, %v3540_v5 }
 0xc43   :  { %v3553_v57 = vor.u32 1.1754944e-38, %v3552_v6  ;;  %vm3551_vm10 = vcmp.eq.f32.partialorder %v3550_v48, 8.507059e+37 }
 0xc47   :  { %v4853_v61 = vpop.eup %4852 }
 0xc48   :  { %v3542_v11 = vmul.f32 %v4853_v61, %v3540_v5  ;;  %vm3547_vm7 = vweird.f32 %v4853_v61 }
 0xc49   :  { %vm3548_vm9 = vmor %vm3546_vm8, %vm3547_vm7 }
 0xc4a   :  { %v3543_v3 = vsub.f32 1.0, %v3542_v11 }
 0xc4c   :  { %v3544_v38 = vmul.f32 %v4853_v61, %v3543_v3 }
 0xc4e   :  { %v3545_v16 = vadd.f32 %v4853_v61, %v3544_v38 }
 0xc50   :  { %v3549_v23 = vsel %vm3548_vm9, %v4853_v61, %v3545_v16 }
 0xc51   :  { %v3554_v55 = vsel %vm3551_vm10, %v3553_v57, %v3549_v23 }
 0xc52   :  { %v3561_v34 = vmul.f32 %v3559_v8, %v3554_v55 }
 0xc97   :  { %v3564_v46 = vpop.permute.xlu2 %3563 }
 0xc98   :  { %v3566_v20 = vmul.f32 %v3564_v46, %v3554_v55 }
 0xc9a   :  { %3568 = vrot.lane.b32.xlu1 %v3566_v20, %s4858_s14 }
 0xd0c   :  { %v3569_v24 = vpop.permute.xlu1 %3568 }
 0xd0d   :  { %v3571_v63 = vadd.f32 %v3569_v24, %v3561_v34 }
 0xd0f   :  { %4854 = vtanh.f32 %v3571_v63 }
 0xd15   :  { %v4855_v17 = vpop.eup %4854 }
 0xd16   :  { %3574 = vrot.lane.b32.xlu2 %v4855_v17, %s4859_s21 }
 0xd70   :  { %v3575_v36 = vpop.permute.xlu2 %3574 }
 0xd71   :  { %v3577_v43 = vmul.f32 %v3575_v36, %v3554_v55 }
 0xd73   :  { %v3590_v2 = vpack.c.bf16 %v3577_v43, %v3577_v43  ;;  %3579 = vrot.lane.b32.xlu2 %v3577_v43, %s4858_s14 }
 0xd75   :  { %3596 = vrot.lane.b32.xlu1 %v3590_v2, %s4858_s14 }
 0xd7d   :  { %3585 = vrot.lane.b32.xlu1 %v3571_v63, %s4860_s8 }
 0xdcd   :  { %v3580_v53 = vpop.permute.xlu2 %3579 }
 0xdce   :  { %3583 = vst.msk [vmem:[%s6425_s12] sm:$0x1] %vm3582_vm11, %v3580_v53 }
 0xde7   :  { %v3597_v21 = vpop.permute.xlu1 %3596 }
 0xde8   :  { %4655 = vmatmul.msk.bf16.vlgmr.msra.gmra.mxu3 %vm555_vm3, %v3597_v21 }
 0xdef   :  { %v3586_v14 = vpop.permute.xlu1 %3585 }
 0xdf0   :  { %3588 = vst.msk [vmem:[%s6425_s12 + $0x1] sm:$0x1] %vm3582_vm11, %v3586_v14 }
 0xe6b   :  { %v3622_v25 = vpop.f32.mrf.mxu3 }
 0xe6c   :  { %v3623_v15 = vadd.f32 %v3622_v25, %v3589_v30 }
 0xe6e   :  { %3626 = vst [vmem:[%s6425_s12 + $0x2] sm:$0x1] %v3623_v15 }
 0xe73   :  { %v3624_v39 = vpop.f32.mrf.mxu3 }

</bundles_post_ra>
